<compile_context>
chip_gen: v5e
topology: v5e:2x2
jax: 0.10.0
libtpu: 0.0.40
codegen_flags: <defaults>
</compile_context>

<pallas_src>
import jax
import jax.numpy as jnp
from jax.experimental import pallas as pl
from jax.experimental.pallas import tpu as pltpu

NEG_BIG = -1e30  # softmax pad-column bias (finite -> exp underflows to exactly 0)


def seq2seq_kernel(
    # activations / masks (batch-major)
    xenc_ref, xdec_ref, xdec_bf_ref, menc_ref, mdec_ref,
    # encoder LSTM params
    wih_e_ref, whh_e_ref, b_e_ref,
    # decoder LSTM params (input weight split: x part / context part)
    wx_d_ref, wctx_d_ref, whh_d_ref, b_d_ref,
    # attention Linear(2H+E -> T_enc), padded to (A_pad, T_pad); pad bias = -1e30
    watt_ref, batt_ref,
    # idea alignment Linear(2H -> H) and output projection (V lane-padded)
    wia_ref, bia_ref, wout_ref, bout_ref,
    # outputs (lane-padded)
    yhat_ref, attin_ref,
    # VMEM scratch: per-step encoder / decoder hidden outputs
    enc_o_ref, lstm_out_ref,
):
    B, T_enc, E = xenc_ref.shape
    T_dec = xdec_ref.shape[1]
    H = whh_e_ref.shape[0]
    f32 = jnp.float32
    bf16 = jnp.bfloat16

    menc = menc_ref[...]                       # (B, T_enc) f32 validity mask
    mdec = mdec_ref[...]                       # (B, T_dec) f32 validity mask
    whh_e = whh_e_ref[...]                     # (H, 4H) bf16
    whh_d = whh_d_ref[...]                     # (H, 4H) bf16

    def lstm_step(g_x, h, c, whh):
        # g_x already holds x@W_ih (+context@W_ctx) + bias; only the recurrent
        # matmul sits on the loop-carried critical path.
        gates = g_x + jnp.dot(h.astype(bf16), whh, preferred_element_type=f32)  # (B,4H)
        sig = jax.nn.sigmoid(gates)            # two full-tile transcendentals
        tg = jnp.tanh(gates)
        i = sig[:, 0 * H:1 * H]
        f = sig[:, 1 * H:2 * H]
        g = tg[:, 2 * H:3 * H]
        o = sig[:, 3 * H:4 * H]
        c_new = f * c + i * g
        h_new = o * jnp.tanh(c_new)
        return h_new, c_new

    # ---------------- Encoder LSTM (zero init; pack_padded via masking) ----------------
    # Hoisted input projection: one (B*T_enc, E) @ (E, 4H) matmul (bf16 operands).
    xg_enc = (jnp.dot(xenc_ref[...].reshape(B * T_enc, E), wih_e_ref[...],
                      preferred_element_type=f32).reshape(B, T_enc, 4 * H)
              + b_e_ref[...])

    h = jnp.zeros((B, H), f32)
    c = jnp.zeros((B, H), f32)
    for t in range(T_enc):                     # static unroll (T small, compile-time)
        m = menc[:, t:t + 1]                   # (B, 1)
        h_new, c_new = lstm_step(xg_enc[:, t, :], h, c, whh_e)
        h = m * h_new + (1.0 - m) * h          # freeze state past sequence length
        c = m * c_new + (1.0 - m) * c
        enc_o_ref[:, t, :] = m * h_new         # pad_packed zeroes padded positions

    # context = h_n + c_n (num_layers * num_directions == 1)
    ctx = h + c                                # (B, H) f32
    ctx_bf = ctx.astype(bf16)

    # ---------------- Decoder LSTM (initial state = encoder final state) ----------------
    # Hoisted input projection; the context half of W_ih is loop-invariant.
    xg_dec = (jnp.dot(xdec_bf_ref[...].reshape(B * T_dec, E), wx_d_ref[...],
                      preferred_element_type=f32).reshape(B, T_dec, 4 * H)
              + jnp.dot(ctx_bf, wctx_d_ref[...], preferred_element_type=f32)[:, None, :]
              + b_d_ref[...])

    for t in range(T_dec):
        m = mdec[:, t:t + 1]
        h_new, c_new = lstm_step(xg_dec[:, t, :], h, c, whh_d)
        h = m * h_new + (1.0 - m) * h
        c = m * c_new + (1.0 - m) * c
        lstm_out_ref[:, t, :] = m * h_new

    lstm_out = lstm_out_ref[...]               # (B, T_dec, H) f32
    enc_o = enc_o_ref[...]                     # (B, T_enc, H) f32

    # -------- attention_input = cat(lstm_out, context, x), lane-padded to A_pad --------
    A = 2 * H + E
    A_pad = attin_ref.shape[-1]
    ctx_b = jnp.broadcast_to(ctx[:, None, :], (B, T_dec, H))
    pieces = [lstm_out, ctx_b, xdec_ref[...]]
    if A_pad > A:
        pieces.append(jnp.zeros((B, T_dec, A_pad - A), f32))
    attin = jnp.concatenate(pieces, axis=-1)   # (B, T_dec, A_pad)
    attin_ref[...] = attin                     # one bulk lane-dense store

    # ---------------- Attention (no_grad in reference) + softmax ----------------
    # Single lane-dense (K=A_pad, N=T_pad) matmul; pad rows/cols are zero so the
    # real columns are exact, pad columns get bias -1e30 -> softmax weight 0.
    T_pad = watt_ref.shape[-1]
    att = (jnp.dot(attin.reshape(B * T_dec, A_pad).astype(bf16), watt_ref[...],
                   preferred_element_type=f32).reshape(B, T_dec, T_pad)
           + batt_ref[...])
    att = att - jnp.max(att, axis=-1, keepdims=True)
    e = jnp.exp(att)
    soft = e * pl.reciprocal(jnp.sum(e, axis=-1, keepdims=True), approx=True)

    # h_t_bar = bmm(soft_attention, encoder_outputs): VPU FMA accumulation over the
    # T_enc real columns (pad columns never contribute; enc_o pad rows are zero anyway).
    hbar = jnp.zeros((B, T_dec, H), f32)
    for t in range(T_enc):
        hbar = hbar + soft[:, :, t:t + 1] * enc_o[:, t, :][:, None, :]

    # ---------------- Idea alignment (fused K=2H matmul) + output projection -----------
    lo_flat = lstm_out.reshape(B * T_dec, H)
    hb_flat = hbar.reshape(B * T_dec, H)
    ia_in = jnp.concatenate([lo_flat, hb_flat], axis=-1).astype(bf16)   # (B*T_dec, 2H)
    ai = jax.nn.sigmoid(jnp.dot(ia_in, wia_ref[...], preferred_element_type=f32)
                        + bia_ref[...])
    out = lo_flat + hb_flat * ai                                        # (B*T_dec, H)
    logits = (jnp.dot(out.astype(bf16), wout_ref[...], preferred_element_type=f32)
              + bout_ref[...])                                          # (B*T_dec, V_pad)
    yhat_ref[...] = logits.reshape(B, T_dec, yhat_ref.shape[-1])


def make_params(key, vocab_size, embed_dim, hidden_dim, t_enc):
    ks = jax.random.split(key, 12)
    s = 0.1
    H, E, V = hidden_dim, embed_dim, vocab_size
    emb = jax.random.normal(ks[0], (V, E), jnp.float32) * s
    emb = emb.at[0].set(0.0)                 # Embedding(padding_idx=0)
    return dict(
        embedding=emb,
        w_ih_enc=jax.random.normal(ks[1], (E, 4 * H), jnp.float32) * s,
        w_hh_enc=jax.random.normal(ks[2], (H, 4 * H), jnp.float32) * s,
        b_enc=jax.random.normal(ks[3], (1, 4 * H), jnp.float32) * s,      # b_ih + b_hh combined
        w_ih_dec=jax.random.normal(ks[4], (H + E, 4 * H), jnp.float32) * s,
        w_hh_dec=jax.random.normal(ks[5], (H, 4 * H), jnp.float32) * s,
        b_dec=jax.random.normal(ks[6], (1, 4 * H), jnp.float32) * s,
        # external `attention` module modeled as Linear(2H+E -> max_encoder_length)
        w_att=jax.random.normal(ks[7], (2 * H + E, t_enc), jnp.float32) * s,
        b_att=jax.random.normal(ks[8], (1, t_enc), jnp.float32) * s,
        w_ia=jax.random.normal(ks[9], (2 * H, H), jnp.float32) * s,       # idea_alignment
        b_ia=jax.random.normal(ks[10], (1, H), jnp.float32) * s,
        w_out=jax.random.normal(ks[11], (H, V), jnp.float32) * s,         # output projection
        b_out=jnp.zeros((1, V), jnp.float32),
    )


def _round_up(x, m):
    return ((x + m - 1) // m) * m


@jax.jit
def seq2seq_forward(params, x_encoder, x_decoder, encoder_lengths, decoder_lengths):
    B, T_enc = x_encoder.shape
    _, T_dec = x_decoder.shape
    V, E = params["embedding"].shape
    H = params["w_hh_enc"].shape[0]
    A = 2 * H + E
    V_pad = _round_up(V, 128)        # lane-dense output stores
    A_pad = _round_up(A, 128)        # lane-dense attention_input + attention LHS
    T_pad = _round_up(T_enc, 128)    # lane-dense attention matmul N / softmax width
    bf16 = jnp.bfloat16
    f32 = jnp.float32

    # Embedding lookups (glue).  Dropout(p=0.2) treated as identity.
    # TODO(synk): training-mode Dropout is stochastic; eval-mode identity used here.
    emb_enc = jnp.take(params["embedding"], x_encoder, axis=0)   # (B, T_enc, E)
    emb_dec = jnp.take(params["embedding"], x_decoder, axis=0)   # (B, T_dec, E)

    # pack_padded_sequence validity masks, batch-major (B, T)
    menc = (jnp.arange(T_enc)[None, :] < encoder_lengths[:, None]).astype(f32)
    mdec = (jnp.arange(T_dec)[None, :] < decoder_lengths[:, None]).astype(f32)

    # Pre-split / pre-pad / pre-cast weights (MXU operands in bf16; biases stay f32).
    w_ih_dec = params["w_ih_dec"]
    w_att_p = jnp.pad(params["w_att"],
                      ((0, A_pad - A), (0, T_pad - T_enc))).astype(bf16)
    b_att_p = jnp.pad(params["b_att"], ((0, 0), (0, T_pad - T_enc)),
                      constant_values=NEG_BIG)
    w_out_p = jnp.pad(params["w_out"], ((0, 0), (0, V_pad - V))).astype(bf16)
    b_out_p = jnp.pad(params["b_out"], ((0, 0), (0, V_pad - V)))

    inputs = (
        emb_enc.astype(bf16),            # encoder embeddings are matmul-only -> bf16 DMA
        emb_dec,                         # f32 copy for the attention_input output store
        emb_dec.astype(bf16),            # bf16 copy for the decoder input projection
        menc, mdec,
        params["w_ih_enc"].astype(bf16), params["w_hh_enc"].astype(bf16), params["b_enc"],
        w_ih_dec[H:].astype(bf16),       # x part of decoder input weight
        w_ih_dec[:H].astype(bf16),       # context part (loop-invariant)
        params["w_hh_dec"].astype(bf16), params["b_dec"],
        w_att_p, b_att_p,
        params["w_ia"].astype(bf16), params["b_ia"],
        w_out_p, b_out_p,
    )
    vspec = pl.BlockSpec(memory_space=pltpu.MemorySpace.VMEM)

    yhat_p, attin_p = pl.pallas_call(
        seq2seq_kernel,
        out_shape=(
            jax.ShapeDtypeStruct((B, T_dec, V_pad), f32),
            jax.ShapeDtypeStruct((B, T_dec, A_pad), f32),
        ),
        in_specs=[vspec] * len(inputs),
        out_specs=[vspec, vspec],
        scratch_shapes=[
            pltpu.VMEM((B, T_enc, H), f32),   # encoder step outputs
            pltpu.VMEM((B, T_dec, H), f32),   # decoder step outputs
        ],
    )(*inputs)

    y_hat = yhat_p[..., :V]                       # (B, T_dec, V)
    attention_input = attin_p[..., :A]            # (B, T_dec, 2H+E)
    # attention_targets[:, t] = (T_enc // T_dec) * t  (t = 0 -> 0), torch.long -> int32
    attention_targets = jnp.broadcast_to(
        (T_enc // T_dec) * jnp.arange(T_dec, dtype=jnp.int32), (B, T_dec))
    return y_hat, attention_input, attention_targets


if __name__ == "__main__":
    key = jax.random.PRNGKey(0)
    vocab_size, embed_dim, hidden_dim = 64, 32, 32
    max_encoder_seq_len, max_decoder_seq_len = 8, 8
    batch = 2

    pkey, k1, k2 = jax.random.split(key, 3)
    params = make_params(pkey, vocab_size, embed_dim, hidden_dim, max_encoder_seq_len)

    x_encoder = jax.random.randint(k1, (batch, max_encoder_seq_len), 1, vocab_size,
                                   dtype=jnp.int32)
    x_decoder = jax.random.randint(k2, (batch, max_decoder_seq_len), 1, vocab_size,
                                   dtype=jnp.int32)
    encoder_lengths = jnp.array([8, 6], dtype=jnp.int32)
    decoder_lengths = jnp.array([8, 5], dtype=jnp.int32)
    # pad token ids past each length with padding_idx=0 (consistent with lengths)
    x_encoder = jnp.where(jnp.arange(max_encoder_seq_len)[None, :]
                          < encoder_lengths[:, None], x_encoder, 0)
    x_decoder = jnp.where(jnp.arange(max_decoder_seq_len)[None, :]
                          < decoder_lengths[:, None], x_decoder, 0)

    y_hat, attention_input, attention_targets = seq2seq_forward(
        params, x_encoder, x_decoder, encoder_lengths, decoder_lengths)
    jax.block_until_ready((y_hat, attention_input, attention_targets))

    assert y_hat.shape == (batch, max_decoder_seq_len, vocab_size)
    assert attention_input.shape == (batch, max_decoder_seq_len,
                                     2 * hidden_dim + embed_dim)
    assert attention_targets.shape == (batch, max_decoder_seq_len)
    assert bool(jnp.all(jnp.isfinite(y_hat)))
    assert bool(jnp.all(jnp.isfinite(attention_input)))
    print("KERNEL_OK")
</pallas_src>

<mosaic_0001>
module attributes {stable_mosaic.version = 11 : i64} {
  func.func @seq2seq_kernel(%arg0: memref<2x8x32xbf16, #tpu.memory_space<vmem>>, %arg1: memref<2x8x32xf32, #tpu.memory_space<vmem>>, %arg2: memref<2x8x32xbf16, #tpu.memory_space<vmem>>, %arg3: memref<2x8xf32, #tpu.memory_space<vmem>>, %arg4: memref<2x8xf32, #tpu.memory_space<vmem>>, %arg5: memref<32x128xbf16, #tpu.memory_space<vmem>>, %arg6: memref<32x128xbf16, #tpu.memory_space<vmem>>, %arg7: memref<1x128xf32, #tpu.memory_space<vmem>>, %arg8: memref<32x128xbf16, #tpu.memory_space<vmem>>, %arg9: memref<32x128xbf16, #tpu.memory_space<vmem>>, %arg10: memref<32x128xbf16, #tpu.memory_space<vmem>>, %arg11: memref<1x128xf32, #tpu.memory_space<vmem>>, %arg12: memref<128x128xbf16, #tpu.memory_space<vmem>>, %arg13: memref<1x128xf32, #tpu.memory_space<vmem>>, %arg14: memref<64x32xbf16, #tpu.memory_space<vmem>>, %arg15: memref<1x32xf32, #tpu.memory_space<vmem>>, %arg16: memref<32x128xbf16, #tpu.memory_space<vmem>>, %arg17: memref<1x128xf32, #tpu.memory_space<vmem>>, %arg18: memref<2x8x128xf32, #tpu.memory_space<vmem>>, %arg19: memref<2x8x128xf32, #tpu.memory_space<vmem>>, %arg20: memref<2x8x32xf32, #tpu.memory_space<vmem>>, %arg21: memref<2x8x32xf32, #tpu.memory_space<vmem>>) attributes {dimension_semantics = [], scalar_prefetch = 0 : i64, scratch_operands = 2 : i64, tpu.core_type = #tpu.core_type<tc>} {
    %c0 = arith.constant 0 : index
    %c0_0 = arith.constant 0 : index
    %0 = vector.load %arg3[%c0, %c0_0] : memref<2x8xf32, #tpu.memory_space<vmem>>, vector<2x8xf32>
    %c0_1 = arith.constant 0 : index
    %c0_2 = arith.constant 0 : index
    %1 = vector.load %arg4[%c0_1, %c0_2] : memref<2x8xf32, #tpu.memory_space<vmem>>, vector<2x8xf32>
    %c0_3 = arith.constant 0 : index
    %c0_4 = arith.constant 0 : index
    %2 = vector.load %arg6[%c0_3, %c0_4] : memref<32x128xbf16, #tpu.memory_space<vmem>>, vector<32x128xbf16>
    %c0_5 = arith.constant 0 : index
    %c0_6 = arith.constant 0 : index
    %3 = vector.load %arg10[%c0_5, %c0_6] : memref<32x128xbf16, #tpu.memory_space<vmem>>, vector<32x128xbf16>
    %c0_7 = arith.constant 0 : index
    %c0_8 = arith.constant 0 : index
    %c0_9 = arith.constant 0 : index
    %4 = vector.load %arg0[%c0_7, %c0_8, %c0_9] : memref<2x8x32xbf16, #tpu.memory_space<vmem>>, vector<2x8x32xbf16>
    %5 = vector.shape_cast %4 : vector<2x8x32xbf16> to vector<16x32xbf16>
    %c0_10 = arith.constant 0 : index
    %c0_11 = arith.constant 0 : index
    %6 = vector.load %arg5[%c0_10, %c0_11] : memref<32x128xbf16, #tpu.memory_space<vmem>>, vector<32x128xbf16>
    %cst = arith.constant dense<0.000000e+00> : vector<16x128xf32>
    %7 = tpu.matmul %5, %6, %cst {dimension_numbers = #tpu.dot_dimension_numbers<[1], [0], [0], [1], [0, 0, 1, 1], [], []>} : vector<16x32xbf16>, vector<32x128xbf16>, vector<16x128xf32> -> vector<16x128xf32>
    %8 = vector.shape_cast %7 : vector<16x128xf32> to vector<2x8x128xf32>
    %c0_12 = arith.constant 0 : index
    %c0_13 = arith.constant 0 : index
    %9 = vector.load %arg7[%c0_12, %c0_13] : memref<1x128xf32, #tpu.memory_space<vmem>>, vector<1x128xf32>
    %10 = vector.shape_cast %9 : vector<1x128xf32> to vector<1x1x128xf32>
    %11 = vector.broadcast %10 : vector<1x1x128xf32> to vector<2x8x128xf32>
    %12 = arith.addf %8, %11 : vector<2x8x128xf32>
    %cst_14 = arith.constant 0.000000e+00 : f32
    %13 = vector.broadcast %cst_14 : f32 to vector<2x32xf32>
    %cst_15 = arith.constant 0.000000e+00 : f32
    %14 = vector.broadcast %cst_15 : f32 to vector<2x32xf32>
    %15 = vector.extract_strided_slice %0 {offsets = [0, 0], sizes = [2, 1], strides = [1, 1]} : vector<2x8xf32> to vector<2x1xf32>
    %16 = vector.extract_strided_slice %12 {offsets = [0, 0, 0], sizes = [2, 1, 128], strides = [1, 1, 1]} : vector<2x8x128xf32> to vector<2x1x128xf32>
    %17 = vector.shape_cast %16 : vector<2x1x128xf32> to vector<2x128xf32>
    %18 = arith.truncf %13 : vector<2x32xf32> to vector<2x32xbf16>
    %cst_16 = arith.constant dense<0.000000e+00> : vector<2x128xf32>
    %19 = tpu.matmul %18, %2, %cst_16 {dimension_numbers = #tpu.dot_dimension_numbers<[1], [0], [0], [1], [0, 0, 1, 1], [], []>} : vector<2x32xbf16>, vector<32x128xbf16>, vector<2x128xf32> -> vector<2x128xf32>
    %20 = arith.addf %17, %19 : vector<2x128xf32>
    %21 = arith.negf %20 : vector<2x128xf32>
    %22 = math.exp %21 : vector<2x128xf32>
    %cst_17 = arith.constant 1.000000e+00 : f32
    %23 = vector.broadcast %cst_17 : f32 to vector<2x128xf32>
    %24 = arith.addf %23, %22 : vector<2x128xf32>
    %25 = arith.divf %23, %24 : vector<2x128xf32>
    %26 = math.tanh %20 : vector<2x128xf32>
    %27 = vector.extract_strided_slice %25 {offsets = [0, 0], sizes = [2, 32], strides = [1, 1]} : vector<2x128xf32> to vector<2x32xf32>
    %28 = vector.extract_strided_slice %25 {offsets = [0, 32], sizes = [2, 32], strides = [1, 1]} : vector<2x128xf32> to vector<2x32xf32>
    %29 = vector.extract_strided_slice %26 {offsets = [0, 64], sizes = [2, 32], strides = [1, 1]} : vector<2x128xf32> to vector<2x32xf32>
    %30 = vector.extract_strided_slice %25 {offsets = [0, 96], sizes = [2, 32], strides = [1, 1]} : vector<2x128xf32> to vector<2x32xf32>
    %31 = arith.mulf %28, %14 : vector<2x32xf32>
    %32 = arith.mulf %27, %29 : vector<2x32xf32>
    %33 = arith.addf %31, %32 : vector<2x32xf32>
    %34 = math.tanh %33 : vector<2x32xf32>
    %35 = arith.mulf %30, %34 : vector<2x32xf32>
    %36 = vector.broadcast %15 : vector<2x1xf32> to vector<2x32xf32>
    %37 = arith.mulf %36, %35 : vector<2x32xf32>
    %cst_18 = arith.constant 1.000000e+00 : f32
    %38 = vector.broadcast %cst_18 : f32 to vector<2x1xf32>
    %39 = arith.subf %38, %15 : vector<2x1xf32>
    %40 = vector.broadcast %39 : vector<2x1xf32> to vector<2x32xf32>
    %41 = arith.mulf %40, %13 : vector<2x32xf32>
    %42 = arith.addf %37, %41 : vector<2x32xf32>
    %43 = vector.broadcast %15 : vector<2x1xf32> to vector<2x32xf32>
    %44 = arith.mulf %43, %33 : vector<2x32xf32>
    %cst_19 = arith.constant 1.000000e+00 : f32
    %45 = vector.broadcast %cst_19 : f32 to vector<2x1xf32>
    %46 = arith.subf %45, %15 : vector<2x1xf32>
    %47 = vector.broadcast %46 : vector<2x1xf32> to vector<2x32xf32>
    %48 = arith.mulf %47, %14 : vector<2x32xf32>
    %49 = arith.addf %44, %48 : vector<2x32xf32>
    %50 = vector.broadcast %15 : vector<2x1xf32> to vector<2x32xf32>
    %51 = arith.mulf %50, %35 : vector<2x32xf32>
    %c0_20 = arith.constant 0 : index
    %c0_21 = arith.constant 0 : index
    %c0_22 = arith.constant 0 : index
    %52 = vector.load %arg20[%c0_20, %c0_21, %c0_22] : memref<2x8x32xf32, #tpu.memory_space<vmem>>, vector<2x1x32xf32>
    %53 = vector.shape_cast %52 : vector<2x1x32xf32> to vector<2x32xf32>
    %54 = vector.shape_cast %51 : vector<2x32xf32> to vector<2x1x32xf32>
    tpu.vector_store %arg20[%c0_20, %c0_21, %c0_22], %54 {strides = array<i32>} : memref<2x8x32xf32, #tpu.memory_space<vmem>>, vector<2x1x32xf32>,
    %55 = vector.extract_strided_slice %0 {offsets = [0, 1], sizes = [2, 1], strides = [1, 1]} : vector<2x8xf32> to vector<2x1xf32>
    %56 = vector.extract_strided_slice %12 {offsets = [0, 1, 0], sizes = [2, 1, 128], strides = [1, 1, 1]} : vector<2x8x128xf32> to vector<2x1x128xf32>
    %57 = vector.shape_cast %56 : vector<2x1x128xf32> to vector<2x128xf32>
    %58 = arith.truncf %42 : vector<2x32xf32> to vector<2x32xbf16>
    %cst_23 = arith.constant dense<0.000000e+00> : vector<2x128xf32>
    %59 = tpu.matmul %58, %2, %cst_23 {dimension_numbers = #tpu.dot_dimension_numbers<[1], [0], [0], [1], [0, 0, 1, 1], [], []>} : vector<2x32xbf16>, vector<32x128xbf16>, vector<2x128xf32> -> vector<2x128xf32>
    %60 = arith.addf %57, %59 : vector<2x128xf32>
    %61 = arith.negf %60 : vector<2x128xf32>
    %62 = math.exp %61 : vector<2x128xf32>
    %cst_24 = arith.constant 1.000000e+00 : f32
    %63 = vector.broadcast %cst_24 : f32 to vector<2x128xf32>
    %64 = arith.addf %63, %62 : vector<2x128xf32>
    %65 = arith.divf %63, %64 : vector<2x128xf32>
    %66 = math.tanh %60 : vector<2x128xf32>
    %67 = vector.extract_strided_slice %65 {offsets = [0, 0], sizes = [2, 32], strides = [1, 1]} : vector<2x128xf32> to vector<2x32xf32>
    %68 = vector.extract_strided_slice %65 {offsets = [0, 32], sizes = [2, 32], strides = [1, 1]} : vector<2x128xf32> to vector<2x32xf32>
    %69 = vector.extract_strided_slice %66 {offsets = [0, 64], sizes = [2, 32], strides = [1, 1]} : vector<2x128xf32> to vector<2x32xf32>
    %70 = vector.extract_strided_slice %65 {offsets = [0, 96], sizes = [2, 32], strides = [1, 1]} : vector<2x128xf32> to vector<2x32xf32>
    %71 = arith.mulf %68, %49 : vector<2x32xf32>
    %72 = arith.mulf %67, %69 : vector<2x32xf32>
    %73 = arith.addf %71, %72 : vector<2x32xf32>
    %74 = math.tanh %73 : vector<2x32xf32>
    %75 = arith.mulf %70, %74 : vector<2x32xf32>
    %76 = vector.broadcast %55 : vector<2x1xf32> to vector<2x32xf32>
    %77 = arith.mulf %76, %75 : vector<2x32xf32>
    %cst_25 = arith.constant 1.000000e+00 : f32
    %78 = vector.broadcast %cst_25 : f32 to vector<2x1xf32>
    %79 = arith.subf %78, %55 : vector<2x1xf32>
    %80 = vector.broadcast %79 : vector<2x1xf32> to vector<2x32xf32>
    %81 = arith.mulf %80, %42 : vector<2x32xf32>
    %82 = arith.addf %77, %81 : vector<2x32xf32>
    %83 = vector.broadcast %55 : vector<2x1xf32> to vector<2x32xf32>
    %84 = arith.mulf %83, %73 : vector<2x32xf32>
    %cst_26 = arith.constant 1.000000e+00 : f32
    %85 = vector.broadcast %cst_26 : f32 to vector<2x1xf32>
    %86 = arith.subf %85, %55 : vector<2x1xf32>
    %87 = vector.broadcast %86 : vector<2x1xf32> to vector<2x32xf32>
    %88 = arith.mulf %87, %49 : vector<2x32xf32>
    %89 = arith.addf %84, %88 : vector<2x32xf32>
    %90 = vector.broadcast %55 : vector<2x1xf32> to vector<2x32xf32>
    %91 = arith.mulf %90, %75 : vector<2x32xf32>
    %c0_27 = arith.constant 0 : index
    %c1 = arith.constant 1 : index
    %c0_28 = arith.constant 0 : index
    %92 = vector.load %arg20[%c0_27, %c1, %c0_28] : memref<2x8x32xf32, #tpu.memory_space<vmem>>, vector<2x1x32xf32>
    %93 = vector.shape_cast %92 : vector<2x1x32xf32> to vector<2x32xf32>
    %94 = vector.shape_cast %91 : vector<2x32xf32> to vector<2x1x32xf32>
    tpu.vector_store %arg20[%c0_27, %c1, %c0_28], %94 {strides = array<i32>} : memref<2x8x32xf32, #tpu.memory_space<vmem>>, vector<2x1x32xf32>,
    %95 = vector.extract_strided_slice %0 {offsets = [0, 2], sizes = [2, 1], strides = [1, 1]} : vector<2x8xf32> to vector<2x1xf32>
    %96 = vector.extract_strided_slice %12 {offsets = [0, 2, 0], sizes = [2, 1, 128], strides = [1, 1, 1]} : vector<2x8x128xf32> to vector<2x1x128xf32>
    %97 = vector.shape_cast %96 : vector<2x1x128xf32> to vector<2x128xf32>
    %98 = arith.truncf %82 : vector<2x32xf32> to vector<2x32xbf16>
    %cst_29 = arith.constant dense<0.000000e+00> : vector<2x128xf32>
    %99 = tpu.matmul %98, %2, %cst_29 {dimension_numbers = #tpu.dot_dimension_numbers<[1], [0], [0], [1], [0, 0, 1, 1], [], []>} : vector<2x32xbf16>, vector<32x128xbf16>, vector<2x128xf32> -> vector<2x128xf32>
    %100 = arith.addf %97, %99 : vector<2x128xf32>
    %101 = arith.negf %100 : vector<2x128xf32>
    %102 = math.exp %101 : vector<2x128xf32>
    %cst_30 = arith.constant 1.000000e+00 : f32
    %103 = vector.broadcast %cst_30 : f32 to vector<2x128xf32>
    %104 = arith.addf %103, %102 : vector<2x128xf32>
    %105 = arith.divf %103, %104 : vector<2x128xf32>
    %106 = math.tanh %100 : vector<2x128xf32>
    %107 = vector.extract_strided_slice %105 {offsets = [0, 0], sizes = [2, 32], strides = [1, 1]} : vector<2x128xf32> to vector<2x32xf32>
    %108 = vector.extract_strided_slice %105 {offsets = [0, 32], sizes = [2, 32], strides = [1, 1]} : vector<2x128xf32> to vector<2x32xf32>
    %109 = vector.extract_strided_slice %106 {offsets = [0, 64], sizes = [2, 32], strides = [1, 1]} : vector<2x128xf32> to vector<2x32xf32>
    %110 = vector.extract_strided_slice %105 {offsets = [0, 96], sizes = [2, 32], strides = [1, 1]} : vector<2x128xf32> to vector<2x32xf32>
    %111 = arith.mulf %108, %89 : vector<2x32xf32>
    %112 = arith.mulf %107, %109 : vector<2x32xf32>
    %113 = arith.addf %111, %112 : vector<2x32xf32>
    %114 = math.tanh %113 : vector<2x32xf32>
    %115 = arith.mulf %110, %114 : vector<2x32xf32>
    %116 = vector.broadcast %95 : vector<2x1xf32> to vector<2x32xf32>
    %117 = arith.mulf %116, %115 : vector<2x32xf32>
    %cst_31 = arith.constant 1.000000e+00 : f32
    %118 = vector.broadcast %cst_31 : f32 to vector<2x1xf32>
    %119 = arith.subf %118, %95 : vector<2x1xf32>
    %120 = vector.broadcast %119 : vector<2x1xf32> to vector<2x32xf32>
    %121 = arith.mulf %120, %82 : vector<2x32xf32>
    %122 = arith.addf %117, %121 : vector<2x32xf32>
    %123 = vector.broadcast %95 : vector<2x1xf32> to vector<2x32xf32>
    %124 = arith.mulf %123, %113 : vector<2x32xf32>
    %cst_32 = arith.constant 1.000000e+00 : f32
    %125 = vector.broadcast %cst_32 : f32 to vector<2x1xf32>
    %126 = arith.subf %125, %95 : vector<2x1xf32>
    %127 = vector.broadcast %126 : vector<2x1xf32> to vector<2x32xf32>
    %128 = arith.mulf %127, %89 : vector<2x32xf32>
    %129 = arith.addf %124, %128 : vector<2x32xf32>
    %130 = vector.broadcast %95 : vector<2x1xf32> to vector<2x32xf32>
    %131 = arith.mulf %130, %115 : vector<2x32xf32>
    %c0_33 = arith.constant 0 : index
    %c2 = arith.constant 2 : index
    %c0_34 = arith.constant 0 : index
    %132 = vector.load %arg20[%c0_33, %c2, %c0_34] : memref<2x8x32xf32, #tpu.memory_space<vmem>>, vector<2x1x32xf32>
    %133 = vector.shape_cast %132 : vector<2x1x32xf32> to vector<2x32xf32>
    %134 = vector.shape_cast %131 : vector<2x32xf32> to vector<2x1x32xf32>
    tpu.vector_store %arg20[%c0_33, %c2, %c0_34], %134 {strides = array<i32>} : memref<2x8x32xf32, #tpu.memory_space<vmem>>, vector<2x1x32xf32>,
    %135 = vector.extract_strided_slice %0 {offsets = [0, 3], sizes = [2, 1], strides = [1, 1]} : vector<2x8xf32> to vector<2x1xf32>
    %136 = vector.extract_strided_slice %12 {offsets = [0, 3, 0], sizes = [2, 1, 128], strides = [1, 1, 1]} : vector<2x8x128xf32> to vector<2x1x128xf32>
    %137 = vector.shape_cast %136 : vector<2x1x128xf32> to vector<2x128xf32>
    %138 = arith.truncf %122 : vector<2x32xf32> to vector<2x32xbf16>
    %cst_35 = arith.constant dense<0.000000e+00> : vector<2x128xf32>
    %139 = tpu.matmul %138, %2, %cst_35 {dimension_numbers = #tpu.dot_dimension_numbers<[1], [0], [0], [1], [0, 0, 1, 1], [], []>} : vector<2x32xbf16>, vector<32x128xbf16>, vector<2x128xf32> -> vector<2x128xf32>
    %140 = arith.addf %137, %139 : vector<2x128xf32>
    %141 = arith.negf %140 : vector<2x128xf32>
    %142 = math.exp %141 : vector<2x128xf32>
    %cst_36 = arith.constant 1.000000e+00 : f32
    %143 = vector.broadcast %cst_36 : f32 to vector<2x128xf32>
    %144 = arith.addf %143, %142 : vector<2x128xf32>
    %145 = arith.divf %143, %144 : vector<2x128xf32>
    %146 = math.tanh %140 : vector<2x128xf32>
    %147 = vector.extract_strided_slice %145 {offsets = [0, 0], sizes = [2, 32], strides = [1, 1]} : vector<2x128xf32> to vector<2x32xf32>
    %148 = vector.extract_strided_slice %145 {offsets = [0, 32], sizes = [2, 32], strides = [1, 1]} : vector<2x128xf32> to vector<2x32xf32>
    %149 = vector.extract_strided_slice %146 {offsets = [0, 64], sizes = [2, 32], strides = [1, 1]} : vector<2x128xf32> to vector<2x32xf32>
    %150 = vector.extract_strided_slice %145 {offsets = [0, 96], sizes = [2, 32], strides = [1, 1]} : vector<2x128xf32> to vector<2x32xf32>
    %151 = arith.mulf %148, %129 : vector<2x32xf32>
    %152 = arith.mulf %147, %149 : vector<2x32xf32>
    %153 = arith.addf %151, %152 : vector<2x32xf32>
    %154 = math.tanh %153 : vector<2x32xf32>
    %155 = arith.mulf %150, %154 : vector<2x32xf32>
    %156 = vector.broadcast %135 : vector<2x1xf32> to vector<2x32xf32>
    %157 = arith.mulf %156, %155 : vector<2x32xf32>
    %cst_37 = arith.constant 1.000000e+00 : f32
    %158 = vector.broadcast %cst_37 : f32 to vector<2x1xf32>
    %159 = arith.subf %158, %135 : vector<2x1xf32>
    %160 = vector.broadcast %159 : vector<2x1xf32> to vector<2x32xf32>
    %161 = arith.mulf %160, %122 : vector<2x32xf32>
    %162 = arith.addf %157, %161 : vector<2x32xf32>
    %163 = vector.broadcast %135 : vector<2x1xf32> to vector<2x32xf32>
    %164 = arith.mulf %163, %153 : vector<2x32xf32>
    %cst_38 = arith.constant 1.000000e+00 : f32
    %165 = vector.broadcast %cst_38 : f32 to vector<2x1xf32>
    %166 = arith.subf %165, %135 : vector<2x1xf32>
    %167 = vector.broadcast %166 : vector<2x1xf32> to vector<2x32xf32>
    %168 = arith.mulf %167, %129 : vector<2x32xf32>
    %169 = arith.addf %164, %168 : vector<2x32xf32>
    %170 = vector.broadcast %135 : vector<2x1xf32> to vector<2x32xf32>
    %171 = arith.mulf %170, %155 : vector<2x32xf32>
    %c0_39 = arith.constant 0 : index
    %c3 = arith.constant 3 : index
    %c0_40 = arith.constant 0 : index
    %172 = vector.load %arg20[%c0_39, %c3, %c0_40] : memref<2x8x32xf32, #tpu.memory_space<vmem>>, vector<2x1x32xf32>
    %173 = vector.shape_cast %172 : vector<2x1x32xf32> to vector<2x32xf32>
    %174 = vector.shape_cast %171 : vector<2x32xf32> to vector<2x1x32xf32>
    tpu.vector_store %arg20[%c0_39, %c3, %c0_40], %174 {strides = array<i32>} : memref<2x8x32xf32, #tpu.memory_space<vmem>>, vector<2x1x32xf32>,
    %175 = vector.extract_strided_slice %0 {offsets = [0, 4], sizes = [2, 1], strides = [1, 1]} : vector<2x8xf32> to vector<2x1xf32>
    %176 = vector.extract_strided_slice %12 {offsets = [0, 4, 0], sizes = [2, 1, 128], strides = [1, 1, 1]} : vector<2x8x128xf32> to vector<2x1x128xf32>
    %177 = vector.shape_cast %176 : vector<2x1x128xf32> to vector<2x128xf32>
    %178 = arith.truncf %162 : vector<2x32xf32> to vector<2x32xbf16>
    %cst_41 = arith.constant dense<0.000000e+00> : vector<2x128xf32>
    %179 = tpu.matmul %178, %2, %cst_41 {dimension_numbers = #tpu.dot_dimension_numbers<[1], [0], [0], [1], [0, 0, 1, 1], [], []>} : vector<2x32xbf16>, vector<32x128xbf16>, vector<2x128xf32> -> vector<2x128xf32>
    %180 = arith.addf %177, %179 : vector<2x128xf32>
    %181 = arith.negf %180 : vector<2x128xf32>
    %182 = math.exp %181 : vector<2x128xf32>
    %cst_42 = arith.constant 1.000000e+00 : f32
    %183 = vector.broadcast %cst_42 : f32 to vector<2x128xf32>
    %184 = arith.addf %183, %182 : vector<2x128xf32>
    %185 = arith.divf %183, %184 : vector<2x128xf32>
    %186 = math.tanh %180 : vector<2x128xf32>
    %187 = vector.extract_strided_slice %185 {offsets = [0, 0], sizes = [2, 32], strides = [1, 1]} : vector<2x128xf32> to vector<2x32xf32>
    %188 = vector.extract_strided_slice %185 {offsets = [0, 32], sizes = [2, 32], strides = [1, 1]} : vector<2x128xf32> to vector<2x32xf32>
    %189 = vector.extract_strided_slice %186 {offsets = [0, 64], sizes = [2, 32], strides = [1, 1]} : vector<2x128xf32> to vector<2x32xf32>
    %190 = vector.extract_strided_slice %185 {offsets = [0, 96], sizes = [2, 32], strides = [1, 1]} : vector<2x128xf32> to vector<2x32xf32>
    %191 = arith.mulf %188, %169 : vector<2x32xf32>
    %192 = arith.mulf %187, %189 : vector<2x32xf32>
    %193 = arith.addf %191, %192 : vector<2x32xf32>
    %194 = math.tanh %193 : vector<2x32xf32>
    %195 = arith.mulf %190, %194 : vector<2x32xf32>
    %196 = vector.broadcast %175 : vector<2x1xf32> to vector<2x32xf32>
    %197 = arith.mulf %196, %195 : vector<2x32xf32>
    %cst_43 = arith.constant 1.000000e+00 : f32
    %198 = vector.broadcast %cst_43 : f32 to vector<2x1xf32>
    %199 = arith.subf %198, %175 : vector<2x1xf32>
    %200 = vector.broadcast %199 : vector<2x1xf32> to vector<2x32xf32>
    %201 = arith.mulf %200, %162 : vector<2x32xf32>
    %202 = arith.addf %197, %201 : vector<2x32xf32>
    %203 = vector.broadcast %175 : vector<2x1xf32> to vector<2x32xf32>
    %204 = arith.mulf %203, %193 : vector<2x32xf32>
    %cst_44 = arith.constant 1.000000e+00 : f32
    %205 = vector.broadcast %cst_44 : f32 to vector<2x1xf32>
    %206 = arith.subf %205, %175 : vector<2x1xf32>
    %207 = vector.broadcast %206 : vector<2x1xf32> to vector<2x32xf32>
    %208 = arith.mulf %207, %169 : vector<2x32xf32>
    %209 = arith.addf %204, %208 : vector<2x32xf32>
    %210 = vector.broadcast %175 : vector<2x1xf32> to vector<2x32xf32>
    %211 = arith.mulf %210, %195 : vector<2x32xf32>
    %c0_45 = arith.constant 0 : index
    %c4 = arith.constant 4 : index
    %c0_46 = arith.constant 0 : index
    %212 = vector.load %arg20[%c0_45, %c4, %c0_46] : memref<2x8x32xf32, #tpu.memory_space<vmem>>, vector<2x1x32xf32>
    %213 = vector.shape_cast %212 : vector<2x1x32xf32> to vector<2x32xf32>
    %214 = vector.shape_cast %211 : vector<2x32xf32> to vector<2x1x32xf32>
    tpu.vector_store %arg20[%c0_45, %c4, %c0_46], %214 {strides = array<i32>} : memref<2x8x32xf32, #tpu.memory_space<vmem>>, vector<2x1x32xf32>,
    %215 = vector.extract_strided_slice %0 {offsets = [0, 5], sizes = [2, 1], strides = [1, 1]} : vector<2x8xf32> to vector<2x1xf32>
    %216 = vector.extract_strided_slice %12 {offsets = [0, 5, 0], sizes = [2, 1, 128], strides = [1, 1, 1]} : vector<2x8x128xf32> to vector<2x1x128xf32>
    %217 = vector.shape_cast %216 : vector<2x1x128xf32> to vector<2x128xf32>
    %218 = arith.truncf %202 : vector<2x32xf32> to vector<2x32xbf16>
    %cst_47 = arith.constant dense<0.000000e+00> : vector<2x128xf32>
    %219 = tpu.matmul %218, %2, %cst_47 {dimension_numbers = #tpu.dot_dimension_numbers<[1], [0], [0], [1], [0, 0, 1, 1], [], []>} : vector<2x32xbf16>, vector<32x128xbf16>, vector<2x128xf32> -> vector<2x128xf32>
    %220 = arith.addf %217, %219 : vector<2x128xf32>
    %221 = arith.negf %220 : vector<2x128xf32>
    %222 = math.exp %221 : vector<2x128xf32>
    %cst_48 = arith.constant 1.000000e+00 : f32
    %223 = vector.broadcast %cst_48 : f32 to vector<2x128xf32>
    %224 = arith.addf %223, %222 : vector<2x128xf32>
    %225 = arith.divf %223, %224 : vector<2x128xf32>
    %226 = math.tanh %220 : vector<2x128xf32>
    %227 = vector.extract_strided_slice %225 {offsets = [0, 0], sizes = [2, 32], strides = [1, 1]} : vector<2x128xf32> to vector<2x32xf32>
    %228 = vector.extract_strided_slice %225 {offsets = [0, 32], sizes = [2, 32], strides = [1, 1]} : vector<2x128xf32> to vector<2x32xf32>
    %229 = vector.extract_strided_slice %226 {offsets = [0, 64], sizes = [2, 32], strides = [1, 1]} : vector<2x128xf32> to vector<2x32xf32>
    %230 = vector.extract_strided_slice %225 {offsets = [0, 96], sizes = [2, 32], strides = [1, 1]} : vector<2x128xf32> to vector<2x32xf32>
    %231 = arith.mulf %228, %209 : vector<2x32xf32>
    %232 = arith.mulf %227, %229 : vector<2x32xf32>
    %233 = arith.addf %231, %232 : vector<2x32xf32>
    %234 = math.tanh %233 : vector<2x32xf32>
    %235 = arith.mulf %230, %234 : vector<2x32xf32>
    %236 = vector.broadcast %215 : vector<2x1xf32> to vector<2x32xf32>
    %237 = arith.mulf %236, %235 : vector<2x32xf32>
    %cst_49 = arith.constant 1.000000e+00 : f32
    %238 = vector.broadcast %cst_49 : f32 to vector<2x1xf32>
    %239 = arith.subf %238, %215 : vector<2x1xf32>
    %240 = vector.broadcast %239 : vector<2x1xf32> to vector<2x32xf32>
    %241 = arith.mulf %240, %202 : vector<2x32xf32>
    %242 = arith.addf %237, %241 : vector<2x32xf32>
    %243 = vector.broadcast %215 : vector<2x1xf32> to vector<2x32xf32>
    %244 = arith.mulf %243, %233 : vector<2x32xf32>
    %cst_50 = arith.constant 1.000000e+00 : f32
    %245 = vector.broadcast %cst_50 : f32 to vector<2x1xf32>
    %246 = arith.subf %245, %215 : vector<2x1xf32>
    %247 = vector.broadcast %246 : vector<2x1xf32> to vector<2x32xf32>
    %248 = arith.mulf %247, %209 : vector<2x32xf32>
    %249 = arith.addf %244, %248 : vector<2x32xf32>
    %250 = vector.broadcast %215 : vector<2x1xf32> to vector<2x32xf32>
    %251 = arith.mulf %250, %235 : vector<2x32xf32>
    %c0_51 = arith.constant 0 : index
    %c5 = arith.constant 5 : index
    %c0_52 = arith.constant 0 : index
    %252 = vector.load %arg20[%c0_51, %c5, %c0_52] : memref<2x8x32xf32, #tpu.memory_space<vmem>>, vector<2x1x32xf32>
    %253 = vector.shape_cast %252 : vector<2x1x32xf32> to vector<2x32xf32>
    %254 = vector.shape_cast %251 : vector<2x32xf32> to vector<2x1x32xf32>
    tpu.vector_store %arg20[%c0_51, %c5, %c0_52], %254 {strides = array<i32>} : memref<2x8x32xf32, #tpu.memory_space<vmem>>, vector<2x1x32xf32>,
    %255 = vector.extract_strided_slice %0 {offsets = [0, 6], sizes = [2, 1], strides = [1, 1]} : vector<2x8xf32> to vector<2x1xf32>
    %256 = vector.extract_strided_slice %12 {offsets = [0, 6, 0], sizes = [2, 1, 128], strides = [1, 1, 1]} : vector<2x8x128xf32> to vector<2x1x128xf32>
    %257 = vector.shape_cast %256 : vector<2x1x128xf32> to vector<2x128xf32>
    %258 = arith.truncf %242 : vector<2x32xf32> to vector<2x32xbf16>
    %cst_53 = arith.constant dense<0.000000e+00> : vector<2x128xf32>
    %259 = tpu.matmul %258, %2, %cst_53 {dimension_numbers = #tpu.dot_dimension_numbers<[1], [0], [0], [1], [0, 0, 1, 1], [], []>} : vector<2x32xbf16>, vector<32x128xbf16>, vector<2x128xf32> -> vector<2x128xf32>
    %260 = arith.addf %257, %259 : vector<2x128xf32>
    %261 = arith.negf %260 : vector<2x128xf32>
    %262 = math.exp %261 : vector<2x128xf32>
    %cst_54 = arith.constant 1.000000e+00 : f32
    %263 = vector.broadcast %cst_54 : f32 to vector<2x128xf32>
    %264 = arith.addf %263, %262 : vector<2x128xf32>
    %265 = arith.divf %263, %264 : vector<2x128xf32>
    %266 = math.tanh %260 : vector<2x128xf32>
    %267 = vector.extract_strided_slice %265 {offsets = [0, 0], sizes = [2, 32], strides = [1, 1]} : vector<2x128xf32> to vector<2x32xf32>
    %268 = vector.extract_strided_slice %265 {offsets = [0, 32], sizes = [2, 32], strides = [1, 1]} : vector<2x128xf32> to vector<2x32xf32>
    %269 = vector.extract_strided_slice %266 {offsets = [0, 64], sizes = [2, 32], strides = [1, 1]} : vector<2x128xf32> to vector<2x32xf32>
    %270 = vector.extract_strided_slice %265 {offsets = [0, 96], sizes = [2, 32], strides = [1, 1]} : vector<2x128xf32> to vector<2x32xf32>
    %271 = arith.mulf %268, %249 : vector<2x32xf32>
    %272 = arith.mulf %267, %269 : vector<2x32xf32>
    %273 = arith.addf %271, %272 : vector<2x32xf32>
    %274 = math.tanh %273 : vector<2x32xf32>
    %275 = arith.mulf %270, %274 : vector<2x32xf32>
    %276 = vector.broadcast %255 : vector<2x1xf32> to vector<2x32xf32>
    %277 = arith.mulf %276, %275 : vector<2x32xf32>
    %cst_55 = arith.constant 1.000000e+00 : f32
    %278 = vector.broadcast %cst_55 : f32 to vector<2x1xf32>
    %279 = arith.subf %278, %255 : vector<2x1xf32>
    %280 = vector.broadcast %279 : vector<2x1xf32> to vector<2x32xf32>
    %281 = arith.mulf %280, %242 : vector<2x32xf32>
    %282 = arith.addf %277, %281 : vector<2x32xf32>
    %283 = vector.broadcast %255 : vector<2x1xf32> to vector<2x32xf32>
    %284 = arith.mulf %283, %273 : vector<2x32xf32>
    %cst_56 = arith.constant 1.000000e+00 : f32
    %285 = vector.broadcast %cst_56 : f32 to vector<2x1xf32>
    %286 = arith.subf %285, %255 : vector<2x1xf32>
    %287 = vector.broadcast %286 : vector<2x1xf32> to vector<2x32xf32>
    %288 = arith.mulf %287, %249 : vector<2x32xf32>
    %289 = arith.addf %284, %288 : vector<2x32xf32>
    %290 = vector.broadcast %255 : vector<2x1xf32> to vector<2x32xf32>
    %291 = arith.mulf %290, %275 : vector<2x32xf32>
    %c0_57 = arith.constant 0 : index
    %c6 = arith.constant 6 : index
    %c0_58 = arith.constant 0 : index
    %292 = vector.load %arg20[%c0_57, %c6, %c0_58] : memref<2x8x32xf32, #tpu.memory_space<vmem>>, vector<2x1x32xf32>
    %293 = vector.shape_cast %292 : vector<2x1x32xf32> to vector<2x32xf32>
    %294 = vector.shape_cast %291 : vector<2x32xf32> to vector<2x1x32xf32>
    tpu.vector_store %arg20[%c0_57, %c6, %c0_58], %294 {strides = array<i32>} : memref<2x8x32xf32, #tpu.memory_space<vmem>>, vector<2x1x32xf32>,
    %295 = vector.extract_strided_slice %0 {offsets = [0, 7], sizes = [2, 1], strides = [1, 1]} : vector<2x8xf32> to vector<2x1xf32>
    %296 = vector.extract_strided_slice %12 {offsets = [0, 7, 0], sizes = [2, 1, 128], strides = [1, 1, 1]} : vector<2x8x128xf32> to vector<2x1x128xf32>
    %297 = vector.shape_cast %296 : vector<2x1x128xf32> to vector<2x128xf32>
    %298 = arith.truncf %282 : vector<2x32xf32> to vector<2x32xbf16>
    %cst_59 = arith.constant dense<0.000000e+00> : vector<2x128xf32>
    %299 = tpu.matmul %298, %2, %cst_59 {dimension_numbers = #tpu.dot_dimension_numbers<[1], [0], [0], [1], [0, 0, 1, 1], [], []>} : vector<2x32xbf16>, vector<32x128xbf16>, vector<2x128xf32> -> vector<2x128xf32>
    %300 = arith.addf %297, %299 : vector<2x128xf32>
    %301 = arith.negf %300 : vector<2x128xf32>
    %302 = math.exp %301 : vector<2x128xf32>
    %cst_60 = arith.constant 1.000000e+00 : f32
    %303 = vector.broadcast %cst_60 : f32 to vector<2x128xf32>
    %304 = arith.addf %303, %302 : vector<2x128xf32>
    %305 = arith.divf %303, %304 : vector<2x128xf32>
    %306 = math.tanh %300 : vector<2x128xf32>
    %307 = vector.extract_strided_slice %305 {offsets = [0, 0], sizes = [2, 32], strides = [1, 1]} : vector<2x128xf32> to vector<2x32xf32>
    %308 = vector.extract_strided_slice %305 {offsets = [0, 32], sizes = [2, 32], strides = [1, 1]} : vector<2x128xf32> to vector<2x32xf32>
    %309 = vector.extract_strided_slice %306 {offsets = [0, 64], sizes = [2, 32], strides = [1, 1]} : vector<2x128xf32> to vector<2x32xf32>
    %310 = vector.extract_strided_slice %305 {offsets = [0, 96], sizes = [2, 32], strides = [1, 1]} : vector<2x128xf32> to vector<2x32xf32>
    %311 = arith.mulf %308, %289 : vector<2x32xf32>
    %312 = arith.mulf %307, %309 : vector<2x32xf32>
    %313 = arith.addf %311, %312 : vector<2x32xf32>
    %314 = math.tanh %313 : vector<2x32xf32>
    %315 = arith.mulf %310, %314 : vector<2x32xf32>
    %316 = vector.broadcast %295 : vector<2x1xf32> to vector<2x32xf32>
    %317 = arith.mulf %316, %315 : vector<2x32xf32>
    %cst_61 = arith.constant 1.000000e+00 : f32
    %318 = vector.broadcast %cst_61 : f32 to vector<2x1xf32>
    %319 = arith.subf %318, %295 : vector<2x1xf32>
    %320 = vector.broadcast %319 : vector<2x1xf32> to vector<2x32xf32>
    %321 = arith.mulf %320, %282 : vector<2x32xf32>
    %322 = arith.addf %317, %321 : vector<2x32xf32>
    %323 = vector.broadcast %295 : vector<2x1xf32> to vector<2x32xf32>
    %324 = arith.mulf %323, %313 : vector<2x32xf32>
    %cst_62 = arith.constant 1.000000e+00 : f32
    %325 = vector.broadcast %cst_62 : f32 to vector<2x1xf32>
    %326 = arith.subf %325, %295 : vector<2x1xf32>
    %327 = vector.broadcast %326 : vector<2x1xf32> to vector<2x32xf32>
    %328 = arith.mulf %327, %289 : vector<2x32xf32>
    %329 = arith.addf %324, %328 : vector<2x32xf32>
    %330 = vector.broadcast %295 : vector<2x1xf32> to vector<2x32xf32>
    %331 = arith.mulf %330, %315 : vector<2x32xf32>
    %c0_63 = arith.constant 0 : index
    %c7 = arith.constant 7 : index
    %c0_64 = arith.constant 0 : index
    %332 = vector.load %arg20[%c0_63, %c7, %c0_64] : memref<2x8x32xf32, #tpu.memory_space<vmem>>, vector<2x1x32xf32>
    %333 = vector.shape_cast %332 : vector<2x1x32xf32> to vector<2x32xf32>
    %334 = vector.shape_cast %331 : vector<2x32xf32> to vector<2x1x32xf32>
    tpu.vector_store %arg20[%c0_63, %c7, %c0_64], %334 {strides = array<i32>} : memref<2x8x32xf32, #tpu.memory_space<vmem>>, vector<2x1x32xf32>,
    %335 = arith.addf %322, %329 : vector<2x32xf32>
    %336 = arith.truncf %335 : vector<2x32xf32> to vector<2x32xbf16>
    %c0_65 = arith.constant 0 : index
    %c0_66 = arith.constant 0 : index
    %c0_67 = arith.constant 0 : index
    %337 = vector.load %arg2[%c0_65, %c0_66, %c0_67] : memref<2x8x32xbf16, #tpu.memory_space<vmem>>, vector<2x8x32xbf16>
    %338 = vector.shape_cast %337 : vector<2x8x32xbf16> to vector<16x32xbf16>
    %c0_68 = arith.constant 0 : index
    %c0_69 = arith.constant 0 : index
    %339 = vector.load %arg8[%c0_68, %c0_69] : memref<32x128xbf16, #tpu.memory_space<vmem>>, vector<32x128xbf16>
    %cst_70 = arith.constant dense<0.000000e+00> : vector<16x128xf32>
    %340 = tpu.matmul %338, %339, %cst_70 {dimension_numbers = #tpu.dot_dimension_numbers<[1], [0], [0], [1], [0, 0, 1, 1], [], []>} : vector<16x32xbf16>, vector<32x128xbf16>, vector<16x128xf32> -> vector<16x128xf32>
    %341 = vector.shape_cast %340 : vector<16x128xf32> to vector<2x8x128xf32>
    %c0_71 = arith.constant 0 : index
    %c0_72 = arith.constant 0 : index
    %342 = vector.load %arg9[%c0_71, %c0_72] : memref<32x128xbf16, #tpu.memory_space<vmem>>, vector<32x128xbf16>
    %cst_73 = arith.constant dense<0.000000e+00> : vector<2x128xf32>
    %343 = tpu.matmul %336, %342, %cst_73 {dimension_numbers = #tpu.dot_dimension_numbers<[1], [0], [0], [1], [0, 0, 1, 1], [], []>} : vector<2x32xbf16>, vector<32x128xbf16>, vector<2x128xf32> -> vector<2x128xf32>
    %344 = vector.shape_cast %343 : vector<2x128xf32> to vector<2x1x128xf32>
    %345 = vector.broadcast %344 : vector<2x1x128xf32> to vector<2x8x128xf32>
    %346 = arith.addf %341, %345 : vector<2x8x128xf32>
    %c0_74 = arith.constant 0 : index
    %c0_75 = arith.constant 0 : index
    %347 = vector.load %arg11[%c0_74, %c0_75] : memref<1x128xf32, #tpu.memory_space<vmem>>, vector<1x128xf32>
    %348 = vector.shape_cast %347 : vector<1x128xf32> to vector<1x1x128xf32>
    %349 = vector.broadcast %348 : vector<1x1x128xf32> to vector<2x8x128xf32>
    %350 = arith.addf %346, %349 : vector<2x8x128xf32>
    %351 = vector.extract_strided_slice %1 {offsets = [0, 0], sizes = [2, 1], strides = [1, 1]} : vector<2x8xf32> to vector<2x1xf32>
    %352 = vector.extract_strided_slice %350 {offsets = [0, 0, 0], sizes = [2, 1, 128], strides = [1, 1, 1]} : vector<2x8x128xf32> to vector<2x1x128xf32>
    %353 = vector.shape_cast %352 : vector<2x1x128xf32> to vector<2x128xf32>
    %354 = arith.truncf %322 : vector<2x32xf32> to vector<2x32xbf16>
    %cst_76 = arith.constant dense<0.000000e+00> : vector<2x128xf32>
    %355 = tpu.matmul %354, %3, %cst_76 {dimension_numbers = #tpu.dot_dimension_numbers<[1], [0], [0], [1], [0, 0, 1, 1], [], []>} : vector<2x32xbf16>, vector<32x128xbf16>, vector<2x128xf32> -> vector<2x128xf32>
    %356 = arith.addf %353, %355 : vector<2x128xf32>
    %357 = arith.negf %356 : vector<2x128xf32>
    %358 = math.exp %357 : vector<2x128xf32>
    %cst_77 = arith.constant 1.000000e+00 : f32
    %359 = vector.broadcast %cst_77 : f32 to vector<2x128xf32>
    %360 = arith.addf %359, %358 : vector<2x128xf32>
    %361 = arith.divf %359, %360 : vector<2x128xf32>
    %362 = math.tanh %356 : vector<2x128xf32>
    %363 = vector.extract_strided_slice %361 {offsets = [0, 0], sizes = [2, 32], strides = [1, 1]} : vector<2x128xf32> to vector<2x32xf32>
    %364 = vector.extract_strided_slice %361 {offsets = [0, 32], sizes = [2, 32], strides = [1, 1]} : vector<2x128xf32> to vector<2x32xf32>
    %365 = vector.extract_strided_slice %362 {offsets = [0, 64], sizes = [2, 32], strides = [1, 1]} : vector<2x128xf32> to vector<2x32xf32>
    %366 = vector.extract_strided_slice %361 {offsets = [0, 96], sizes = [2, 32], strides = [1, 1]} : vector<2x128xf32> to vector<2x32xf32>
    %367 = arith.mulf %364, %329 : vector<2x32xf32>
    %368 = arith.mulf %363, %365 : vector<2x32xf32>
    %369 = arith.addf %367, %368 : vector<2x32xf32>
    %370 = math.tanh %369 : vector<2x32xf32>
    %371 = arith.mulf %366, %370 : vector<2x32xf32>
    %372 = vector.broadcast %351 : vector<2x1xf32> to vector<2x32xf32>
    %373 = arith.mulf %372, %371 : vector<2x32xf32>
    %cst_78 = arith.constant 1.000000e+00 : f32
    %374 = vector.broadcast %cst_78 : f32 to vector<2x1xf32>
    %375 = arith.subf %374, %351 : vector<2x1xf32>
    %376 = vector.broadcast %375 : vector<2x1xf32> to vector<2x32xf32>
    %377 = arith.mulf %376, %322 : vector<2x32xf32>
    %378 = arith.addf %373, %377 : vector<2x32xf32>
    %379 = vector.broadcast %351 : vector<2x1xf32> to vector<2x32xf32>
    %380 = arith.mulf %379, %369 : vector<2x32xf32>
    %cst_79 = arith.constant 1.000000e+00 : f32
    %381 = vector.broadcast %cst_79 : f32 to vector<2x1xf32>
    %382 = arith.subf %381, %351 : vector<2x1xf32>
    %383 = vector.broadcast %382 : vector<2x1xf32> to vector<2x32xf32>
    %384 = arith.mulf %383, %329 : vector<2x32xf32>
    %385 = arith.addf %380, %384 : vector<2x32xf32>
    %386 = vector.broadcast %351 : vector<2x1xf32> to vector<2x32xf32>
    %387 = arith.mulf %386, %371 : vector<2x32xf32>
    %c0_80 = arith.constant 0 : index
    %c0_81 = arith.constant 0 : index
    %c0_82 = arith.constant 0 : index
    %388 = vector.load %arg21[%c0_80, %c0_81, %c0_82] : memref<2x8x32xf32, #tpu.memory_space<vmem>>, vector<2x1x32xf32>
    %389 = vector.shape_cast %388 : vector<2x1x32xf32> to vector<2x32xf32>
    %390 = vector.shape_cast %387 : vector<2x32xf32> to vector<2x1x32xf32>
    tpu.vector_store %arg21[%c0_80, %c0_81, %c0_82], %390 {strides = array<i32>} : memref<2x8x32xf32, #tpu.memory_space<vmem>>, vector<2x1x32xf32>,
    %391 = vector.extract_strided_slice %1 {offsets = [0, 1], sizes = [2, 1], strides = [1, 1]} : vector<2x8xf32> to vector<2x1xf32>
    %392 = vector.extract_strided_slice %350 {offsets = [0, 1, 0], sizes = [2, 1, 128], strides = [1, 1, 1]} : vector<2x8x128xf32> to vector<2x1x128xf32>
    %393 = vector.shape_cast %392 : vector<2x1x128xf32> to vector<2x128xf32>
    %394 = arith.truncf %378 : vector<2x32xf32> to vector<2x32xbf16>
    %cst_83 = arith.constant dense<0.000000e+00> : vector<2x128xf32>
    %395 = tpu.matmul %394, %3, %cst_83 {dimension_numbers = #tpu.dot_dimension_numbers<[1], [0], [0], [1], [0, 0, 1, 1], [], []>} : vector<2x32xbf16>, vector<32x128xbf16>, vector<2x128xf32> -> vector<2x128xf32>
    %396 = arith.addf %393, %395 : vector<2x128xf32>
    %397 = arith.negf %396 : vector<2x128xf32>
    %398 = math.exp %397 : vector<2x128xf32>
    %cst_84 = arith.constant 1.000000e+00 : f32
    %399 = vector.broadcast %cst_84 : f32 to vector<2x128xf32>
    %400 = arith.addf %399, %398 : vector<2x128xf32>
    %401 = arith.divf %399, %400 : vector<2x128xf32>
    %402 = math.tanh %396 : vector<2x128xf32>
    %403 = vector.extract_strided_slice %401 {offsets = [0, 0], sizes = [2, 32], strides = [1, 1]} : vector<2x128xf32> to vector<2x32xf32>
    %404 = vector.extract_strided_slice %401 {offsets = [0, 32], sizes = [2, 32], strides = [1, 1]} : vector<2x128xf32> to vector<2x32xf32>
    %405 = vector.extract_strided_slice %402 {offsets = [0, 64], sizes = [2, 32], strides = [1, 1]} : vector<2x128xf32> to vector<2x32xf32>
    %406 = vector.extract_strided_slice %401 {offsets = [0, 96], sizes = [2, 32], strides = [1, 1]} : vector<2x128xf32> to vector<2x32xf32>
    %407 = arith.mulf %404, %385 : vector<2x32xf32>
    %408 = arith.mulf %403, %405 : vector<2x32xf32>
    %409 = arith.addf %407, %408 : vector<2x32xf32>
    %410 = math.tanh %409 : vector<2x32xf32>
    %411 = arith.mulf %406, %410 : vector<2x32xf32>
    %412 = vector.broadcast %391 : vector<2x1xf32> to vector<2x32xf32>
    %413 = arith.mulf %412, %411 : vector<2x32xf32>
    %cst_85 = arith.constant 1.000000e+00 : f32
    %414 = vector.broadcast %cst_85 : f32 to vector<2x1xf32>
    %415 = arith.subf %414, %391 : vector<2x1xf32>
    %416 = vector.broadcast %415 : vector<2x1xf32> to vector<2x32xf32>
    %417 = arith.mulf %416, %378 : vector<2x32xf32>
    %418 = arith.addf %413, %417 : vector<2x32xf32>
    %419 = vector.broadcast %391 : vector<2x1xf32> to vector<2x32xf32>
    %420 = arith.mulf %419, %409 : vector<2x32xf32>
    %cst_86 = arith.constant 1.000000e+00 : f32
    %421 = vector.broadcast %cst_86 : f32 to vector<2x1xf32>
    %422 = arith.subf %421, %391 : vector<2x1xf32>
    %423 = vector.broadcast %422 : vector<2x1xf32> to vector<2x32xf32>
    %424 = arith.mulf %423, %385 : vector<2x32xf32>
    %425 = arith.addf %420, %424 : vector<2x32xf32>
    %426 = vector.broadcast %391 : vector<2x1xf32> to vector<2x32xf32>
    %427 = arith.mulf %426, %411 : vector<2x32xf32>
    %c0_87 = arith.constant 0 : index
    %c1_88 = arith.constant 1 : index
    %c0_89 = arith.constant 0 : index
    %428 = vector.load %arg21[%c0_87, %c1_88, %c0_89] : memref<2x8x32xf32, #tpu.memory_space<vmem>>, vector<2x1x32xf32>
    %429 = vector.shape_cast %428 : vector<2x1x32xf32> to vector<2x32xf32>
    %430 = vector.shape_cast %427 : vector<2x32xf32> to vector<2x1x32xf32>
    tpu.vector_store %arg21[%c0_87, %c1_88, %c0_89], %430 {strides = array<i32>} : memref<2x8x32xf32, #tpu.memory_space<vmem>>, vector<2x1x32xf32>,
    %431 = vector.extract_strided_slice %1 {offsets = [0, 2], sizes = [2, 1], strides = [1, 1]} : vector<2x8xf32> to vector<2x1xf32>
    %432 = vector.extract_strided_slice %350 {offsets = [0, 2, 0], sizes = [2, 1, 128], strides = [1, 1, 1]} : vector<2x8x128xf32> to vector<2x1x128xf32>
    %433 = vector.shape_cast %432 : vector<2x1x128xf32> to vector<2x128xf32>
    %434 = arith.truncf %418 : vector<2x32xf32> to vector<2x32xbf16>
    %cst_90 = arith.constant dense<0.000000e+00> : vector<2x128xf32>
    %435 = tpu.matmul %434, %3, %cst_90 {dimension_numbers = #tpu.dot_dimension_numbers<[1], [0], [0], [1], [0, 0, 1, 1], [], []>} : vector<2x32xbf16>, vector<32x128xbf16>, vector<2x128xf32> -> vector<2x128xf32>
    %436 = arith.addf %433, %435 : vector<2x128xf32>
    %437 = arith.negf %436 : vector<2x128xf32>
    %438 = math.exp %437 : vector<2x128xf32>
    %cst_91 = arith.constant 1.000000e+00 : f32
    %439 = vector.broadcast %cst_91 : f32 to vector<2x128xf32>
    %440 = arith.addf %439, %438 : vector<2x128xf32>
    %441 = arith.divf %439, %440 : vector<2x128xf32>
    %442 = math.tanh %436 : vector<2x128xf32>
    %443 = vector.extract_strided_slice %441 {offsets = [0, 0], sizes = [2, 32], strides = [1, 1]} : vector<2x128xf32> to vector<2x32xf32>
    %444 = vector.extract_strided_slice %441 {offsets = [0, 32], sizes = [2, 32], strides = [1, 1]} : vector<2x128xf32> to vector<2x32xf32>
    %445 = vector.extract_strided_slice %442 {offsets = [0, 64], sizes = [2, 32], strides = [1, 1]} : vector<2x128xf32> to vector<2x32xf32>
    %446 = vector.extract_strided_slice %441 {offsets = [0, 96], sizes = [2, 32], strides = [1, 1]} : vector<2x128xf32> to vector<2x32xf32>
    %447 = arith.mulf %444, %425 : vector<2x32xf32>
    %448 = arith.mulf %443, %445 : vector<2x32xf32>
    %449 = arith.addf %447, %448 : vector<2x32xf32>
    %450 = math.tanh %449 : vector<2x32xf32>
    %451 = arith.mulf %446, %450 : vector<2x32xf32>
    %452 = vector.broadcast %431 : vector<2x1xf32> to vector<2x32xf32>
    %453 = arith.mulf %452, %451 : vector<2x32xf32>
    %cst_92 = arith.constant 1.000000e+00 : f32
    %454 = vector.broadcast %cst_92 : f32 to vector<2x1xf32>
    %455 = arith.subf %454, %431 : vector<2x1xf32>
    %456 = vector.broadcast %455 : vector<2x1xf32> to vector<2x32xf32>
    %457 = arith.mulf %456, %418 : vector<2x32xf32>
    %458 = arith.addf %453, %457 : vector<2x32xf32>
    %459 = vector.broadcast %431 : vector<2x1xf32> to vector<2x32xf32>
    %460 = arith.mulf %459, %449 : vector<2x32xf32>
    %cst_93 = arith.constant 1.000000e+00 : f32
    %461 = vector.broadcast %cst_93 : f32 to vector<2x1xf32>
    %462 = arith.subf %461, %431 : vector<2x1xf32>
    %463 = vector.broadcast %462 : vector<2x1xf32> to vector<2x32xf32>
    %464 = arith.mulf %463, %425 : vector<2x32xf32>
    %465 = arith.addf %460, %464 : vector<2x32xf32>
    %466 = vector.broadcast %431 : vector<2x1xf32> to vector<2x32xf32>
    %467 = arith.mulf %466, %451 : vector<2x32xf32>
    %c0_94 = arith.constant 0 : index
    %c2_95 = arith.constant 2 : index
    %c0_96 = arith.constant 0 : index
    %468 = vector.load %arg21[%c0_94, %c2_95, %c0_96] : memref<2x8x32xf32, #tpu.memory_space<vmem>>, vector<2x1x32xf32>
    %469 = vector.shape_cast %468 : vector<2x1x32xf32> to vector<2x32xf32>
    %470 = vector.shape_cast %467 : vector<2x32xf32> to vector<2x1x32xf32>
    tpu.vector_store %arg21[%c0_94, %c2_95, %c0_96], %470 {strides = array<i32>} : memref<2x8x32xf32, #tpu.memory_space<vmem>>, vector<2x1x32xf32>,
    %471 = vector.extract_strided_slice %1 {offsets = [0, 3], sizes = [2, 1], strides = [1, 1]} : vector<2x8xf32> to vector<2x1xf32>
    %472 = vector.extract_strided_slice %350 {offsets = [0, 3, 0], sizes = [2, 1, 128], strides = [1, 1, 1]} : vector<2x8x128xf32> to vector<2x1x128xf32>
    %473 = vector.shape_cast %472 : vector<2x1x128xf32> to vector<2x128xf32>
    %474 = arith.truncf %458 : vector<2x32xf32> to vector<2x32xbf16>
    %cst_97 = arith.constant dense<0.000000e+00> : vector<2x128xf32>
    %475 = tpu.matmul %474, %3, %cst_97 {dimension_numbers = #tpu.dot_dimension_numbers<[1], [0], [0], [1], [0, 0, 1, 1], [], []>} : vector<2x32xbf16>, vector<32x128xbf16>, vector<2x128xf32> -> vector<2x128xf32>
    %476 = arith.addf %473, %475 : vector<2x128xf32>
    %477 = arith.negf %476 : vector<2x128xf32>
    %478 = math.exp %477 : vector<2x128xf32>
    %cst_98 = arith.constant 1.000000e+00 : f32
    %479 = vector.broadcast %cst_98 : f32 to vector<2x128xf32>
    %480 = arith.addf %479, %478 : vector<2x128xf32>
    %481 = arith.divf %479, %480 : vector<2x128xf32>
    %482 = math.tanh %476 : vector<2x128xf32>
    %483 = vector.extract_strided_slice %481 {offsets = [0, 0], sizes = [2, 32], strides = [1, 1]} : vector<2x128xf32> to vector<2x32xf32>
    %484 = vector.extract_strided_slice %481 {offsets = [0, 32], sizes = [2, 32], strides = [1, 1]} : vector<2x128xf32> to vector<2x32xf32>
    %485 = vector.extract_strided_slice %482 {offsets = [0, 64], sizes = [2, 32], strides = [1, 1]} : vector<2x128xf32> to vector<2x32xf32>
    %486 = vector.extract_strided_slice %481 {offsets = [0, 96], sizes = [2, 32], strides = [1, 1]} : vector<2x128xf32> to vector<2x32xf32>
    %487 = arith.mulf %484, %465 : vector<2x32xf32>
    %488 = arith.mulf %483, %485 : vector<2x32xf32>
    %489 = arith.addf %487, %488 : vector<2x32xf32>
    %490 = math.tanh %489 : vector<2x32xf32>
    %491 = arith.mulf %486, %490 : vector<2x32xf32>
    %492 = vector.broadcast %471 : vector<2x1xf32> to vector<2x32xf32>
    %493 = arith.mulf %492, %491 : vector<2x32xf32>
    %cst_99 = arith.constant 1.000000e+00 : f32
    %494 = vector.broadcast %cst_99 : f32 to vector<2x1xf32>
    %495 = arith.subf %494, %471 : vector<2x1xf32>
    %496 = vector.broadcast %495 : vector<2x1xf32> to vector<2x32xf32>
    %497 = arith.mulf %496, %458 : vector<2x32xf32>
    %498 = arith.addf %493, %497 : vector<2x32xf32>
    %499 = vector.broadcast %471 : vector<2x1xf32> to vector<2x32xf32>
    %500 = arith.mulf %499, %489 : vector<2x32xf32>
    %cst_100 = arith.constant 1.000000e+00 : f32
    %501 = vector.broadcast %cst_100 : f32 to vector<2x1xf32>
    %502 = arith.subf %501, %471 : vector<2x1xf32>
    %503 = vector.broadcast %502 : vector<2x1xf32> to vector<2x32xf32>
    %504 = arith.mulf %503, %465 : vector<2x32xf32>
    %505 = arith.addf %500, %504 : vector<2x32xf32>
    %506 = vector.broadcast %471 : vector<2x1xf32> to vector<2x32xf32>
    %507 = arith.mulf %506, %491 : vector<2x32xf32>
    %c0_101 = arith.constant 0 : index
    %c3_102 = arith.constant 3 : index
    %c0_103 = arith.constant 0 : index
    %508 = vector.load %arg21[%c0_101, %c3_102, %c0_103] : memref<2x8x32xf32, #tpu.memory_space<vmem>>, vector<2x1x32xf32>
    %509 = vector.shape_cast %508 : vector<2x1x32xf32> to vector<2x32xf32>
    %510 = vector.shape_cast %507 : vector<2x32xf32> to vector<2x1x32xf32>
    tpu.vector_store %arg21[%c0_101, %c3_102, %c0_103], %510 {strides = array<i32>} : memref<2x8x32xf32, #tpu.memory_space<vmem>>, vector<2x1x32xf32>,
    %511 = vector.extract_strided_slice %1 {offsets = [0, 4], sizes = [2, 1], strides = [1, 1]} : vector<2x8xf32> to vector<2x1xf32>
    %512 = vector.extract_strided_slice %350 {offsets = [0, 4, 0], sizes = [2, 1, 128], strides = [1, 1, 1]} : vector<2x8x128xf32> to vector<2x1x128xf32>
    %513 = vector.shape_cast %512 : vector<2x1x128xf32> to vector<2x128xf32>
    %514 = arith.truncf %498 : vector<2x32xf32> to vector<2x32xbf16>
    %cst_104 = arith.constant dense<0.000000e+00> : vector<2x128xf32>
    %515 = tpu.matmul %514, %3, %cst_104 {dimension_numbers = #tpu.dot_dimension_numbers<[1], [0], [0], [1], [0, 0, 1, 1], [], []>} : vector<2x32xbf16>, vector<32x128xbf16>, vector<2x128xf32> -> vector<2x128xf32>
    %516 = arith.addf %513, %515 : vector<2x128xf32>
    %517 = arith.negf %516 : vector<2x128xf32>
    %518 = math.exp %517 : vector<2x128xf32>
    %cst_105 = arith.constant 1.000000e+00 : f32
    %519 = vector.broadcast %cst_105 : f32 to vector<2x128xf32>
    %520 = arith.addf %519, %518 : vector<2x128xf32>
    %521 = arith.divf %519, %520 : vector<2x128xf32>
    %522 = math.tanh %516 : vector<2x128xf32>
    %523 = vector.extract_strided_slice %521 {offsets = [0, 0], sizes = [2, 32], strides = [1, 1]} : vector<2x128xf32> to vector<2x32xf32>
    %524 = vector.extract_strided_slice %521 {offsets = [0, 32], sizes = [2, 32], strides = [1, 1]} : vector<2x128xf32> to vector<2x32xf32>
    %525 = vector.extract_strided_slice %522 {offsets = [0, 64], sizes = [2, 32], strides = [1, 1]} : vector<2x128xf32> to vector<2x32xf32>
    %526 = vector.extract_strided_slice %521 {offsets = [0, 96], sizes = [2, 32], strides = [1, 1]} : vector<2x128xf32> to vector<2x32xf32>
    %527 = arith.mulf %524, %505 : vector<2x32xf32>
    %528 = arith.mulf %523, %525 : vector<2x32xf32>
    %529 = arith.addf %527, %528 : vector<2x32xf32>
    %530 = math.tanh %529 : vector<2x32xf32>
    %531 = arith.mulf %526, %530 : vector<2x32xf32>
    %532 = vector.broadcast %511 : vector<2x1xf32> to vector<2x32xf32>
    %533 = arith.mulf %532, %531 : vector<2x32xf32>
    %cst_106 = arith.constant 1.000000e+00 : f32
    %534 = vector.broadcast %cst_106 : f32 to vector<2x1xf32>
    %535 = arith.subf %534, %511 : vector<2x1xf32>
    %536 = vector.broadcast %535 : vector<2x1xf32> to vector<2x32xf32>
    %537 = arith.mulf %536, %498 : vector<2x32xf32>
    %538 = arith.addf %533, %537 : vector<2x32xf32>
    %539 = vector.broadcast %511 : vector<2x1xf32> to vector<2x32xf32>
    %540 = arith.mulf %539, %529 : vector<2x32xf32>
    %cst_107 = arith.constant 1.000000e+00 : f32
    %541 = vector.broadcast %cst_107 : f32 to vector<2x1xf32>
    %542 = arith.subf %541, %511 : vector<2x1xf32>
    %543 = vector.broadcast %542 : vector<2x1xf32> to vector<2x32xf32>
    %544 = arith.mulf %543, %505 : vector<2x32xf32>
    %545 = arith.addf %540, %544 : vector<2x32xf32>
    %546 = vector.broadcast %511 : vector<2x1xf32> to vector<2x32xf32>
    %547 = arith.mulf %546, %531 : vector<2x32xf32>
    %c0_108 = arith.constant 0 : index
    %c4_109 = arith.constant 4 : index
    %c0_110 = arith.constant 0 : index
    %548 = vector.load %arg21[%c0_108, %c4_109, %c0_110] : memref<2x8x32xf32, #tpu.memory_space<vmem>>, vector<2x1x32xf32>
    %549 = vector.shape_cast %548 : vector<2x1x32xf32> to vector<2x32xf32>
    %550 = vector.shape_cast %547 : vector<2x32xf32> to vector<2x1x32xf32>
    tpu.vector_store %arg21[%c0_108, %c4_109, %c0_110], %550 {strides = array<i32>} : memref<2x8x32xf32, #tpu.memory_space<vmem>>, vector<2x1x32xf32>,
    %551 = vector.extract_strided_slice %1 {offsets = [0, 5], sizes = [2, 1], strides = [1, 1]} : vector<2x8xf32> to vector<2x1xf32>
    %552 = vector.extract_strided_slice %350 {offsets = [0, 5, 0], sizes = [2, 1, 128], strides = [1, 1, 1]} : vector<2x8x128xf32> to vector<2x1x128xf32>
    %553 = vector.shape_cast %552 : vector<2x1x128xf32> to vector<2x128xf32>
    %554 = arith.truncf %538 : vector<2x32xf32> to vector<2x32xbf16>
    %cst_111 = arith.constant dense<0.000000e+00> : vector<2x128xf32>
    %555 = tpu.matmul %554, %3, %cst_111 {dimension_numbers = #tpu.dot_dimension_numbers<[1], [0], [0], [1], [0, 0, 1, 1], [], []>} : vector<2x32xbf16>, vector<32x128xbf16>, vector<2x128xf32> -> vector<2x128xf32>
    %556 = arith.addf %553, %555 : vector<2x128xf32>
    %557 = arith.negf %556 : vector<2x128xf32>
    %558 = math.exp %557 : vector<2x128xf32>
    %cst_112 = arith.constant 1.000000e+00 : f32
    %559 = vector.broadcast %cst_112 : f32 to vector<2x128xf32>
    %560 = arith.addf %559, %558 : vector<2x128xf32>
    %561 = arith.divf %559, %560 : vector<2x128xf32>
    %562 = math.tanh %556 : vector<2x128xf32>
    %563 = vector.extract_strided_slice %561 {offsets = [0, 0], sizes = [2, 32], strides = [1, 1]} : vector<2x128xf32> to vector<2x32xf32>
    %564 = vector.extract_strided_slice %561 {offsets = [0, 32], sizes = [2, 32], strides = [1, 1]} : vector<2x128xf32> to vector<2x32xf32>
    %565 = vector.extract_strided_slice %562 {offsets = [0, 64], sizes = [2, 32], strides = [1, 1]} : vector<2x128xf32> to vector<2x32xf32>
    %566 = vector.extract_strided_slice %561 {offsets = [0, 96], sizes = [2, 32], strides = [1, 1]} : vector<2x128xf32> to vector<2x32xf32>
    %567 = arith.mulf %564, %545 : vector<2x32xf32>
    %568 = arith.mulf %563, %565 : vector<2x32xf32>
    %569 = arith.addf %567, %568 : vector<2x32xf32>
    %570 = math.tanh %569 : vector<2x32xf32>
    %571 = arith.mulf %566, %570 : vector<2x32xf32>
    %572 = vector.broadcast %551 : vector<2x1xf32> to vector<2x32xf32>
    %573 = arith.mulf %572, %571 : vector<2x32xf32>
    %cst_113 = arith.constant 1.000000e+00 : f32
    %574 = vector.broadcast %cst_113 : f32 to vector<2x1xf32>
    %575 = arith.subf %574, %551 : vector<2x1xf32>
    %576 = vector.broadcast %575 : vector<2x1xf32> to vector<2x32xf32>
    %577 = arith.mulf %576, %538 : vector<2x32xf32>
    %578 = arith.addf %573, %577 : vector<2x32xf32>
    %579 = vector.broadcast %551 : vector<2x1xf32> to vector<2x32xf32>
    %580 = arith.mulf %579, %569 : vector<2x32xf32>
    %cst_114 = arith.constant 1.000000e+00 : f32
    %581 = vector.broadcast %cst_114 : f32 to vector<2x1xf32>
    %582 = arith.subf %581, %551 : vector<2x1xf32>
    %583 = vector.broadcast %582 : vector<2x1xf32> to vector<2x32xf32>
    %584 = arith.mulf %583, %545 : vector<2x32xf32>
    %585 = arith.addf %580, %584 : vector<2x32xf32>
    %586 = vector.broadcast %551 : vector<2x1xf32> to vector<2x32xf32>
    %587 = arith.mulf %586, %571 : vector<2x32xf32>
    %c0_115 = arith.constant 0 : index
    %c5_116 = arith.constant 5 : index
    %c0_117 = arith.constant 0 : index
    %588 = vector.load %arg21[%c0_115, %c5_116, %c0_117] : memref<2x8x32xf32, #tpu.memory_space<vmem>>, vector<2x1x32xf32>
    %589 = vector.shape_cast %588 : vector<2x1x32xf32> to vector<2x32xf32>
    %590 = vector.shape_cast %587 : vector<2x32xf32> to vector<2x1x32xf32>
    tpu.vector_store %arg21[%c0_115, %c5_116, %c0_117], %590 {strides = array<i32>} : memref<2x8x32xf32, #tpu.memory_space<vmem>>, vector<2x1x32xf32>,
    %591 = vector.extract_strided_slice %1 {offsets = [0, 6], sizes = [2, 1], strides = [1, 1]} : vector<2x8xf32> to vector<2x1xf32>
    %592 = vector.extract_strided_slice %350 {offsets = [0, 6, 0], sizes = [2, 1, 128], strides = [1, 1, 1]} : vector<2x8x128xf32> to vector<2x1x128xf32>
    %593 = vector.shape_cast %592 : vector<2x1x128xf32> to vector<2x128xf32>
    %594 = arith.truncf %578 : vector<2x32xf32> to vector<2x32xbf16>
    %cst_118 = arith.constant dense<0.000000e+00> : vector<2x128xf32>
    %595 = tpu.matmul %594, %3, %cst_118 {dimension_numbers = #tpu.dot_dimension_numbers<[1], [0], [0], [1], [0, 0, 1, 1], [], []>} : vector<2x32xbf16>, vector<32x128xbf16>, vector<2x128xf32> -> vector<2x128xf32>
    %596 = arith.addf %593, %595 : vector<2x128xf32>
    %597 = arith.negf %596 : vector<2x128xf32>
    %598 = math.exp %597 : vector<2x128xf32>
    %cst_119 = arith.constant 1.000000e+00 : f32
    %599 = vector.broadcast %cst_119 : f32 to vector<2x128xf32>
    %600 = arith.addf %599, %598 : vector<2x128xf32>
    %601 = arith.divf %599, %600 : vector<2x128xf32>
    %602 = math.tanh %596 : vector<2x128xf32>
    %603 = vector.extract_strided_slice %601 {offsets = [0, 0], sizes = [2, 32], strides = [1, 1]} : vector<2x128xf32> to vector<2x32xf32>
    %604 = vector.extract_strided_slice %601 {offsets = [0, 32], sizes = [2, 32], strides = [1, 1]} : vector<2x128xf32> to vector<2x32xf32>
    %605 = vector.extract_strided_slice %602 {offsets = [0, 64], sizes = [2, 32], strides = [1, 1]} : vector<2x128xf32> to vector<2x32xf32>
    %606 = vector.extract_strided_slice %601 {offsets = [0, 96], sizes = [2, 32], strides = [1, 1]} : vector<2x128xf32> to vector<2x32xf32>
    %607 = arith.mulf %604, %585 : vector<2x32xf32>
    %608 = arith.mulf %603, %605 : vector<2x32xf32>
    %609 = arith.addf %607, %608 : vector<2x32xf32>
    %610 = math.tanh %609 : vector<2x32xf32>
    %611 = arith.mulf %606, %610 : vector<2x32xf32>
    %612 = vector.broadcast %591 : vector<2x1xf32> to vector<2x32xf32>
    %613 = arith.mulf %612, %611 : vector<2x32xf32>
    %cst_120 = arith.constant 1.000000e+00 : f32
    %614 = vector.broadcast %cst_120 : f32 to vector<2x1xf32>
    %615 = arith.subf %614, %591 : vector<2x1xf32>
    %616 = vector.broadcast %615 : vector<2x1xf32> to vector<2x32xf32>
    %617 = arith.mulf %616, %578 : vector<2x32xf32>
    %618 = arith.addf %613, %617 : vector<2x32xf32>
    %619 = vector.broadcast %591 : vector<2x1xf32> to vector<2x32xf32>
    %620 = arith.mulf %619, %609 : vector<2x32xf32>
    %cst_121 = arith.constant 1.000000e+00 : f32
    %621 = vector.broadcast %cst_121 : f32 to vector<2x1xf32>
    %622 = arith.subf %621, %591 : vector<2x1xf32>
    %623 = vector.broadcast %622 : vector<2x1xf32> to vector<2x32xf32>
    %624 = arith.mulf %623, %585 : vector<2x32xf32>
    %625 = arith.addf %620, %624 : vector<2x32xf32>
    %626 = vector.broadcast %591 : vector<2x1xf32> to vector<2x32xf32>
    %627 = arith.mulf %626, %611 : vector<2x32xf32>
    %c0_122 = arith.constant 0 : index
    %c6_123 = arith.constant 6 : index
    %c0_124 = arith.constant 0 : index
    %628 = vector.load %arg21[%c0_122, %c6_123, %c0_124] : memref<2x8x32xf32, #tpu.memory_space<vmem>>, vector<2x1x32xf32>
    %629 = vector.shape_cast %628 : vector<2x1x32xf32> to vector<2x32xf32>
    %630 = vector.shape_cast %627 : vector<2x32xf32> to vector<2x1x32xf32>
    tpu.vector_store %arg21[%c0_122, %c6_123, %c0_124], %630 {strides = array<i32>} : memref<2x8x32xf32, #tpu.memory_space<vmem>>, vector<2x1x32xf32>,
    %631 = vector.extract_strided_slice %1 {offsets = [0, 7], sizes = [2, 1], strides = [1, 1]} : vector<2x8xf32> to vector<2x1xf32>
    %632 = vector.extract_strided_slice %350 {offsets = [0, 7, 0], sizes = [2, 1, 128], strides = [1, 1, 1]} : vector<2x8x128xf32> to vector<2x1x128xf32>
    %633 = vector.shape_cast %632 : vector<2x1x128xf32> to vector<2x128xf32>
    %634 = arith.truncf %618 : vector<2x32xf32> to vector<2x32xbf16>
    %cst_125 = arith.constant dense<0.000000e+00> : vector<2x128xf32>
    %635 = tpu.matmul %634, %3, %cst_125 {dimension_numbers = #tpu.dot_dimension_numbers<[1], [0], [0], [1], [0, 0, 1, 1], [], []>} : vector<2x32xbf16>, vector<32x128xbf16>, vector<2x128xf32> -> vector<2x128xf32>
    %636 = arith.addf %633, %635 : vector<2x128xf32>
    %637 = arith.negf %636 : vector<2x128xf32>
    %638 = math.exp %637 : vector<2x128xf32>
    %cst_126 = arith.constant 1.000000e+00 : f32
    %639 = vector.broadcast %cst_126 : f32 to vector<2x128xf32>
    %640 = arith.addf %639, %638 : vector<2x128xf32>
    %641 = arith.divf %639, %640 : vector<2x128xf32>
    %642 = math.tanh %636 : vector<2x128xf32>
    %643 = vector.extract_strided_slice %641 {offsets = [0, 0], sizes = [2, 32], strides = [1, 1]} : vector<2x128xf32> to vector<2x32xf32>
    %644 = vector.extract_strided_slice %641 {offsets = [0, 32], sizes = [2, 32], strides = [1, 1]} : vector<2x128xf32> to vector<2x32xf32>
    %645 = vector.extract_strided_slice %642 {offsets = [0, 64], sizes = [2, 32], strides = [1, 1]} : vector<2x128xf32> to vector<2x32xf32>
    %646 = vector.extract_strided_slice %641 {offsets = [0, 96], sizes = [2, 32], strides = [1, 1]} : vector<2x128xf32> to vector<2x32xf32>
    %647 = arith.mulf %644, %625 : vector<2x32xf32>
    %648 = arith.mulf %643, %645 : vector<2x32xf32>
    %649 = arith.addf %647, %648 : vector<2x32xf32>
    %650 = math.tanh %649 : vector<2x32xf32>
    %651 = arith.mulf %646, %650 : vector<2x32xf32>
    %652 = vector.broadcast %631 : vector<2x1xf32> to vector<2x32xf32>
    %653 = arith.mulf %652, %651 : vector<2x32xf32>
    %c0_127 = arith.constant 0 : index
    %c7_128 = arith.constant 7 : index
    %c0_129 = arith.constant 0 : index
    %654 = vector.load %arg21[%c0_127, %c7_128, %c0_129] : memref<2x8x32xf32, #tpu.memory_space<vmem>>, vector<2x1x32xf32>
    %655 = vector.shape_cast %654 : vector<2x1x32xf32> to vector<2x32xf32>
    %656 = vector.shape_cast %653 : vector<2x32xf32> to vector<2x1x32xf32>
    tpu.vector_store %arg21[%c0_127, %c7_128, %c0_129], %656 {strides = array<i32>} : memref<2x8x32xf32, #tpu.memory_space<vmem>>, vector<2x1x32xf32>,
    %c0_130 = arith.constant 0 : index
    %c0_131 = arith.constant 0 : index
    %c0_132 = arith.constant 0 : index
    %657 = vector.load %arg21[%c0_130, %c0_131, %c0_132] : memref<2x8x32xf32, #tpu.memory_space<vmem>>, vector<2x8x32xf32>
    %c0_133 = arith.constant 0 : index
    %c0_134 = arith.constant 0 : index
    %c0_135 = arith.constant 0 : index
    %658 = vector.load %arg20[%c0_133, %c0_134, %c0_135] : memref<2x8x32xf32, #tpu.memory_space<vmem>>, vector<2x8x32xf32>
    %659 = vector.shape_cast %335 : vector<2x32xf32> to vector<2x1x32xf32>
    %660 = vector.shape_cast %659 : vector<2x1x32xf32> to vector<2x1x32xf32>
    %661 = vector.broadcast %660 : vector<2x1x32xf32> to vector<2x8x32xf32>
    %c0_136 = arith.constant 0 : index
    %c0_137 = arith.constant 0 : index
    %c0_138 = arith.constant 0 : index
    %662 = vector.load %arg1[%c0_136, %c0_137, %c0_138] : memref<2x8x32xf32, #tpu.memory_space<vmem>>, vector<2x8x32xf32>
    %cst_139 = arith.constant 0.000000e+00 : f32
    %663 = vector.broadcast %cst_139 : f32 to vector<2x8x32xf32>
    %664 = tpu.concatenate %657, %661, %662, %663 in 2 : vector<2x8x32xf32>, vector<2x8x32xf32>, vector<2x8x32xf32>, vector<2x8x32xf32> -> vector<2x8x128xf32>
    %c0_140 = arith.constant 0 : index
    %c0_141 = arith.constant 0 : index
    %c0_142 = arith.constant 0 : index
    %665 = vector.load %arg19[%c0_140, %c0_141, %c0_142] : memref<2x8x128xf32, #tpu.memory_space<vmem>>, vector<2x8x128xf32>
    tpu.vector_store %arg19[%c0_140, %c0_141, %c0_142], %664 {strides = array<i32>} : memref<2x8x128xf32, #tpu.memory_space<vmem>>, vector<2x8x128xf32>,
    %666 = vector.shape_cast %664 : vector<2x8x128xf32> to vector<16x128xf32>
    %667 = arith.truncf %666 : vector<16x128xf32> to vector<16x128xbf16>
    %c0_143 = arith.constant 0 : index
    %c0_144 = arith.constant 0 : index
    %668 = vector.load %arg12[%c0_143, %c0_144] : memref<128x128xbf16, #tpu.memory_space<vmem>>, vector<128x128xbf16>
    %cst_145 = arith.constant dense<0.000000e+00> : vector<16x128xf32>
    %669 = tpu.matmul %667, %668, %cst_145 {dimension_numbers = #tpu.dot_dimension_numbers<[1], [0], [0], [1], [0, 0, 1, 1], [], []>} : vector<16x128xbf16>, vector<128x128xbf16>, vector<16x128xf32> -> vector<16x128xf32>
    %670 = vector.shape_cast %669 : vector<16x128xf32> to vector<2x8x128xf32>
    %c0_146 = arith.constant 0 : index
    %c0_147 = arith.constant 0 : index
    %671 = vector.load %arg13[%c0_146, %c0_147] : memref<1x128xf32, #tpu.memory_space<vmem>>, vector<1x128xf32>
    %672 = vector.shape_cast %671 : vector<1x128xf32> to vector<1x1x128xf32>
    %673 = vector.broadcast %672 : vector<1x1x128xf32> to vector<2x8x128xf32>
    %674 = arith.addf %670, %673 : vector<2x8x128xf32>
    %cst_148 = arith.constant dense<0xFF800000> : vector<2x8xf32>
    %675 = vector.multi_reduction <maximumf>, %674, %cst_148 [2] : vector<2x8x128xf32> to vector<2x8xf32>
    %676 = vector.shape_cast %675 : vector<2x8xf32> to vector<2x8x1xf32>
    %677 = vector.broadcast %676 : vector<2x8x1xf32> to vector<2x8x128xf32>
    %678 = arith.subf %674, %677 : vector<2x8x128xf32>
    %679 = math.exp %678 : vector<2x8x128xf32>
    %cst_149 = arith.constant dense<0.000000e+00> : vector<2x8xf32>
    %680 = vector.multi_reduction <add>, %679, %cst_149 [2] : vector<2x8x128xf32> to vector<2x8xf32>
    %681 = vector.shape_cast %680 : vector<2x8xf32> to vector<2x8x1xf32>
    %682 = tpu.reciprocal %681 {approx = true} : vector<2x8x1xf32> -> vector<2x8x1xf32>
    %683 = vector.broadcast %682 : vector<2x8x1xf32> to vector<2x8x128xf32>
    %684 = arith.mulf %679, %683 : vector<2x8x128xf32>
    %cst_150 = arith.constant 0.000000e+00 : f32
    %685 = vector.broadcast %cst_150 : f32 to vector<2x8x32xf32>
    %686 = vector.extract_strided_slice %684 {offsets = [0, 0, 0], sizes = [2, 8, 1], strides = [1, 1, 1]} : vector<2x8x128xf32> to vector<2x8x1xf32>
    %687 = vector.extract_strided_slice %658 {offsets = [0, 0, 0], sizes = [2, 1, 32], strides = [1, 1, 1]} : vector<2x8x32xf32> to vector<2x1x32xf32>
    %688 = vector.shape_cast %687 : vector<2x1x32xf32> to vector<2x32xf32>
    %689 = vector.shape_cast %688 : vector<2x32xf32> to vector<2x1x32xf32>
    %690 = vector.broadcast %686 : vector<2x8x1xf32> to vector<2x8x32xf32>
    %691 = vector.broadcast %689 : vector<2x1x32xf32> to vector<2x8x32xf32>
    %692 = arith.mulf %690, %691 : vector<2x8x32xf32>
    %693 = arith.addf %685, %692 : vector<2x8x32xf32>
    %694 = vector.extract_strided_slice %684 {offsets = [0, 0, 1], sizes = [2, 8, 1], strides = [1, 1, 1]} : vector<2x8x128xf32> to vector<2x8x1xf32>
    %695 = vector.extract_strided_slice %658 {offsets = [0, 1, 0], sizes = [2, 1, 32], strides = [1, 1, 1]} : vector<2x8x32xf32> to vector<2x1x32xf32>
    %696 = vector.shape_cast %695 : vector<2x1x32xf32> to vector<2x32xf32>
    %697 = vector.shape_cast %696 : vector<2x32xf32> to vector<2x1x32xf32>
    %698 = vector.broadcast %694 : vector<2x8x1xf32> to vector<2x8x32xf32>
    %699 = vector.broadcast %697 : vector<2x1x32xf32> to vector<2x8x32xf32>
    %700 = arith.mulf %698, %699 : vector<2x8x32xf32>
    %701 = arith.addf %693, %700 : vector<2x8x32xf32>
    %702 = vector.extract_strided_slice %684 {offsets = [0, 0, 2], sizes = [2, 8, 1], strides = [1, 1, 1]} : vector<2x8x128xf32> to vector<2x8x1xf32>
    %703 = vector.extract_strided_slice %658 {offsets = [0, 2, 0], sizes = [2, 1, 32], strides = [1, 1, 1]} : vector<2x8x32xf32> to vector<2x1x32xf32>
    %704 = vector.shape_cast %703 : vector<2x1x32xf32> to vector<2x32xf32>
    %705 = vector.shape_cast %704 : vector<2x32xf32> to vector<2x1x32xf32>
    %706 = vector.broadcast %702 : vector<2x8x1xf32> to vector<2x8x32xf32>
    %707 = vector.broadcast %705 : vector<2x1x32xf32> to vector<2x8x32xf32>
    %708 = arith.mulf %706, %707 : vector<2x8x32xf32>
    %709 = arith.addf %701, %708 : vector<2x8x32xf32>
    %710 = vector.extract_strided_slice %684 {offsets = [0, 0, 3], sizes = [2, 8, 1], strides = [1, 1, 1]} : vector<2x8x128xf32> to vector<2x8x1xf32>
    %711 = vector.extract_strided_slice %658 {offsets = [0, 3, 0], sizes = [2, 1, 32], strides = [1, 1, 1]} : vector<2x8x32xf32> to vector<2x1x32xf32>
    %712 = vector.shape_cast %711 : vector<2x1x32xf32> to vector<2x32xf32>
    %713 = vector.shape_cast %712 : vector<2x32xf32> to vector<2x1x32xf32>
    %714 = vector.broadcast %710 : vector<2x8x1xf32> to vector<2x8x32xf32>
    %715 = vector.broadcast %713 : vector<2x1x32xf32> to vector<2x8x32xf32>
    %716 = arith.mulf %714, %715 : vector<2x8x32xf32>
    %717 = arith.addf %709, %716 : vector<2x8x32xf32>
    %718 = vector.extract_strided_slice %684 {offsets = [0, 0, 4], sizes = [2, 8, 1], strides = [1, 1, 1]} : vector<2x8x128xf32> to vector<2x8x1xf32>
    %719 = vector.extract_strided_slice %658 {offsets = [0, 4, 0], sizes = [2, 1, 32], strides = [1, 1, 1]} : vector<2x8x32xf32> to vector<2x1x32xf32>
    %720 = vector.shape_cast %719 : vector<2x1x32xf32> to vector<2x32xf32>
    %721 = vector.shape_cast %720 : vector<2x32xf32> to vector<2x1x32xf32>
    %722 = vector.broadcast %718 : vector<2x8x1xf32> to vector<2x8x32xf32>
    %723 = vector.broadcast %721 : vector<2x1x32xf32> to vector<2x8x32xf32>
    %724 = arith.mulf %722, %723 : vector<2x8x32xf32>
    %725 = arith.addf %717, %724 : vector<2x8x32xf32>
    %726 = vector.extract_strided_slice %684 {offsets = [0, 0, 5], sizes = [2, 8, 1], strides = [1, 1, 1]} : vector<2x8x128xf32> to vector<2x8x1xf32>
    %727 = vector.extract_strided_slice %658 {offsets = [0, 5, 0], sizes = [2, 1, 32], strides = [1, 1, 1]} : vector<2x8x32xf32> to vector<2x1x32xf32>
    %728 = vector.shape_cast %727 : vector<2x1x32xf32> to vector<2x32xf32>
    %729 = vector.shape_cast %728 : vector<2x32xf32> to vector<2x1x32xf32>
    %730 = vector.broadcast %726 : vector<2x8x1xf32> to vector<2x8x32xf32>
    %731 = vector.broadcast %729 : vector<2x1x32xf32> to vector<2x8x32xf32>
    %732 = arith.mulf %730, %731 : vector<2x8x32xf32>
    %733 = arith.addf %725, %732 : vector<2x8x32xf32>
    %734 = vector.extract_strided_slice %684 {offsets = [0, 0, 6], sizes = [2, 8, 1], strides = [1, 1, 1]} : vector<2x8x128xf32> to vector<2x8x1xf32>
    %735 = vector.extract_strided_slice %658 {offsets = [0, 6, 0], sizes = [2, 1, 32], strides = [1, 1, 1]} : vector<2x8x32xf32> to vector<2x1x32xf32>
    %736 = vector.shape_cast %735 : vector<2x1x32xf32> to vector<2x32xf32>
    %737 = vector.shape_cast %736 : vector<2x32xf32> to vector<2x1x32xf32>
    %738 = vector.broadcast %734 : vector<2x8x1xf32> to vector<2x8x32xf32>
    %739 = vector.broadcast %737 : vector<2x1x32xf32> to vector<2x8x32xf32>
    %740 = arith.mulf %738, %739 : vector<2x8x32xf32>
    %741 = arith.addf %733, %740 : vector<2x8x32xf32>
    %742 = vector.extract_strided_slice %684 {offsets = [0, 0, 7], sizes = [2, 8, 1], strides = [1, 1, 1]} : vector<2x8x128xf32> to vector<2x8x1xf32>
    %743 = vector.extract_strided_slice %658 {offsets = [0, 7, 0], sizes = [2, 1, 32], strides = [1, 1, 1]} : vector<2x8x32xf32> to vector<2x1x32xf32>
    %744 = vector.shape_cast %743 : vector<2x1x32xf32> to vector<2x32xf32>
    %745 = vector.shape_cast %744 : vector<2x32xf32> to vector<2x1x32xf32>
    %746 = vector.broadcast %742 : vector<2x8x1xf32> to vector<2x8x32xf32>
    %747 = vector.broadcast %745 : vector<2x1x32xf32> to vector<2x8x32xf32>
    %748 = arith.mulf %746, %747 : vector<2x8x32xf32>
    %749 = arith.addf %741, %748 : vector<2x8x32xf32>
    %750 = vector.shape_cast %657 : vector<2x8x32xf32> to vector<16x32xf32>
    %751 = vector.shape_cast %749 : vector<2x8x32xf32> to vector<16x32xf32>
    %752 = tpu.concatenate %750, %751 in 1 : vector<16x32xf32>, vector<16x32xf32> -> vector<16x64xf32>
    %753 = arith.truncf %752 : vector<16x64xf32> to vector<16x64xbf16>
    %c0_151 = arith.constant 0 : index
    %c0_152 = arith.constant 0 : index
    %754 = vector.load %arg14[%c0_151, %c0_152] : memref<64x32xbf16, #tpu.memory_space<vmem>>, vector<64x32xbf16>
    %cst_153 = arith.constant dense<0.000000e+00> : vector<16x32xf32>
    %755 = tpu.matmul %753, %754, %cst_153 {dimension_numbers = #tpu.dot_dimension_numbers<[1], [0], [0], [1], [0, 0, 1, 1], [], []>} : vector<16x64xbf16>, vector<64x32xbf16>, vector<16x32xf32> -> vector<16x32xf32>
    %c0_154 = arith.constant 0 : index
    %c0_155 = arith.constant 0 : index
    %756 = vector.load %arg15[%c0_154, %c0_155] : memref<1x32xf32, #tpu.memory_space<vmem>>, vector<1x32xf32>
    %757 = vector.broadcast %756 : vector<1x32xf32> to vector<16x32xf32>
    %758 = arith.addf %755, %757 : vector<16x32xf32>
    %759 = arith.negf %758 : vector<16x32xf32>
    %760 = math.exp %759 : vector<16x32xf32>
    %cst_156 = arith.constant 1.000000e+00 : f32
    %761 = vector.broadcast %cst_156 : f32 to vector<16x32xf32>
    %762 = arith.addf %761, %760 : vector<16x32xf32>
    %763 = arith.divf %761, %762 : vector<16x32xf32>
    %764 = arith.mulf %751, %763 : vector<16x32xf32>
    %765 = arith.addf %750, %764 : vector<16x32xf32>
    %766 = arith.truncf %765 : vector<16x32xf32> to vector<16x32xbf16>
    %c0_157 = arith.constant 0 : index
    %c0_158 = arith.constant 0 : index
    %767 = vector.load %arg16[%c0_157, %c0_158] : memref<32x128xbf16, #tpu.memory_space<vmem>>, vector<32x128xbf16>
    %cst_159 = arith.constant dense<0.000000e+00> : vector<16x128xf32>
    %768 = tpu.matmul %766, %767, %cst_159 {dimension_numbers = #tpu.dot_dimension_numbers<[1], [0], [0], [1], [0, 0, 1, 1], [], []>} : vector<16x32xbf16>, vector<32x128xbf16>, vector<16x128xf32> -> vector<16x128xf32>
    %c0_160 = arith.constant 0 : index
    %c0_161 = arith.constant 0 : index
    %769 = vector.load %arg17[%c0_160, %c0_161] : memref<1x128xf32, #tpu.memory_space<vmem>>, vector<1x128xf32>
    %770 = vector.broadcast %769 : vector<1x128xf32> to vector<16x128xf32>
    %771 = arith.addf %768, %770 : vector<16x128xf32>
    %772 = vector.shape_cast %771 : vector<16x128xf32> to vector<2x8x128xf32>
    %c0_162 = arith.constant 0 : index
    %c0_163 = arith.constant 0 : index
    %c0_164 = arith.constant 0 : index
    %773 = vector.load %arg18[%c0_162, %c0_163, %c0_164] : memref<2x8x128xf32, #tpu.memory_space<vmem>>, vector<2x8x128xf32>
    tpu.vector_store %arg18[%c0_162, %c0_163, %c0_164], %772 {strides = array<i32>} : memref<2x8x128xf32, #tpu.memory_space<vmem>>, vector<2x8x128xf32>,
    return
  }
}

</mosaic_0001>

<bundles_post_ra>
// kernel: seq2seq_forward.1
= control target key start
LH: loop header
LB: loop body
LE: loop exit
PB: predicated region body
PF: predicated region fallthrough
CT: control target
= control target key end

     0   :  { %s4264_s0 = inlined_call_operand.vmem [shape: bf16[2,8,32], index: 0, kind: input, shape index: {}]   ;;  %s4265_s1 = inlined_call_operand.vmem [shape: f32[2,8,32], index: 1, kind: input, shape index: {}]   ;;  %s4266_s2 = inlined_call_operand.vmem [shape: bf16[2,8,32], index: 2, kind: input, shape index: {}]   ;;  %s4267_s3 = inlined_call_operand.vmem [shape: f32[2,8], index: 3, kind: input, shape index: {}]   ;;  %s4268_s4 = inlined_call_operand.vmem [shape: f32[2,8], index: 4, kind: input, shape index: {}]   ;;  %s4269_s5 = inlined_call_operand.vmem [shape: bf16[32,128], index: 5, kind: input, shape index: {}]   ;;  %s4270_s6 = inlined_call_operand.vmem [shape: bf16[32,128], index: 6, kind: input, shape index: {}]   ;;  %s4271_s7 = inlined_call_operand.vmem [shape: f32[1,128], index: 7, kind: input, shape index: {}]   ;;  %s4272_s8 = inlined_call_operand.vmem [shape: bf16[32,128], index: 8, kind: input, shape index: {}]   ;;  %s4273_s9 = inlined_call_operand.vmem [shape: bf16[32,128], index: 9, kind: input, shape index: {}]   ;;  %s4274_s10 = inlined_call_operand.vmem [shape: bf16[32,128], index: 10, kind: input, shape index: {}]   ;;  %s4275_s11 = inlined_call_operand.vmem [shape: f32[1,128], index: 11, kind: input, shape index: {}]   ;;  %s4276_s12 = inlined_call_operand.vmem [shape: bf16[128,128], index: 12, kind: input, shape index: {}]   ;;  %s4277_s13 = inlined_call_operand.vmem [shape: f32[1,128], index: 13, kind: input, shape index: {}]   ;;  %s4278_s14 = inlined_call_operand.vmem [shape: bf16[64,32], index: 14, kind: input, shape index: {}]   ;;  %s4279_s15 = inlined_call_operand.vmem [shape: f32[1,32], index: 15, kind: input, shape index: {}]   ;;  %s4280_s16 = inlined_call_operand.vmem [shape: bf16[32,128], index: 16, kind: input, shape index: {}]   ;;  %s4281_s17 = inlined_call_operand.vmem [shape: f32[1,128], index: 17, kind: input, shape index: {}]   ;;  %s4282_s18 = inlined_call_operand.hbm [shape: f32[2,8,128], index: 18, kind: output, shape index: {0}]   ;;  %s4283_s19 = inlined_call_operand.hbm [shape: f32[2,8,128], index: 19, kind: output, shape index: {1}]  }
   0x1   :  { %4286 = sst [smem:[#allocation10_spill]] %s4264_s0 }
   0x2   :  { %4287 = sst [smem:[#allocation11_spill]] %s4265_s1 }
   0x3   :  { %4288 = sst [smem:[#allocation12_spill]] %s4266_s2 }
   0x4   :  { %4289 = sst [smem:[#allocation13_spill]] %s4267_s3 }
   0x5   :  { %25 = vsyncpa [#allocation5], 0  ;;  %v3070_v0 = vld [vmem:[%s4269_s5 + $0x8] sm:$0xff]  ;;  %v3069_v2 = vld [vmem:[%s4269_s5] sm:$0xff]  ;;  %v3489_v4 = vmov 0  }
   0x6   :  { %v3065_v1 = vld [vmem:[%s4270_s6 + $0x8] sm:$0xff]  ;;  %v3064_v3 = vld [vmem:[%s4270_s6] sm:$0xff]  ;;  %3105 = vset.pattern.permute.xlu0 %v3489_v4  ;;  %3106 = vset.pattern.permute.xlu2 %v3489_v4 }
   0x7   :  { %107 = vmatpush.bf16.msra.mxu0 %v3070_v0  ;;  %142 = vmatpush.bf16.msra.mxu1 %v3065_v1 }
   0x8   :  { %276 = vmatpush.bf16.msra.mxu2 %v3065_v1  ;;  %414 = vmatpush.bf16.msra.mxu3 %v3065_v1 }
   0x9   :  { %26 = vsyncpa [#allocation7], 0  ;;  %s4290_s3 = sld [smem:[#allocation10_spill]]  ;;  %vm97_vm0 = vcmask 261120   ;;  %v3158_v8 = vld [vmem:[%s4271_s7] ss:$0 sm:$0xff] }
   0xa   :  { %s3490_s26 = smov 64   ;;  %s3491_s7 = smov 32   ;;  %vm237_vm9 = vcmask 1041409   ;;  %vm263_vm10 = vcmask 253952  }
   0xb   :  { %108 = vmatpush.bf16.msra.mxu0 %v3069_v2  ;;  %143 = vmatpush.bf16.msra.mxu1 %v3064_v3  ;;  %s4291_s29 = sld [smem:[#allocation13_spill]]  ;;  %s3492_s0 = smov 96  }
   0xc   :  { %277 = vmatpush.bf16.msra.mxu2 %v3064_v3  ;;  %415 = vmatpush.bf16.msra.mxu3 %v3064_v3  ;;  %s4292_s27 = sld [smem:[#allocation12_spill]]  ;;  %s2886_s30 = sshll.u32 %s4283_s19, 4  ;;  %s2887_s30 = int_to_ptr.hbm [resolvable:$true] %s2886_s30 }
   0xd   :  { %s4293_s22 = sld [smem:[#allocation11_spill]]  ;;  %s3501_s20 = smov 128  }
   0xe   :  { %144 = vmatmul.bf16.vlgmr.msra.gmra.mxu1 %v3489_v4 }
   0xf   :  { %v3068_v5 = vld [vmem:[%s4290_s3] sm:$0xff]  ;;  %556 = vmatpush.bf16.msrb.mxu0 %v3065_v1  ;;  %698 = vmatpush.bf16.msrb.mxu1 %v3065_v1 }
  0x10   :  { %2915 = vmatmul.msk.bf16.vlgmr.msra.gmra.mxu0 %vm97_vm0, %v3068_v5  ;;  %840 = vmatpush.bf16.msrb.mxu2 %v3065_v1 }
  0x11   :  { %982 = vmatpush.bf16.msrb.mxu3 %v3065_v1  ;;  %v3642_v58 = vld [vmem:[%s4291_s29] sm:$0x3] }
  0x12   :  { %v3646_v59 = vsub.f32 1.0, %v3642_v58 }
  0x13   :  { %557 = vmatpush.bf16.msrb.mxu0 %v3064_v3  ;;  %699 = vmatpush.bf16.msrb.mxu1 %v3064_v3 }
  0x14   :  { %841 = vmatpush.bf16.msrb.mxu2 %v3064_v3 }
  0x15   :  { %983 = vmatpush.bf16.msrb.mxu3 %v3064_v3 }
  0x17   :  { %1124 = vmatpush.bf16.msra.mxu0 %v3065_v1 }
  0x1b   :  { %1125 = vmatpush.bf16.msra.mxu0 %v3064_v3 }
  0x8b   :  { %v145_v7 = vpop.f32.mrf.mxu1 }
  0x8c   :  { %v150_v9 = vrot.slane %v145_v7, 1 }
  0x8d   :  { %v110_v6 = vpop.f32.mrf.mxu0 }
  0x8e   :  { %v3629_v14 = vadd.f32 %v3158_v8, %v110_v6 }
  0x90   :  { %v153_v15 = vadd.f32 %v145_v7, %v3629_v14 }
  0x92   :  { %v2924_v19 = vmul.f32 -1.442695, %v153_v15 }
  0x93   :  { %v147_v11 = vpop.f32.mrf.mxu1 }
  0x95   :  { %v112_v10 = vpop.f32.mrf.mxu0 }
  0x96   :  { %v3626_v12 = vadd.f32 %v3158_v8, %v112_v10 }
  0x98   :  { %v154_v13 = vadd.f32 %v150_v9, %v3626_v12 }
  0x9a   :  { %3163 = vtanh.f32 %v154_v13  ;;  %v2925_v18 = vmul.f32 -1.442695, %v154_v13 }
  0x9b   :  { %3165 = vtanh.f32 %v153_v15 }
  0x9c   :  { %3167 = vpow2.f32 %v2925_v18 }
  0x9d   :  { %3169 = vpow2.f32 %v2924_v19 }
  0xa0   :  { %v3164_v16 = vpop.eup %3163 }
  0xa1   :  { %201 = vrot.lane.b32.xlu0 %v3164_v16, %s3490_s26  ;;  %v3166_v17 = vpop.eup %3165 }
  0xa2   :  { %v3168_v20 = vpop.eup %3167 }
  0xa3   :  { %v162_v21 = vadd.f32 1.0, %v3168_v20  ;;  %v3170_v22 = vpop.eup %3169 }
  0xa4   :  { %v161_v23 = vadd.f32 1.0, %v3170_v22 }
  0xa5   :  { %3171 = vrcp.f32 %v162_v21  ;;  %v189_v32 = vand.u32 2147483648, %v162_v21  ;;  %vm183_vm2 = vweird.f32 %v162_v21  ;;  %v187_v33 = vand.u32 2147483647, %v162_v21 }
  0xa6   :  { %3173 = vrcp.f32 %v161_v23  ;;  %v174_v41 = vand.u32 2147483648, %v161_v23  ;;  %vm168_vm6 = vweird.f32 %v161_v23  ;;  %v172_v42 = vand.u32 2147483647, %v161_v23 }
  0xa7   :  { %v190_v36 = vor.u32 1.1754944e-38, %v189_v32  ;;  %vm188_vm4 = vcmp.eq.f32.partialorder %v187_v33, 8.507059e+37 }
  0xa8   :  { %v175_v44 = vor.u32 1.1754944e-38, %v174_v41  ;;  %vm173_vm8 = vcmp.eq.f32.partialorder %v172_v42, 8.507059e+37 }
  0xa9   :  { %199 = vrot.lane.b32.xlu0 %v3166_v17, %s3490_s26 }
  0xab   :  { %v3172_v24 = vpop.eup %3171 }
  0xac   :  { %v179_v25 = vmul.f32 %v3172_v24, %v162_v21  ;;  %v3174_v27 = vpop.eup %3173  ;;  %vm184_vm1 = vweird.f32 %v3172_v24 }
  0xad   :  { %v164_v29 = vmul.f32 %v3174_v27, %v161_v23  ;;  %vm185_vm3 = vmor %vm183_vm2, %vm184_vm1  ;;  %vm169_vm5 = vweird.f32 %v3174_v27 }
  0xae   :  { %v180_v26 = vsub.f32 1.0, %v179_v25  ;;  %vm170_vm7 = vmor %vm168_vm6, %vm169_vm5 }
  0xaf   :  { %v165_v31 = vsub.f32 1.0, %v164_v29 }
  0xb0   :  { %v181_v28 = vmul.f32 %v3172_v24, %v180_v26 }
  0xb1   :  { %v166_v35 = vmul.f32 %v3174_v27, %v165_v31  ;;  %231 = vperm.xlu0 %3105, %v3642_v58  }
  0xb2   :  { %v182_v30 = vadd.f32 %v3172_v24, %v181_v28 }
  0xb3   :  { %v167_v40 = vadd.f32 %v3174_v27, %v166_v35 }
  0xb4   :  { %v186_v34 = vsel %vm185_vm3, %v3172_v24, %v182_v30 }
  0xb5   :  { %v191_v38 = vsel %vm188_vm4, %v190_v36, %v186_v34  ;;  %v171_v43 = vsel %vm170_vm7, %v3174_v27, %v167_v40 }
  0xb6   :  { %v176_v45 = vsel %vm173_vm8, %v175_v44, %v171_v43  ;;  %v196_v48 = vmul.f32 0.0, %v191_v38 }
  0xb7   :  { %v195_v51 = vmul.f32 0.0, %v176_v45 }
 0x113   :  { %v202_v37 = vpop.permute.xlu0 %201 }
 0x114   :  { %v206_v39 = vmul.f32 %v202_v37, %v191_v38 }
 0x116   :  { %211 = vrot.lane.b32.xlu1 %v206_v39, %s3491_s7 }
 0x11b   :  { %v200_v46 = vpop.permute.xlu0 %199 }
 0x11c   :  { %v205_v47 = vmul.f32 %v200_v46, %v176_v45 }
 0x11e   :  { %209 = vrot.lane.b32.xlu1 %v205_v47, %s3491_s7 }
 0x123   :  { %v232_v3 = vpop.permute.xlu0 %231 }
 0x188   :  { %v212_v49 = vpop.permute.xlu1 %211 }
 0x189   :  { %v216_v50 = vadd.f32 %v212_v49, %v196_v48 }
 0x18b   :  { %3175 = vtanh.f32 %v216_v50  ;;  %v253_v54 = vrot.slane %v216_v50, 7 }
 0x190   :  { %v210_v52 = vpop.permute.xlu1 %209 }
 0x191   :  { %v3176_v53 = vpop.eup %3175  ;;  %v215_v55 = vadd.f32 %v210_v52, %v195_v51 }
 0x192   :  { %223 = vrot.lane.b32.xlu2 %v3176_v53, %s3490_s26 }
 0x193   :  { %3177 = vtanh.f32 %v215_v55  ;;  %v254_v56 = vsel %vm237_vm9, %v253_v54, %v215_v55  ;;  %v3493_v54 = vmov 1  }
 0x194   :  { %3107 = vset.pattern.permute.xlu1 %v3493_v54  ;;  %3108 = vset.pattern.permute.xlu0 %v3493_v54 }
 0x199   :  { %v3178_v57 = vpop.eup %3177 }
 0x19a   :  { %221 = vrot.lane.b32.xlu2 %v3178_v57, %s3490_s26 }
 0x1a2   :  { %246 = vperm.xlu2 %3106, %v3646_v59  }
 0x1ec   :  { %v224_v60 = vpop.permute.xlu2 %223 }
 0x1ed   :  { %v228_v61 = vmul.f32 %v224_v60, %v191_v38 }
 0x1ef   :  { %v236_v63 = vrot.slane %v228_v61, 7 }
 0x1f4   :  { %v222_v62 = vpop.permute.xlu2 %221 }
 0x1f5   :  { %v227_v0 = vmul.f32 %v222_v62, %v176_v45 }
 0x1f7   :  { %v238_v1 = vsel %vm237_vm9, %v236_v63, %v227_v0 }
 0x1f8   :  { %239 = vrot.lane.b32.xlu1 %v238_v1, %s3491_s7 }
 0x1fc   :  { %v247_v2 = vpop.permute.xlu2 %246 }
 0x1fd   :  { %v249_v5 = vmul.f32 0.0, %v247_v2 }
 0x200   :  { %255 = vrot.lane.b32.xlu1 %v254_v56, %s3492_s0 }
 0x26a   :  { %v240_v6 = vpop.permute.xlu1 %239 }
 0x26b   :  { %v242_v7 = vmul.f32 %v240_v6, %v232_v3 }
 0x26d   :  { %v261_v8 = vrot.slane %v242_v7, 1  ;;  %264 = vst.msk [vmem:[#allocation2] sm:$0x1] %vm263_vm10, %v242_v7  ;;  %v3653_v9 = vadd.f32 %v249_v5, %v242_v7 }
 0x26f   :  { %265 = vst.msk [vmem:[#allocation2 + $0x8] sm:$0x1] %vm263_vm10, %v261_v8  ;;  %v266_v10 = vpack.c.bf16 %v3653_v9, %v3653_v9 }
 0x271   :  { %2926 = vmatmul.msk.bf16.vlgmr.msra.gmra.mxu2 %vm97_vm0, %v266_v10 }
 0x272   :  { %v256_v11 = vpop.permute.xlu1 %255 }
 0x273   :  { %v258_v13 = vmul.f32 %v256_v11, %v232_v3 }
 0x275   :  { %v3659_v15 = vadd.f32 %v258_v13, %v249_v5 }
 0x277   :  { %v330_v16 = vrot.slane %v3659_v15, 7 }
 0x279   :  { %331 = vrot.lane.b32.xlu1 %v330_v16, %s3491_s7 }
 0x2eb   :  { %v332_v55 = vpop.permute.xlu1 %331 }
 0x2f4   :  { %v279_v17 = vpop.f32.mrf.mxu2 }
 0x2f5   :  { %v284_v18 = vrot.slane %v279_v17, 7  ;;  %v288_v19 = vadd.f32 %v279_v17, %v3626_v12 }
 0x2f7   :  { %v287_v20 = vadd.f32 %v284_v18, %v3629_v14  ;;  %3179 = vtanh.f32 %v288_v19  ;;  %v2928_v27 = vmul.f32 -1.442695, %v288_v19 }
 0x2f9   :  { %3181 = vtanh.f32 %v287_v20  ;;  %v2927_v24 = vmul.f32 -1.442695, %v287_v20 }
 0x2fb   :  { %3183 = vpow2.f32 %v2927_v24 }
 0x2fc   :  { %v281_v21 = vpop.f32.mrf.mxu2 }
 0x2fd   :  { %v3180_v22 = vpop.eup %3179 }
 0x2fe   :  { %343 = vrot.lane.b32.xlu0 %v3180_v22, %s3490_s26 }
 0x2ff   :  { %v3182_v23 = vpop.eup %3181 }
 0x300   :  { %341 = vrot.lane.b32.xlu2 %v3182_v23, %s3490_s26 }
 0x301   :  { %v3184_v25 = vpop.eup %3183 }
 0x302   :  { %v295_v26 = vadd.f32 1.0, %v3184_v25 }
 0x304   :  { %3185 = vrcp.f32 %v295_v26  ;;  %v308_v35 = vand.u32 2147483648, %v295_v26  ;;  %vm302_vm12 = vweird.f32 %v295_v26  ;;  %v306_v36 = vand.u32 2147483647, %v295_v26 }
 0x305   :  { %3187 = vpow2.f32 %v2928_v27 }
 0x306   :  { %v309_v38 = vor.u32 1.1754944e-38, %v308_v35  ;;  %vm307_vm14 = vcmp.eq.f32.partialorder %v306_v36, 8.507059e+37 }
 0x308   :  { %333 = vrot.lane.b32.xlu2 %v3659_v15, %s3491_s7 }
 0x30a   :  { %v3186_v28 = vpop.eup %3185 }
 0x30b   :  { %v298_v29 = vmul.f32 %v3186_v28, %v295_v26  ;;  %v3188_v31 = vpop.eup %3187  ;;  %vm303_vm11 = vweird.f32 %v3186_v28 }
 0x30c   :  { %v296_v32 = vadd.f32 1.0, %v3188_v31  ;;  %vm304_vm13 = vmor %vm302_vm12, %vm303_vm11 }
 0x30d   :  { %v299_v30 = vsub.f32 1.0, %v298_v29 }
 0x30e   :  { %3189 = vrcp.f32 %v296_v32  ;;  %v323_v47 = vand.u32 2147483648, %v296_v32  ;;  %vm317_vm1 = vweird.f32 %v296_v32  ;;  %v321_v48 = vand.u32 2147483647, %v296_v32 }
 0x30f   :  { %v300_v33 = vmul.f32 %v3186_v28, %v299_v30 }
 0x310   :  { %v324_v50 = vor.u32 1.1754944e-38, %v323_v47  ;;  %vm322_vm3 = vcmp.eq.f32.partialorder %v321_v48, 8.507059e+37 }
 0x311   :  { %v301_v34 = vadd.f32 %v3186_v28, %v300_v33 }
 0x313   :  { %v305_v37 = vsel %vm304_vm13, %v3186_v28, %v301_v34 }
 0x314   :  { %v3190_v39 = vpop.eup %3189  ;;  %v310_v41 = vsel %vm307_vm14, %v309_v38, %v305_v37 }
 0x315   :  { %v313_v43 = vmul.f32 %v3190_v39, %v296_v32  ;;  %vm318_vm15 = vweird.f32 %v3190_v39  ;;  %v337_v56 = vmul.f32 %v332_v55, %v310_v41 }
 0x316   :  { %vm319_vm2 = vmor %vm317_vm1, %vm318_vm15 }
 0x317   :  { %v314_v44 = vsub.f32 1.0, %v313_v43 }
 0x319   :  { %v315_v45 = vmul.f32 %v3190_v39, %v314_v44 }
 0x31b   :  { %v316_v46 = vadd.f32 %v3190_v39, %v315_v45 }
 0x31d   :  { %v320_v49 = vsel %vm319_vm2, %v3190_v39, %v316_v46 }
 0x31e   :  { %v325_v51 = vsel %vm322_vm3, %v324_v50, %v320_v49  ;;  %v3494_v50 = vmov 2  }
 0x31f   :  { %3109 = vset.pattern.permute.xlu2 %v3494_v50 }
 0x35a   :  { %v342_v40 = vpop.permute.xlu2 %341 }
 0x35b   :  { %v347_v42 = vmul.f32 %v342_v40, %v310_v41 }
 0x35d   :  { %351 = vrot.lane.b32.xlu0 %v347_v42, %s3491_s7 }
 0x362   :  { %v334_v62 = vpop.permute.xlu2 %333 }
 0x363   :  { %v338_v63 = vmul.f32 %v334_v62, %v325_v51 }
 0x370   :  { %v344_v52 = vpop.permute.xlu0 %343 }
 0x371   :  { %v348_v53 = vmul.f32 %v344_v52, %v325_v51 }
 0x373   :  { %353 = vrot.lane.b32.xlu1 %v348_v53, %s3491_s7 }
 0x37b   :  { %372 = vperm.xlu1 %3107, %v3642_v58  }
 0x383   :  { %3110 = vset.pattern.permute.xlu1 %v3494_v50 }
 0x3cf   :  { %v352_v57 = vpop.permute.xlu0 %351 }
 0x3d0   :  { %v357_v60 = vadd.f32 %v352_v57, %v337_v56 }
 0x3d2   :  { %3191 = vtanh.f32 %v357_v60  ;;  %v391_v1 = vrot.slane %v357_v60, 1 }
 0x3d8   :  { %v3192_v61 = vpop.eup %3191 }
 0x3d9   :  { %363 = vrot.lane.b32.xlu2 %v3192_v61, %s3490_s26 }
 0x3e5   :  { %v354_v0 = vpop.permute.xlu1 %353 }
 0x3e6   :  { %v358_v2 = vadd.f32 %v354_v0, %v338_v63 }
 0x3e8   :  { %3193 = vtanh.f32 %v358_v2  ;;  %v392_v3 = vsel %vm237_vm9, %v358_v2, %v391_v1 }
 0x3e9   :  { %393 = vrot.lane.b32.xlu1 %v392_v3, %s3492_s0 }
 0x3ed   :  { %v373_v7 = vpop.permute.xlu1 %372 }
 0x3ee   :  { %v3194_v5 = vpop.eup %3193 }
 0x3ef   :  { %365 = vrot.lane.b32.xlu0 %v3194_v5, %s3490_s26 }
 0x3f7   :  { %384 = vperm.xlu0 %3108, %v3646_v59  }
 0x433   :  { %v364_v6 = vpop.permute.xlu2 %363 }
 0x434   :  { %v369_v8 = vmul.f32 %v364_v6, %v310_v41 }
 0x436   :  { %v377_v11 = vrot.slane %v369_v8, 1 }
 0x45b   :  { %v394_v17 = vpop.permute.xlu1 %393 }
 0x45c   :  { %v396_v19 = vmul.f32 %v394_v17, %v373_v7 }
 0x461   :  { %v366_v10 = vpop.permute.xlu0 %365 }
 0x462   :  { %v370_v13 = vmul.f32 %v366_v10, %v325_v51 }
 0x464   :  { %v378_v16 = vsel %vm237_vm9, %v370_v13, %v377_v11 }
 0x465   :  { %379 = vrot.lane.b32.xlu2 %v378_v16, %s3491_s7 }
 0x469   :  { %v385_v18 = vpop.permute.xlu0 %384 }
 0x46a   :  { %v397_v20 = vmul.f32 %v385_v18, %v3659_v15  ;;  %v387_v24 = vmul.f32 %v385_v18, %v3653_v9 }
 0x46c   :  { %v3682_v21 = vadd.f32 %v397_v20, %v396_v19 }
 0x46e   :  { %v470_v22 = vrot.slane %v3682_v21, 7  ;;  %v469_v35 = vrot.slane %v3682_v21, 6 }
 0x470   :  { %473 = vrot.lane.b32.xlu0 %v470_v22, %s3491_s7 }
 0x4bf   :  { %v380_v23 = vpop.permute.xlu2 %379 }
 0x4c0   :  { %v382_v25 = vmul.f32 %v380_v23, %v373_v7 }
 0x4c2   :  { %v400_v26 = vrot.slane %v382_v25, 1  ;;  %402 = vst.msk [vmem:[#allocation2 + $0x1] sm:$0x1] %vm263_vm10, %v382_v25  ;;  %v3688_v27 = vadd.f32 %v387_v24, %v382_v25 }
 0x4c4   :  { %403 = vst.msk [vmem:[#allocation2 + $0x9] sm:$0x1] %vm263_vm10, %v400_v26  ;;  %v404_v15 = vpack.c.bf16 %v3688_v27, %v3688_v27 }
 0x4c6   :  { %2929 = vmatmul.msk.bf16.vlgmr.msra.gmra.mxu3 %vm97_vm0, %v404_v15 }
 0x4e2   :  { %v474_v8 = vpop.permute.xlu0 %473 }
 0x549   :  { %v417_v28 = vpop.f32.mrf.mxu3 }
 0x54a   :  { %v422_v29 = vrot.slane %v417_v28, 6  ;;  %v423_v30 = vrot.slane %v417_v28, 7 }
 0x54c   :  { %v426_v31 = vadd.f32 %v422_v29, %v3629_v14  ;;  %v427_v9 = vadd.f32 %v423_v30, %v3626_v12 }
 0x54e   :  { %3195 = vtanh.f32 %v426_v31  ;;  %v2930_v36 = vmul.f32 -1.442695, %v426_v31  ;;  %v2931_v40 = vmul.f32 -1.442695, %v427_v9 }
 0x54f   :  { %3197 = vtanh.f32 %v427_v9 }
 0x550   :  { %3199 = vpow2.f32 %v2930_v36 }
 0x551   :  { %v419_v32 = vpop.f32.mrf.mxu3 }
 0x554   :  { %v3196_v33 = vpop.eup %3195 }
 0x555   :  { %v3198_v34 = vpop.eup %3197  ;;  %481 = vrot.lane.b32.xlu2 %v3196_v33, %s3490_s26 }
 0x556   :  { %483 = vrot.lane.b32.xlu1 %v3198_v34, %s3490_s26  ;;  %v3200_v37 = vpop.eup %3199 }
 0x557   :  { %v434_v38 = vadd.f32 1.0, %v3200_v37 }
 0x559   :  { %3201 = vrcp.f32 %v434_v38  ;;  %v447_v47 = vand.u32 2147483648, %v434_v38  ;;  %vm441_vm5 = vweird.f32 %v434_v38  ;;  %v445_v48 = vand.u32 2147483647, %v434_v38 }
 0x55a   :  { %3203 = vpow2.f32 %v2931_v40 }
 0x55b   :  { %v448_v51 = vor.u32 1.1754944e-38, %v447_v47  ;;  %vm446_vm7 = vcmp.eq.f32.partialorder %v445_v48, 8.507059e+37 }
 0x55d   :  { %471 = vrot.lane.b32.xlu2 %v469_v35, %s3491_s7 }
 0x55f   :  { %v3202_v39 = vpop.eup %3201 }
 0x560   :  { %v437_v41 = vmul.f32 %v3202_v39, %v434_v38  ;;  %v3204_v44 = vpop.eup %3203  ;;  %vm442_vm4 = vweird.f32 %v3202_v39 }
 0x561   :  { %v435_v45 = vadd.f32 1.0, %v3204_v44  ;;  %vm443_vm6 = vmor %vm441_vm5, %vm442_vm4 }
 0x562   :  { %v438_v42 = vsub.f32 1.0, %v437_v41 }
 0x563   :  { %3205 = vrcp.f32 %v435_v45  ;;  %v462_v63 = vand.u32 2147483648, %v435_v45  ;;  %vm456_vm11 = vweird.f32 %v435_v45  ;;  %v460_v0 = vand.u32 2147483647, %v435_v45 }
 0x564   :  { %v439_v43 = vmul.f32 %v3202_v39, %v438_v42 }
 0x565   :  { %v463_v2 = vor.u32 1.1754944e-38, %v462_v63  ;;  %vm461_vm13 = vcmp.eq.f32.partialorder %v460_v0, 8.507059e+37 }
 0x566   :  { %v440_v46 = vadd.f32 %v3202_v39, %v439_v43 }
 0x568   :  { %v444_v49 = vsel %vm443_vm6, %v3202_v39, %v440_v46 }
 0x569   :  { %v449_v53 = vsel %vm446_vm7, %v448_v51, %v444_v49  ;;  %v3206_v56 = vpop.eup %3205 }
 0x56a   :  { %v452_v57 = vmul.f32 %v3206_v56, %v435_v45  ;;  %vm457_vm8 = vweird.f32 %v3206_v56 }
 0x56b   :  { %vm458_vm12 = vmor %vm456_vm11, %vm457_vm8 }
 0x56c   :  { %v453_v60 = vsub.f32 1.0, %v452_v57 }
 0x56e   :  { %v454_v61 = vmul.f32 %v3206_v56, %v453_v60 }
 0x570   :  { %v455_v62 = vadd.f32 %v3206_v56, %v454_v61 }
 0x572   :  { %v459_v1 = vsel %vm458_vm12, %v3206_v56, %v455_v62 }
 0x573   :  { %v464_v5 = vsel %vm461_vm13, %v463_v2, %v459_v1 }
 0x574   :  { %v478_v11 = vmul.f32 %v474_v8, %v464_v5 }
 0x5af   :  { %v482_v52 = vpop.permute.xlu2 %481 }
 0x5b0   :  { %v487_v55 = vmul.f32 %v482_v52, %v449_v53 }
 0x5b2   :  { %491 = vrot.lane.b32.xlu1 %v487_v55, %s3491_s7 }
 0x5b7   :  { %v472_v7 = vpop.permute.xlu2 %471 }
 0x5b8   :  { %v477_v10 = vmul.f32 %v472_v7, %v449_v53 }
 0x5c8   :  { %v484_v3 = vpop.permute.xlu1 %483 }
 0x5c9   :  { %v488_v6 = vmul.f32 %v484_v3, %v464_v5 }
 0x5cb   :  { %493 = vrot.lane.b32.xlu2 %v488_v6, %s3491_s7 }
 0x5d3   :  { %512 = vperm.xlu2 %3109, %v3642_v58  }
 0x624   :  { %v492_v13 = vpop.permute.xlu1 %491 }
 0x625   :  { %v494_v16 = vpop.permute.xlu2 %493  ;;  %v497_v17 = vadd.f32 %v492_v13, %v477_v10 }
 0x626   :  { %v498_v18 = vadd.f32 %v494_v16, %v478_v11 }
 0x627   :  { %3207 = vtanh.f32 %v497_v17  ;;  %v532_v19 = vrot.slane %v497_v17, 2 }
 0x628   :  { %3209 = vtanh.f32 %v498_v18  ;;  %v533_v20 = vrot.slane %v498_v18, 1 }
 0x62a   :  { %v534_v22 = vsel %vm237_vm9, %v533_v20, %v532_v19 }
 0x62b   :  { %535 = vrot.lane.b32.xlu2 %v534_v22, %s3492_s0 }
 0x62d   :  { %v3208_v23 = vpop.eup %3207  ;;  %v513_v25 = vpop.permute.xlu2 %512 }
 0x62e   :  { %v3210_v24 = vpop.eup %3209  ;;  %503 = vrot.lane.b32.xlu0 %v3208_v23, %s3490_s26 }
 0x62f   :  { %505 = vrot.lane.b32.xlu1 %v3210_v24, %s3490_s26 }
 0x637   :  { %525 = vperm.xlu1 %3110, %v3646_v59  }
 0x685   :  { %v536_v32 = vpop.permute.xlu2 %535 }
 0x686   :  { %v538_v34 = vmul.f32 %v536_v32, %v513_v25 }
 0x6a0   :  { %v504_v26 = vpop.permute.xlu0 %503 }
 0x6a1   :  { %v506_v15 = vpop.permute.xlu1 %505  ;;  %v509_v28 = vmul.f32 %v504_v26, %v449_v53 }
 0x6a2   :  { %v510_v29 = vmul.f32 %v506_v15, %v464_v5  ;;  %v3495_v15 = vmov 3  }
 0x6a3   :  { %v517_v30 = vrot.slane %v509_v28, 2  ;;  %3112 = vset.pattern.permute.xlu1 %v3495_v15  ;;  %3111 = vset.pattern.permute.xlu2 %v3495_v15 }
 0x6a4   :  { %v518_v31 = vrot.slane %v510_v29, 1 }
 0x6a6   :  { %v519_v9 = vsel %vm237_vm9, %v518_v31, %v517_v30 }
 0x6a7   :  { %520 = vrot.lane.b32.xlu0 %v519_v9, %s3491_s7 }
 0x6a9   :  { %v526_v33 = vpop.permute.xlu1 %525 }
 0x6aa   :  { %v539_v35 = vmul.f32 %v526_v33, %v3682_v21  ;;  %v528_v39 = vmul.f32 %v526_v33, %v3688_v27 }
 0x6ac   :  { %v3713_v36 = vadd.f32 %v539_v35, %v538_v34 }
 0x6ae   :  { %v611_v37 = vrot.slane %v3713_v36, 5  ;;  %v612_v51 = vrot.slane %v3713_v36, 6 }
 0x6b0   :  { %613 = vrot.lane.b32.xlu2 %v611_v37, %s3491_s7 }
 0x70a   :  { %v614_v28 = vpop.permute.xlu2 %613 }
 0x719   :  { %v521_v38 = vpop.permute.xlu0 %520 }
 0x71a   :  { %v523_v40 = vmul.f32 %v521_v38, %v513_v25 }
 0x71c   :  { %v3718_v41 = vadd.f32 %v528_v39, %v523_v40  ;;  %v542_v42 = vrot.slane %v523_v40, 1  ;;  %544 = vst.msk [vmem:[#allocation2 + $0x2] sm:$0x1] %vm263_vm10, %v523_v40 }
 0x71e   :  { %545 = vst.msk [vmem:[#allocation2 + $0xa] sm:$0x1] %vm263_vm10, %v542_v42  ;;  %v546_v21 = vpack.c.bf16 %v3718_v41, %v3718_v41 }
 0x720   :  { %2932 = vmatmul.msk.bf16.vlgmr.msrb.gmra.mxu0 %vm97_vm0, %v546_v21 }
 0x79d   :  { %v559_v43 = vpop.f32.mrf.mxu0 }
 0x79e   :  { %v564_v44 = vrot.slane %v559_v43, 5  ;;  %v565_v45 = vrot.slane %v559_v43, 6 }
 0x7a0   :  { %v568_v46 = vadd.f32 %v564_v44, %v3629_v14  ;;  %v569_v27 = vadd.f32 %v565_v45, %v3626_v12 }
 0x7a2   :  { %3211 = vtanh.f32 %v568_v46  ;;  %v2933_v52 = vmul.f32 -1.442695, %v568_v46  ;;  %v2934_v53 = vmul.f32 -1.442695, %v569_v27 }
 0x7a3   :  { %3213 = vtanh.f32 %v569_v27 }
 0x7a4   :  { %3215 = vpow2.f32 %v2933_v52 }
 0x7a5   :  { %v561_v47 = vpop.f32.mrf.mxu0  ;;  %3217 = vpow2.f32 %v2934_v53 }
 0x7a8   :  { %v3212_v48 = vpop.eup %3211 }
 0x7a9   :  { %v3214_v49 = vpop.eup %3213  ;;  %623 = vrot.lane.b32.xlu0 %v3212_v48, %s3490_s26 }
 0x7aa   :  { %625 = vrot.lane.b32.xlu1 %v3214_v49, %s3490_s26  ;;  %v3216_v55 = vpop.eup %3215 }
 0x7ab   :  { %v3218_v56 = vpop.eup %3217  ;;  %v576_v57 = vadd.f32 1.0, %v3216_v55 }
 0x7ac   :  { %v577_v60 = vadd.f32 1.0, %v3218_v56 }
 0x7ad   :  { %3219 = vrcp.f32 %v576_v57  ;;  %v589_v8 = vand.u32 2147483648, %v576_v57  ;;  %vm583_vm1 = vweird.f32 %v576_v57  ;;  %v587_v11 = vand.u32 2147483647, %v576_v57 }
 0x7ae   :  { %3221 = vrcp.f32 %v577_v60  ;;  %v604_v10 = vand.u32 2147483648, %v577_v60  ;;  %vm598_vm2 = vweird.f32 %v577_v60  ;;  %v602_v13 = vand.u32 2147483647, %v577_v60 }
 0x7af   :  { %v590_v18 = vor.u32 1.1754944e-38, %v589_v8  ;;  %vm588_vm5 = vcmp.eq.f32.partialorder %v587_v11, 8.507059e+37 }
 0x7b0   :  { %v605_v19 = vor.u32 1.1754944e-38, %v604_v10  ;;  %vm603_vm6 = vcmp.eq.f32.partialorder %v602_v13, 8.507059e+37 }
 0x7b1   :  { %615 = vrot.lane.b32.xlu0 %v612_v51, %s3491_s7 }
 0x7b3   :  { %v3220_v61 = vpop.eup %3219 }
 0x7b4   :  { %v3222_v62 = vpop.eup %3221  ;;  %v579_v63 = vmul.f32 %v3220_v61, %v576_v57  ;;  %vm584_vm14 = vweird.f32 %v3220_v61 }
 0x7b5   :  { %v594_v0 = vmul.f32 %v3222_v62, %v577_v60  ;;  %vm599_vm15 = vweird.f32 %v3222_v62  ;;  %vm585_vm3 = vmor %vm583_vm1, %vm584_vm14 }
 0x7b6   :  { %v580_v1 = vsub.f32 1.0, %v579_v63  ;;  %vm600_vm4 = vmor %vm598_vm2, %vm599_vm15 }
 0x7b7   :  { %v595_v2 = vsub.f32 1.0, %v594_v0 }
 0x7b8   :  { %v581_v3 = vmul.f32 %v3220_v61, %v580_v1 }
 0x7b9   :  { %v596_v5 = vmul.f32 %v3222_v62, %v595_v2 }
 0x7ba   :  { %v582_v6 = vadd.f32 %v3220_v61, %v581_v3 }
 0x7bb   :  { %v597_v7 = vadd.f32 %v3222_v62, %v596_v5 }
 0x7bc   :  { %v586_v16 = vsel %vm585_vm3, %v3220_v61, %v582_v6 }
 0x7bd   :  { %v601_v17 = vsel %vm600_vm4, %v3222_v62, %v597_v7  ;;  %v591_v22 = vsel %vm588_vm5, %v590_v18, %v586_v16 }
 0x7be   :  { %v606_v24 = vsel %vm603_vm6, %v605_v19, %v601_v17  ;;  %v619_v33 = vmul.f32 %v614_v28, %v591_v22 }
 0x81b   :  { %v624_v20 = vpop.permute.xlu0 %623 }
 0x81c   :  { %v626_v23 = vpop.permute.xlu1 %625  ;;  %v629_v25 = vmul.f32 %v624_v20, %v591_v22 }
 0x81d   :  { %v630_v26 = vmul.f32 %v626_v23, %v606_v24 }
 0x81e   :  { %633 = vrot.lane.b32.xlu1 %v629_v25, %s3491_s7 }
 0x81f   :  { %635 = vrot.lane.b32.xlu2 %v630_v26, %s3491_s7 }
 0x823   :  { %v616_v29 = vpop.permute.xlu0 %615 }
 0x824   :  { %v620_v30 = vmul.f32 %v616_v29, %v606_v24 }
 0x827   :  { %654 = vperm.xlu2 %3111, %v3642_v58  }
 0x879   :  { %v636_v31 = vpop.permute.xlu2 %635 }
 0x87a   :  { %v640_v9 = vadd.f32 %v636_v31, %v620_v30 }
 0x87c   :  { %3223 = vtanh.f32 %v640_v9  ;;  %v675_v37 = vrot.slane %v640_v9, 2 }
 0x881   :  { %v655_v42 = vpop.permute.xlu2 %654 }
 0x882   :  { %v3224_v32 = vpop.eup %3223 }
 0x883   :  { %647 = vrot.lane.b32.xlu1 %v3224_v32, %s3490_s26 }
 0x88b   :  { %667 = vperm.xlu1 %3112, %v3646_v59  }
 0x890   :  { %v634_v34 = vpop.permute.xlu1 %633 }
 0x891   :  { %v639_v35 = vadd.f32 %v634_v34, %v619_v33 }
 0x893   :  { %3225 = vtanh.f32 %v639_v35  ;;  %v674_v38 = vrot.slane %v639_v35, 3 }
 0x895   :  { %v676_v39 = vsel %vm237_vm9, %v675_v37, %v674_v38 }
 0x896   :  { %677 = vrot.lane.b32.xlu2 %v676_v39, %s3492_s0 }
 0x899   :  { %v3226_v40 = vpop.eup %3225 }
 0x89a   :  { %645 = vrot.lane.b32.xlu0 %v3226_v40, %s3490_s26 }
 0x8f0   :  { %v678_v43 = vpop.permute.xlu2 %677 }
 0x8f1   :  { %v680_v45 = vmul.f32 %v678_v43, %v655_v42 }
 0x8f5   :  { %v648_v21 = vpop.permute.xlu1 %647 }
 0x8f6   :  { %v652_v48 = vmul.f32 %v648_v21, %v606_v24 }
 0x8f8   :  { %v660_v52 = vrot.slane %v652_v48, 2 }
 0x8fd   :  { %v668_v44 = vpop.permute.xlu1 %667 }
 0x8fe   :  { %v681_v46 = vmul.f32 %v668_v44, %v3713_v36  ;;  %v670_v57 = vmul.f32 %v668_v44, %v3718_v41  ;;  %v3496_v44 = vmov 4  }
 0x8ff   :  { %3114 = vset.pattern.permute.xlu1 %v3496_v44  ;;  %3113 = vset.pattern.permute.xlu2 %v3496_v44 }
 0x900   :  { %v3742_v27 = vadd.f32 %v681_v46, %v680_v45  ;;  %3140 = vset.pattern.permute.xlu0 %v3496_v44 }
 0x902   :  { %v753_v47 = vrot.slane %v3742_v27, 4  ;;  %v754_v7 = vrot.slane %v3742_v27, 5 }
 0x904   :  { %755 = vrot.lane.b32.xlu2 %v753_v47, %s3491_s7 }
 0x90c   :  { %v646_v49 = vpop.permute.xlu0 %645 }
 0x90d   :  { %v651_v51 = vmul.f32 %v646_v49, %v591_v22 }
 0x90f   :  { %v659_v53 = vrot.slane %v651_v51, 3 }
 0x911   :  { %v661_v55 = vsel %vm237_vm9, %v660_v52, %v659_v53 }
 0x912   :  { %662 = vrot.lane.b32.xlu0 %v661_v55, %s3491_s7 }
 0x95e   :  { %v756_v45 = vpop.permute.xlu2 %755 }
 0x984   :  { %v663_v56 = vpop.permute.xlu0 %662 }
 0x985   :  { %v665_v60 = vmul.f32 %v663_v56, %v655_v42 }
 0x987   :  { %v3749_v36 = vadd.f32 %v670_v57, %v665_v60  ;;  %v684_v61 = vrot.slane %v665_v60, 1  ;;  %686 = vst.msk [vmem:[#allocation2 + $0x3] sm:$0x1] %vm263_vm10, %v665_v60 }
 0x989   :  { %687 = vst.msk [vmem:[#allocation2 + $0xb] sm:$0x1] %vm263_vm10, %v684_v61  ;;  %v688_v62 = vpack.c.bf16 %v3749_v36, %v3749_v36 }
 0x98b   :  { %2935 = vmatmul.msk.bf16.vlgmr.msrb.gmra.mxu1 %vm97_vm0, %v688_v62 }
 0xa08   :  { %v701_v63 = vpop.f32.mrf.mxu1 }
 0xa09   :  { %v706_v0 = vrot.slane %v701_v63, 4  ;;  %v707_v1 = vrot.slane %v701_v63, 5 }
 0xa0b   :  { %v710_v2 = vadd.f32 %v706_v0, %v3629_v14  ;;  %v711_v41 = vadd.f32 %v707_v1, %v3626_v12 }
 0xa0d   :  { %3227 = vtanh.f32 %v710_v2  ;;  %v2936_v8 = vmul.f32 -1.442695, %v710_v2  ;;  %v2937_v10 = vmul.f32 -1.442695, %v711_v41 }
 0xa0e   :  { %3229 = vtanh.f32 %v711_v41 }
 0xa0f   :  { %3231 = vpow2.f32 %v2936_v8 }
 0xa10   :  { %v703_v3 = vpop.f32.mrf.mxu1  ;;  %3233 = vpow2.f32 %v2937_v10 }
 0xa13   :  { %v3228_v5 = vpop.eup %3227 }
 0xa14   :  { %v3230_v6 = vpop.eup %3229  ;;  %765 = vrot.lane.b32.xlu0 %v3228_v5, %s3490_s26 }
 0xa15   :  { %767 = vrot.lane.b32.xlu1 %v3230_v6, %s3490_s26  ;;  %v3232_v11 = vpop.eup %3231 }
 0xa16   :  { %v3234_v13 = vpop.eup %3233  ;;  %v718_v16 = vadd.f32 1.0, %v3232_v11 }
 0xa17   :  { %v719_v17 = vadd.f32 1.0, %v3234_v13 }
 0xa18   :  { %3235 = vrcp.f32 %v718_v16  ;;  %v731_v30 = vand.u32 2147483648, %v718_v16  ;;  %vm725_vm11 = vweird.f32 %v718_v16  ;;  %v729_v9 = vand.u32 2147483647, %v718_v16 }
 0xa19   :  { %3237 = vrcp.f32 %v719_v17  ;;  %v746_v31 = vand.u32 2147483648, %v719_v17  ;;  %vm740_vm12 = vweird.f32 %v719_v17  ;;  %v744_v32 = vand.u32 2147483647, %v719_v17 }
 0xa1a   :  { %v732_v35 = vor.u32 1.1754944e-38, %v731_v30  ;;  %vm730_vm15 = vcmp.eq.f32.partialorder %v729_v9, 8.507059e+37 }
 0xa1b   :  { %v747_v37 = vor.u32 1.1754944e-38, %v746_v31  ;;  %vm745_vm1 = vcmp.eq.f32.partialorder %v744_v32, 8.507059e+37 }
 0xa1c   :  { %757 = vrot.lane.b32.xlu0 %v754_v7, %s3491_s7 }
 0xa1e   :  { %v3236_v18 = vpop.eup %3235 }
 0xa1f   :  { %v3238_v19 = vpop.eup %3237  ;;  %v721_v20 = vmul.f32 %v3236_v18, %v718_v16  ;;  %vm726_vm7 = vweird.f32 %v3236_v18 }
 0xa20   :  { %v736_v22 = vmul.f32 %v3238_v19, %v719_v17  ;;  %vm741_vm8 = vweird.f32 %v3238_v19  ;;  %vm727_vm13 = vmor %vm725_vm11, %vm726_vm7 }
 0xa21   :  { %v722_v23 = vsub.f32 1.0, %v721_v20  ;;  %vm742_vm14 = vmor %vm740_vm12, %vm741_vm8 }
 0xa22   :  { %v737_v24 = vsub.f32 1.0, %v736_v22 }
 0xa23   :  { %v723_v25 = vmul.f32 %v3236_v18, %v722_v23 }
 0xa24   :  { %v738_v26 = vmul.f32 %v3238_v19, %v737_v24 }
 0xa25   :  { %v724_v28 = vadd.f32 %v3236_v18, %v723_v25 }
 0xa26   :  { %v739_v29 = vadd.f32 %v3238_v19, %v738_v26 }
 0xa27   :  { %v728_v33 = vsel %vm727_vm13, %v3236_v18, %v724_v28 }
 0xa28   :  { %v743_v34 = vsel %vm742_vm14, %v3238_v19, %v739_v29  ;;  %v733_v39 = vsel %vm730_vm15, %v732_v35, %v728_v33 }
 0xa29   :  { %v748_v42 = vsel %vm745_vm1, %v747_v37, %v743_v34  ;;  %v761_v52 = vmul.f32 %v756_v45, %v733_v39 }
 0xa86   :  { %v766_v38 = vpop.permute.xlu0 %765 }
 0xa87   :  { %v768_v40 = vpop.permute.xlu1 %767  ;;  %v771_v21 = vmul.f32 %v766_v38, %v733_v39 }
 0xa88   :  { %v772_v43 = vmul.f32 %v768_v40, %v748_v42 }
 0xa89   :  { %775 = vrot.lane.b32.xlu1 %v771_v21, %s3491_s7 }
 0xa8a   :  { %777 = vrot.lane.b32.xlu2 %v772_v43, %s3491_s7 }
 0xa8e   :  { %v758_v46 = vpop.permute.xlu0 %757 }
 0xa8f   :  { %v762_v47 = vmul.f32 %v758_v46, %v748_v42 }
 0xa92   :  { %796 = vperm.xlu2 %3113, %v3642_v58  }
 0xae4   :  { %v778_v48 = vpop.permute.xlu2 %777 }
 0xae5   :  { %v782_v49 = vadd.f32 %v778_v48, %v762_v47 }
 0xae7   :  { %3239 = vtanh.f32 %v782_v49  ;;  %v817_v56 = vrot.slane %v782_v49, 3 }
 0xaec   :  { %v797_v61 = vpop.permute.xlu2 %796 }
 0xaed   :  { %v3240_v51 = vpop.eup %3239 }
 0xaee   :  { %789 = vrot.lane.b32.xlu1 %v3240_v51, %s3490_s26 }
 0xaf6   :  { %809 = vperm.xlu1 %3114, %v3646_v59  }
 0xafb   :  { %v776_v53 = vpop.permute.xlu1 %775 }
 0xafc   :  { %v781_v55 = vadd.f32 %v776_v53, %v761_v52 }
 0xafe   :  { %3241 = vtanh.f32 %v781_v55  ;;  %v816_v57 = vrot.slane %v781_v55, 4 }
 0xb00   :  { %v818_v58 = vsel %vm237_vm9, %v817_v56, %v816_v57 }
 0xb01   :  { %819 = vrot.lane.b32.xlu2 %v818_v58, %s3492_s0 }
 0xb04   :  { %v3242_v60 = vpop.eup %3241 }
 0xb05   :  { %787 = vrot.lane.b32.xlu0 %v3242_v60, %s3490_s26 }
 0xb5b   :  { %v820_v63 = vpop.permute.xlu2 %819 }
 0xb5c   :  { %v822_v1 = vmul.f32 %v820_v63, %v797_v61 }
 0xb60   :  { %v790_v62 = vpop.permute.xlu1 %789 }
 0xb61   :  { %v794_v5 = vmul.f32 %v790_v62, %v748_v42 }
 0xb63   :  { %v802_v8 = vrot.slane %v794_v5, 3 }
 0xb68   :  { %v810_v0 = vpop.permute.xlu1 %809 }
 0xb69   :  { %v823_v2 = vmul.f32 %v810_v0, %v3742_v27  ;;  %v812_v16 = vmul.f32 %v810_v0, %v3749_v36  ;;  %v3497_v0 = vmov 5  }
 0xb6a   :  { %3116 = vset.pattern.permute.xlu1 %v3497_v0  ;;  %3115 = vset.pattern.permute.xlu2 %v3497_v0 }
 0xb6b   :  { %v3774_v41 = vadd.f32 %v823_v2, %v822_v1  ;;  %v3801_v1 = vld [vmem:[%s4291_s29] sm:$0x3] }
 0xb6d   :  { %v895_v3 = vrot.slane %v3774_v41, 3  ;;  %v896_v29 = vrot.slane %v3774_v41, 4 }
 0xb6f   :  { %897 = vrot.lane.b32.xlu2 %v895_v3, %s3491_s7 }
 0xb77   :  { %v788_v6 = vpop.permute.xlu0 %787 }
 0xb78   :  { %v793_v7 = vmul.f32 %v788_v6, %v733_v39 }
 0xb7a   :  { %v801_v10 = vrot.slane %v793_v7, 4 }
 0xb7c   :  { %v803_v11 = vsel %vm237_vm9, %v802_v8, %v801_v10 }
 0xb7d   :  { %804 = vrot.lane.b32.xlu0 %v803_v11, %s3491_s7 }
 0xbc9   :  { %v898_v2 = vpop.permute.xlu2 %897 }
 0xbef   :  { %v805_v13 = vpop.permute.xlu0 %804 }
 0xbf0   :  { %v807_v17 = vmul.f32 %v805_v13, %v797_v61 }
 0xbf2   :  { %v3781_v27 = vadd.f32 %v812_v16, %v807_v17  ;;  %v826_v18 = vrot.slane %v807_v17, 1  ;;  %828 = vst.msk [vmem:[#allocation2 + $0x4] sm:$0x1] %vm263_vm10, %v807_v17 }
 0xbf4   :  { %829 = vst.msk [vmem:[#allocation2 + $0xc] sm:$0x1] %vm263_vm10, %v826_v18  ;;  %v830_v19 = vpack.c.bf16 %v3781_v27, %v3781_v27 }
 0xbf6   :  { %2938 = vmatmul.msk.bf16.vlgmr.msrb.gmra.mxu2 %vm97_vm0, %v830_v19 }
 0xc79   :  { %v843_v20 = vpop.f32.mrf.mxu2 }
 0xc7a   :  { %v848_v22 = vrot.slane %v843_v20, 3  ;;  %v849_v23 = vrot.slane %v843_v20, 4 }
 0xc7c   :  { %v852_v24 = vadd.f32 %v848_v22, %v3629_v14  ;;  %v853_v36 = vadd.f32 %v849_v23, %v3626_v12 }
 0xc7e   :  { %3243 = vtanh.f32 %v852_v24  ;;  %v2939_v30 = vmul.f32 -1.442695, %v852_v24  ;;  %v2940_v31 = vmul.f32 -1.442695, %v853_v36 }
 0xc7f   :  { %3245 = vtanh.f32 %v853_v36 }
 0xc80   :  { %3247 = vpow2.f32 %v2939_v30 }
 0xc81   :  { %v845_v25 = vpop.f32.mrf.mxu2  ;;  %3249 = vpow2.f32 %v2940_v31 }
 0xc84   :  { %v3244_v26 = vpop.eup %3243 }
 0xc85   :  { %v3246_v28 = vpop.eup %3245  ;;  %907 = vrot.lane.b32.xlu0 %v3244_v26, %s3490_s26 }
 0xc86   :  { %909 = vrot.lane.b32.xlu1 %v3246_v28, %s3490_s26  ;;  %v3248_v9 = vpop.eup %3247 }
 0xc87   :  { %v3250_v32 = vpop.eup %3249  ;;  %v860_v33 = vadd.f32 1.0, %v3248_v9 }
 0xc88   :  { %v861_v34 = vadd.f32 1.0, %v3250_v32 }
 0xc89   :  { %3251 = vrcp.f32 %v860_v33  ;;  %v873_v47 = vand.u32 2147483648, %v860_v33  ;;  %vm867_vm4 = vweird.f32 %v860_v33  ;;  %v871_v49 = vand.u32 2147483647, %v860_v33 }
 0xc8a   :  { %3253 = vrcp.f32 %v861_v34  ;;  %v888_v48 = vand.u32 2147483648, %v861_v34  ;;  %vm882_vm5 = vweird.f32 %v861_v34  ;;  %v886_v51 = vand.u32 2147483647, %v861_v34 }
 0xc8b   :  { %v874_v55 = vor.u32 1.1754944e-38, %v873_v47  ;;  %vm872_vm8 = vcmp.eq.f32.partialorder %v871_v49, 8.507059e+37 }
 0xc8c   :  { %v889_v56 = vor.u32 1.1754944e-38, %v888_v48  ;;  %vm887_vm11 = vcmp.eq.f32.partialorder %v886_v51, 8.507059e+37 }
 0xc8d   :  { %899 = vrot.lane.b32.xlu0 %v896_v29, %s3491_s7 }
 0xc8f   :  { %v3252_v35 = vpop.eup %3251 }
 0xc90   :  { %v3254_v37 = vpop.eup %3253  ;;  %v863_v38 = vmul.f32 %v3252_v35, %v860_v33  ;;  %vm868_vm2 = vweird.f32 %v3252_v35 }
 0xc91   :  { %v878_v39 = vmul.f32 %v3254_v37, %v861_v34  ;;  %vm883_vm3 = vweird.f32 %v3254_v37  ;;  %vm869_vm6 = vmor %vm867_vm4, %vm868_vm2 }
 0xc92   :  { %v864_v40 = vsub.f32 1.0, %v863_v38  ;;  %vm884_vm7 = vmor %vm882_vm5, %vm883_vm3 }
 0xc93   :  { %v879_v42 = vsub.f32 1.0, %v878_v39 }
 0xc94   :  { %v865_v21 = vmul.f32 %v3252_v35, %v864_v40 }
 0xc95   :  { %v880_v43 = vmul.f32 %v3254_v37, %v879_v42 }
 0xc96   :  { %v866_v45 = vadd.f32 %v3252_v35, %v865_v21 }
 0xc97   :  { %v881_v46 = vadd.f32 %v3254_v37, %v880_v43 }
 0xc98   :  { %v870_v52 = vsel %vm869_vm6, %v3252_v35, %v866_v45 }
 0xc99   :  { %v885_v53 = vsel %vm884_vm7, %v3254_v37, %v881_v46  ;;  %v875_v58 = vsel %vm872_vm8, %v874_v55, %v870_v52 }
 0xc9a   :  { %v890_v61 = vsel %vm887_vm11, %v889_v56, %v885_v53  ;;  %v903_v10 = vmul.f32 %v898_v2, %v875_v58 }
 0xcf7   :  { %v908_v57 = vpop.permute.xlu0 %907 }
 0xcf8   :  { %v910_v60 = vpop.permute.xlu1 %909  ;;  %v913_v62 = vmul.f32 %v908_v57, %v875_v58 }
 0xcf9   :  { %v914_v63 = vmul.f32 %v910_v60, %v890_v61 }
 0xcfa   :  { %917 = vrot.lane.b32.xlu1 %v913_v62, %s3491_s7 }
 0xcfb   :  { %919 = vrot.lane.b32.xlu2 %v914_v63, %s3491_s7 }
 0xcff   :  { %v900_v3 = vpop.permute.xlu0 %899 }
 0xd00   :  { %v904_v5 = vmul.f32 %v900_v3, %v890_v61 }
 0xd03   :  { %938 = vperm.xlu2 %3115, %v3801_v1  }
 0xd55   :  { %v920_v6 = vpop.permute.xlu2 %919 }
 0xd56   :  { %v924_v7 = vadd.f32 %v920_v6, %v904_v5 }
 0xd58   :  { %3255 = vtanh.f32 %v924_v7  ;;  %v959_v16 = vrot.slane %v924_v7, 4 }
 0xd5d   :  { %v939_v20 = vpop.permute.xlu2 %938 }
 0xd5e   :  { %v3256_v8 = vpop.eup %3255 }
 0xd5f   :  { %931 = vrot.lane.b32.xlu1 %v3256_v8, %s3490_s26 }
 0xd67   :  { %951 = vperm.xlu1 %3116, %v3646_v59  }
 0xd6c   :  { %v918_v11 = vpop.permute.xlu1 %917 }
 0xd6d   :  { %v923_v13 = vadd.f32 %v918_v11, %v903_v10 }
 0xd6f   :  { %3257 = vtanh.f32 %v923_v13  ;;  %v958_v17 = vrot.slane %v923_v13, 5 }
 0xd71   :  { %v960_v18 = vsel %vm237_vm9, %v959_v16, %v958_v17 }
 0xd72   :  { %961 = vrot.lane.b32.xlu2 %v960_v18, %s3492_s0 }
 0xd75   :  { %v3258_v19 = vpop.eup %3257 }
 0xd76   :  { %929 = vrot.lane.b32.xlu0 %v3258_v19, %s3490_s26 }
 0xdcc   :  { %v962_v23 = vpop.permute.xlu2 %961 }
 0xdcd   :  { %v964_v36 = vmul.f32 %v962_v23, %v939_v20 }
 0xdd1   :  { %v932_v22 = vpop.permute.xlu1 %931 }
 0xdd2   :  { %v936_v29 = vmul.f32 %v932_v22, %v890_v61 }
 0xdd4   :  { %v944_v9 = vrot.slane %v936_v29, 4 }
 0xdd9   :  { %v952_v24 = vpop.permute.xlu1 %951 }
 0xdda   :  { %v965_v25 = vmul.f32 %v952_v24, %v3774_v41  ;;  %v954_v35 = vmul.f32 %v952_v24, %v3781_v27 }
 0xddc   :  { %v3810_v26 = vadd.f32 %v965_v25, %v964_v36  ;;  %v3498_v25 = vmov 6  }
 0xddd   :  { %3118 = vset.pattern.permute.xlu1 %v3498_v25  ;;  %3117 = vset.pattern.permute.xlu2 %v3498_v25 }
 0xdde   :  { %v1037_v28 = vrot.slane %v3810_v26, 2  ;;  %v1038_v48 = vrot.slane %v3810_v26, 3 }
 0xde0   :  { %1039 = vrot.lane.b32.xlu2 %v1037_v28, %s3491_s7 }
 0xde8   :  { %v930_v30 = vpop.permute.xlu0 %929 }
 0xde9   :  { %v935_v31 = vmul.f32 %v930_v30, %v875_v58 }
 0xdeb   :  { %v943_v32 = vrot.slane %v935_v31, 5 }
 0xded   :  { %v945_v33 = vsel %vm237_vm9, %v944_v9, %v943_v32 }
 0xdee   :  { %946 = vrot.lane.b32.xlu0 %v945_v33, %s3491_s7 }
 0xe3a   :  { %v1040_v28 = vpop.permute.xlu2 %1039 }
 0xe60   :  { %v947_v34 = vpop.permute.xlu0 %946 }
 0xe61   :  { %v949_v37 = vmul.f32 %v947_v34, %v939_v20 }
 0xe63   :  { %v3817_v41 = vadd.f32 %v954_v35, %v949_v37  ;;  %v968_v38 = vrot.slane %v949_v37, 1  ;;  %970 = vst.msk [vmem:[#allocation2 + $0x5] sm:$0x1] %vm263_vm10, %v949_v37 }
 0xe65   :  { %971 = vst.msk [vmem:[#allocation2 + $0xd] sm:$0x1] %vm263_vm10, %v968_v38  ;;  %v972_v39 = vpack.c.bf16 %v3817_v41, %v3817_v41 }
 0xe67   :  { %2941 = vmatmul.msk.bf16.vlgmr.msrb.gmra.mxu3 %vm97_vm0, %v972_v39 }
 0xeea   :  { %v985_v40 = vpop.f32.mrf.mxu3 }
 0xeeb   :  { %v990_v42 = vrot.slane %v985_v40, 2  ;;  %v991_v21 = vrot.slane %v985_v40, 3 }
 0xeed   :  { %v994_v43 = vadd.f32 %v990_v42, %v3629_v14  ;;  %v995_v27 = vadd.f32 %v991_v21, %v3626_v12 }
 0xeef   :  { %3259 = vtanh.f32 %v994_v43  ;;  %v2942_v49 = vmul.f32 -1.442695, %v994_v43  ;;  %v2943_v51 = vmul.f32 -1.442695, %v995_v27 }
 0xef0   :  { %3261 = vtanh.f32 %v995_v27 }
 0xef1   :  { %3263 = vpow2.f32 %v2942_v49 }
 0xef2   :  { %v987_v45 = vpop.f32.mrf.mxu3  ;;  %3265 = vpow2.f32 %v2943_v51 }
 0xef5   :  { %v3260_v46 = vpop.eup %3259 }
 0xef6   :  { %v3262_v47 = vpop.eup %3261  ;;  %1049 = vrot.lane.b32.xlu0 %v3260_v46, %s3490_s26 }
 0xef7   :  { %1051 = vrot.lane.b32.xlu1 %v3262_v47, %s3490_s26  ;;  %v3264_v52 = vpop.eup %3263 }
 0xef8   :  { %v3266_v53 = vpop.eup %3265  ;;  %v1002_v55 = vadd.f32 1.0, %v3264_v52 }
 0xef9   :  { %v1003_v56 = vadd.f32 1.0, %v3266_v53 }
 0xefa   :  { %3267 = vrcp.f32 %v1002_v55  ;;  %v1015_v7 = vand.u32 2147483648, %v1002_v55  ;;  %vm1009_vm14 = vweird.f32 %v1002_v55  ;;  %v1013_v10 = vand.u32 2147483647, %v1002_v55 }
 0xefb   :  { %3269 = vrcp.f32 %v1003_v56  ;;  %v1030_v8 = vand.u32 2147483648, %v1003_v56  ;;  %vm1024_vm15 = vweird.f32 %v1003_v56  ;;  %v1028_v11 = vand.u32 2147483647, %v1003_v56 }
 0xefc   :  { %v1016_v17 = vor.u32 1.1754944e-38, %v1015_v7  ;;  %vm1014_vm3 = vcmp.eq.f32.partialorder %v1013_v10, 8.507059e+37 }
 0xefd   :  { %v1031_v18 = vor.u32 1.1754944e-38, %v1030_v8  ;;  %vm1029_vm4 = vcmp.eq.f32.partialorder %v1028_v11, 8.507059e+37 }
 0xefe   :  { %1041 = vrot.lane.b32.xlu0 %v1038_v48, %s3491_s7 }
 0xf00   :  { %v3268_v57 = vpop.eup %3267 }
 0xf01   :  { %v3270_v58 = vpop.eup %3269  ;;  %v1005_v60 = vmul.f32 %v3268_v57, %v1002_v55  ;;  %vm1010_vm12 = vweird.f32 %v3268_v57 }
 0xf02   :  { %v1020_v61 = vmul.f32 %v3270_v58, %v1003_v56  ;;  %vm1025_vm13 = vweird.f32 %v3270_v58  ;;  %vm1011_vm1 = vmor %vm1009_vm14, %vm1010_vm12 }
 0xf03   :  { %v1006_v62 = vsub.f32 1.0, %v1005_v60  ;;  %vm1026_vm2 = vmor %vm1024_vm15, %vm1025_vm13 }
 0xf04   :  { %v1021_v63 = vsub.f32 1.0, %v1020_v61 }
 0xf05   :  { %v1007_v2 = vmul.f32 %v3268_v57, %v1006_v62 }
 0xf06   :  { %v1022_v3 = vmul.f32 %v3270_v58, %v1021_v63 }
 0xf07   :  { %v1008_v5 = vadd.f32 %v3268_v57, %v1007_v2 }
 0xf08   :  { %v1023_v6 = vadd.f32 %v3270_v58, %v1022_v3 }
 0xf09   :  { %v1012_v13 = vsel %vm1011_vm1, %v3268_v57, %v1008_v5 }
 0xf0a   :  { %v1027_v16 = vsel %vm1026_vm2, %v3270_v58, %v1023_v6  ;;  %v1017_v20 = vsel %vm1014_vm3, %v1016_v17, %v1012_v13 }
 0xf0b   :  { %v1032_v23 = vsel %vm1029_vm4, %v1031_v18, %v1027_v16  ;;  %v1045_v33 = vmul.f32 %v1040_v28, %v1017_v20 }
 0xf68   :  { %v1050_v19 = vpop.permute.xlu0 %1049 }
 0xf69   :  { %v1052_v22 = vpop.permute.xlu1 %1051  ;;  %v1055_v24 = vmul.f32 %v1050_v19, %v1017_v20 }
 0xf6a   :  { %v1056_v36 = vmul.f32 %v1052_v22, %v1032_v23 }
 0xf6b   :  { %1059 = vrot.lane.b32.xlu1 %v1055_v24, %s3491_s7 }
 0xf6c   :  { %1061 = vrot.lane.b32.xlu2 %v1056_v36, %s3491_s7 }
 0xf70   :  { %v1042_v29 = vpop.permute.xlu0 %1041 }
 0xf71   :  { %v1046_v30 = vmul.f32 %v1042_v29, %v1032_v23 }
 0xf74   :  { %1080 = vperm.xlu2 %3117, %v3801_v1  }
 0xfc6   :  { %v1062_v31 = vpop.permute.xlu2 %1061 }
 0xfc7   :  { %v1066_v9 = vadd.f32 %v1062_v31, %v1046_v30 }
 0xfc9   :  { %3271 = vtanh.f32 %v1066_v9  ;;  %v1101_v37 = vrot.slane %v1066_v9, 5 }
 0xfce   :  { %v1081_v42 = vpop.permute.xlu2 %1080 }
 0xfcf   :  { %v3272_v32 = vpop.eup %3271 }
 0xfd0   :  { %1073 = vrot.lane.b32.xlu1 %v3272_v32, %s3490_s26 }
 0xfd8   :  { %1093 = vperm.xlu1 %3118, %v3646_v59  }
 0xfdd   :  { %v1060_v34 = vpop.permute.xlu1 %1059 }
 0xfde   :  { %v1065_v35 = vadd.f32 %v1060_v34, %v1045_v33 }
 0xfe0   :  { %3273 = vtanh.f32 %v1065_v35  ;;  %v1100_v38 = vrot.slane %v1065_v35, 6 }
 0xfe2   :  { %v1102_v39 = vsel %vm237_vm9, %v1101_v37, %v1100_v38 }
 0xfe3   :  { %1103 = vrot.lane.b32.xlu2 %v1102_v39, %s3492_s0 }
 0xfe6   :  { %v3274_v40 = vpop.eup %3273 }
 0xfe7   :  { %1071 = vrot.lane.b32.xlu0 %v3274_v40, %s3490_s26 }
0x103d   :  { %v1104_v43 = vpop.permute.xlu2 %1103 }
0x103e   :  { %v1106_v45 = vmul.f32 %v1104_v43, %v1081_v42 }
0x1042   :  { %v1074_v21 = vpop.permute.xlu1 %1073 }
0x1043   :  { %v1078_v49 = vmul.f32 %v1074_v21, %v1032_v23 }
0x1045   :  { %v1086_v53 = vrot.slane %v1078_v49, 5 }
0x104a   :  { %v1094_v27 = vpop.permute.xlu1 %1093 }
0x104b   :  { %v1107_v46 = vmul.f32 %v1094_v27, %v3810_v26  ;;  %v1096_v58 = vmul.f32 %v1094_v27, %v3817_v41 }
0x104d   :  { %v3841_v47 = vadd.f32 %v1107_v46, %v1106_v45  ;;  %v3499_v45 = vmov 7  }
0x104e   :  { %3120 = vset.pattern.permute.xlu1 %v3499_v45  ;;  %3119 = vset.pattern.permute.xlu2 %v3499_v45 }
0x104f   :  { %v1179_v48 = vrot.slane %v3841_v47, 1  ;;  %v1180_v10 = vrot.slane %v3841_v47, 2 }
0x1051   :  { %1181 = vrot.lane.b32.xlu2 %v1179_v48, %s3491_s7 }
0x1059   :  { %v1072_v51 = vpop.permute.xlu0 %1071 }
0x105a   :  { %v1077_v52 = vmul.f32 %v1072_v51, %v1017_v20 }
0x105c   :  { %v1085_v55 = vrot.slane %v1077_v52, 6 }
0x105e   :  { %v1087_v56 = vsel %vm237_vm9, %v1086_v53, %v1085_v55 }
0x105f   :  { %1088 = vrot.lane.b32.xlu0 %v1087_v56, %s3491_s7 }
0x10ab   :  { %v1182_v46 = vpop.permute.xlu2 %1181 }
0x10d1   :  { %v1089_v57 = vpop.permute.xlu0 %1088 }
0x10d2   :  { %v1091_v60 = vmul.f32 %v1089_v57, %v1081_v42 }
0x10d4   :  { %v3848_v26 = vadd.f32 %v1096_v58, %v1091_v60  ;;  %v1110_v61 = vrot.slane %v1091_v60, 1  ;;  %1112 = vst.msk [vmem:[#allocation2 + $0x6] sm:$0x1] %vm263_vm10, %v1091_v60 }
0x10d6   :  { %1113 = vst.msk [vmem:[#allocation2 + $0xe] sm:$0x1] %vm263_vm10, %v1110_v61  ;;  %v1114_v62 = vpack.c.bf16 %v3848_v26, %v3848_v26 }
0x10d8   :  { %2944 = vmatmul.msk.bf16.vlgmr.msra.gmra.mxu0 %vm97_vm0, %v1114_v62 }
0x1155   :  { %v1127_v63 = vpop.f32.mrf.mxu0 }
0x1156   :  { %v1132_v2 = vrot.slane %v1127_v63, 1  ;;  %v1133_v3 = vrot.slane %v1127_v63, 2 }
0x1158   :  { %v1136_v5 = vadd.f32 %v1132_v2, %v3629_v14  ;;  %v1137_v41 = vadd.f32 %v1133_v3, %v3626_v12 }
0x115a   :  { %3275 = vtanh.f32 %v1136_v5  ;;  %v2945_v11 = vmul.f32 -1.442695, %v1136_v5  ;;  %v2946_v13 = vmul.f32 -1.442695, %v1137_v41 }
0x115b   :  { %3277 = vtanh.f32 %v1137_v41 }
0x115c   :  { %3279 = vpow2.f32 %v2945_v11 }
0x115d   :  { %v1129_v6 = vpop.f32.mrf.mxu0  ;;  %3281 = vpow2.f32 %v2946_v13 }
0x1160   :  { %v3276_v7 = vpop.eup %3275 }
0x1161   :  { %v3278_v8 = vpop.eup %3277  ;;  %1191 = vrot.lane.b32.xlu0 %v3276_v7, %s3490_s26 }
0x1162   :  { %1193 = vrot.lane.b32.xlu1 %v3278_v8, %s3490_s26  ;;  %v3280_v14 = vpop.eup %3279 }
0x1163   :  { %v3282_v16 = vpop.eup %3281  ;;  %v1144_v12 = vadd.f32 1.0, %v3280_v14 }
0x1164   :  { %v1145_v17 = vadd.f32 1.0, %v3282_v16  ;;  %v3075_v16 = vld [vmem:[%s4273_s9 + $0x8] sm:$0xff] }
0x1165   :  { %3283 = vrcp.f32 %v1144_v12  ;;  %v1157_v31 = vand.u32 2147483648, %v1144_v12  ;;  %vm1151_vm7 = vweird.f32 %v1144_v12  ;;  %v1155_v32 = vand.u32 2147483647, %v1144_v12  ;;  %1323 = vmatpush.bf16.msra.mxu2 %v3075_v16 }
0x1166   :  { %3285 = vrcp.f32 %v1145_v17  ;;  %v1172_v9 = vand.u32 2147483648, %v1145_v17  ;;  %vm1166_vm8 = vweird.f32 %v1145_v17  ;;  %v1170_v33 = vand.u32 2147483647, %v1145_v17 }
0x1167   :  { %v1158_v37 = vor.u32 1.1754944e-38, %v1157_v31  ;;  %vm1156_vm13 = vcmp.eq.f32.partialorder %v1155_v32, 8.507059e+37 }
0x1168   :  { %v1173_v38 = vor.u32 1.1754944e-38, %v1172_v9  ;;  %vm1171_vm14 = vcmp.eq.f32.partialorder %v1170_v33, 8.507059e+37 }
0x1169   :  { %1183 = vrot.lane.b32.xlu0 %v1180_v10, %s3491_s7 }
0x116b   :  { %v3284_v18 = vpop.eup %3283 }
0x116c   :  { %v3286_v19 = vpop.eup %3285  ;;  %v1147_v20 = vmul.f32 %v3284_v18, %v1144_v12  ;;  %vm1152_vm5 = vweird.f32 %v3284_v18  ;;  %v3067_v12 = vld [vmem:[%s4274_s10 + $0x8] sm:$0xff] }
0x116d   :  { %v1162_v22 = vmul.f32 %v3286_v19, %v1145_v17  ;;  %vm1167_vm6 = vweird.f32 %v3286_v19  ;;  %vm1153_vm11 = vmor %vm1151_vm7, %vm1152_vm5  ;;  %v3072_v17 = vld [vmem:[%s4272_s8] sm:$0xff]  ;;  %1366 = vmatpush.bf16.msra.mxu3 %v3067_v12  ;;  %1507 = vmatpush.bf16.msrb.mxu0 %v3067_v12 }
0x116e   :  { %v1148_v23 = vsub.f32 1.0, %v1147_v20  ;;  %vm1168_vm12 = vmor %vm1166_vm8, %vm1167_vm6  ;;  %v3074_v20 = vld [vmem:[%s4273_s9] sm:$0xff] }
0x116f   :  { %v1163_v24 = vsub.f32 1.0, %v1162_v22  ;;  %1324 = vmatpush.bf16.msra.mxu2 %v3074_v20 }
0x1170   :  { %v1149_v36 = vmul.f32 %v3284_v18, %v1148_v23 }
0x1171   :  { %v1164_v28 = vmul.f32 %v3286_v19, %v1163_v24 }
0x1172   :  { %v1150_v29 = vadd.f32 %v3284_v18, %v1149_v36 }
0x1173   :  { %v1165_v30 = vadd.f32 %v3286_v19, %v1164_v28  ;;  %1787 = vmatpush.bf16.msrb.mxu2 %v3067_v12 }
0x1174   :  { %v1154_v34 = vsel %vm1153_vm11, %v3284_v18, %v1150_v29  ;;  %v3071_v18 = vld [vmem:[%s4292_s27] sm:$0xff] }
0x1175   :  { %v1169_v35 = vsel %vm1168_vm12, %v3286_v19, %v1165_v30  ;;  %v1159_v40 = vsel %vm1156_vm13, %v1158_v37, %v1154_v34  ;;  %v3066_v19 = vld [vmem:[%s4274_s10] sm:$0xff] }
0x1176   :  { %v1174_v21 = vsel %vm1171_vm14, %v1173_v38, %v1169_v35  ;;  %v1187_v55 = vmul.f32 %v1182_v46, %v1159_v40  ;;  %1367 = vmatpush.bf16.msra.mxu3 %v3066_v19  ;;  %1508 = vmatpush.bf16.msrb.mxu0 %v3066_v19  ;;  %v3159_v35 = vld [vmem:[%s4275_s11] ss:$0 sm:$0xff]  ;;  %s3503_s11 = smov [#allocation4]  }
0x1177   :  { %1788 = vmatpush.bf16.msrb.mxu2 %v3066_v19  ;;  %s2871_s21 = sshll.u32 %s3503_s11, 4  ;;  %s2872_s21 = int_to_ptr.vmem [resolvable:$true] %s2871_s21 }
0x117a   :  { %1929 = vmatpush.bf16.msrb.mxu3 %v3067_v12  ;;  %2071 = vmatpush.bf16.msra.mxu0 %v3067_v12 }
0x117e   :  { %1930 = vmatpush.bf16.msrb.mxu3 %v3066_v19  ;;  %2072 = vmatpush.bf16.msra.mxu0 %v3066_v19 }
0x11d3   :  { %v1192_v39 = vpop.permute.xlu0 %1191 }
0x11d4   :  { %v1194_v42 = vpop.permute.xlu1 %1193  ;;  %v1197_v43 = vmul.f32 %v1192_v39, %v1159_v40 }
0x11d5   :  { %v1198_v27 = vmul.f32 %v1194_v42, %v1174_v21 }
0x11d6   :  { %1201 = vrot.lane.b32.xlu1 %v1197_v43, %s3491_s7 }
0x11d7   :  { %1203 = vrot.lane.b32.xlu2 %v1198_v27, %s3491_s7 }
0x11db   :  { %v1184_v48 = vpop.permute.xlu0 %1183 }
0x11dc   :  { %v1188_v49 = vmul.f32 %v1184_v48, %v1174_v21 }
0x11df   :  { %1222 = vperm.xlu2 %3119, %v3801_v1  }
0x11e7   :  { %3121 = vset.pattern.permute.xlu2 %v3489_v4 }
0x1231   :  { %v1204_v51 = vpop.permute.xlu2 %1203 }
0x1232   :  { %v1208_v52 = vadd.f32 %v1204_v51, %v1188_v49 }
0x1234   :  { %3287 = vtanh.f32 %v1208_v52  ;;  %v1243_v58 = vrot.slane %v1208_v52, 6 }
0x1239   :  { %v1223_v62 = vpop.permute.xlu2 %1222 }
0x123a   :  { %v3288_v53 = vpop.eup %3287 }
0x123b   :  { %1215 = vrot.lane.b32.xlu1 %v3288_v53, %s3490_s26 }
0x1243   :  { %1235 = vperm.xlu1 %3120, %v3646_v59  }
0x1248   :  { %v1202_v56 = vpop.permute.xlu1 %1201 }
0x1249   :  { %v1207_v57 = vadd.f32 %v1202_v56, %v1187_v55 }
0x124b   :  { %3289 = vtanh.f32 %v1207_v57  ;;  %v1242_v60 = vrot.slane %v1207_v57, 7  ;;  %3122 = vset.pattern.permute.xlu1 %v3489_v4 }
0x124d   :  { %v1244_v1 = vsel %vm237_vm9, %v1243_v58, %v1242_v60 }
0x124e   :  { %1245 = vrot.lane.b32.xlu2 %v1244_v1, %s3492_s0 }
0x1251   :  { %v3290_v61 = vpop.eup %3289 }
0x1252   :  { %1213 = vrot.lane.b32.xlu0 %v3290_v61, %s3490_s26 }
0x12a8   :  { %v1246_v2 = vpop.permute.xlu2 %1245 }
0x12a9   :  { %v1248_v59 = vmul.f32 %v1246_v2, %v1223_v62 }
0x12ad   :  { %v1216_v63 = vpop.permute.xlu1 %1215 }
0x12ae   :  { %v1220_v7 = vmul.f32 %v1216_v63, %v1174_v21 }
0x12b0   :  { %v1228_v11 = vrot.slane %v1220_v7, 6 }
0x12b5   :  { %v1236_v3 = vpop.permute.xlu1 %1235 }
0x12b6   :  { %v1249_v5 = vmul.f32 %v1236_v3, %v3841_v47  ;;  %v3073_v47 = vld [vmem:[%s4272_s8 + $0x8] sm:$0xff]  ;;  %v1238_v23 = vmul.f32 %v1236_v3, %v3848_v26  ;;  %s3502_s8 = smov 8  }
0x12b7   :  { %1290 = vmatpush.bf16.msra.mxu1 %v3073_v47 }
0x12b8   :  { %v3874_v41 = vadd.f32 %v1249_v5, %v1248_v59 }
0x12ba   :  { %v1420_v6 = vrot.slane %v3874_v41, 1 }
0x12bb   :  { %1291 = vmatpush.bf16.msra.mxu1 %v3072_v17 }
0x12bc   :  { %1423 = vrot.lane.b32.xlu2 %v1420_v6, %s3491_s7 }
0x12be   :  { %2959 = vmatmul.msk.bf16.vlgmr.msra.gmra.mxu1 %vm97_vm0, %v3071_v18 }
0x12bf   :  { %1645 = vmatpush.bf16.msrb.mxu1 %v3067_v12 }
0x12c3   :  { %1646 = vmatpush.bf16.msrb.mxu1 %v3066_v19 }
0x12c4   :  { %v1214_v8 = vpop.permute.xlu0 %1213 }
0x12c5   :  { %v1219_v10 = vmul.f32 %v1214_v8, %v1159_v40 }
0x12c7   :  { %v1227_v13 = vrot.slane %v1219_v10, 7  ;;  %2213 = vmatpush.bf16.msra.mxu1 %v3067_v12 }
0x12c9   :  { %v1229_v14 = vsel %vm237_vm9, %v1228_v11, %v1227_v13 }
0x12ca   :  { %1230 = vrot.lane.b32.xlu0 %v1229_v14, %s3491_s7 }
0x12cb   :  { %2214 = vmatpush.bf16.msra.mxu1 %v3066_v19 }
0x133b   :  { %v1293_v31 = vpop.f32.mrf.mxu1 }
0x133c   :  { %v1231_v22 = vpop.permute.xlu0 %1230 }
0x133d   :  { %v1233_v24 = vmul.f32 %v1231_v22, %v1223_v62 }
0x133f   :  { %v3903_v36 = vadd.f32 %v1238_v23, %v1233_v24  ;;  %v1252_v28 = vrot.slane %v1233_v24, 1  ;;  %1254 = vst.msk [vmem:[#allocation2 + $0x7] sm:$0x1] %vm263_vm10, %v1233_v24  ;;  %v3935_v24 = vld [vmem:[%s4268_s4] sm:$0x3] }
0x1341   :  { %1255 = vst.msk [vmem:[#allocation2 + $0xf] sm:$0x1] %vm263_vm10, %v1252_v28  ;;  %v3909_v29 = vadd.f32 %v3874_v41, %v3903_v36  ;;  %v1344_v30 = vpack.c.bf16 %v3903_v36, %v3903_v36  ;;  %v1424_v28 = vpop.permute.xlu2 %1423 }
0x1343   :  { %2977 = vmatmul.msk.bf16.vlgmr.msra.gmra.mxu3 %vm97_vm0, %v1344_v30  ;;  %v1257_v26 = vpack.c.bf16 %v3909_v29, %v3909_v29  ;;  %v1295_v39 = vpop.f32.mrf.mxu1 }
0x1345   :  { %2968 = vmatmul.msk.bf16.vlgmr.msra.gmra.mxu2 %vm97_vm0, %v1257_v26 }
0x1346   :  { %2355 = vmatpush.bf16.msra.mxu2 %v3067_v12 }
0x134a   :  { %2356 = vmatpush.bf16.msra.mxu2 %v3066_v19 }
0x13c6   :  { %v1369_v9 = vpop.f32.mrf.mxu3 }
0x13c7   :  { %v1374_v43 = vrot.slane %v1369_v9, 1 }
0x13c8   :  { %v1326_v32 = vpop.f32.mrf.mxu2 }
0x13c9   :  { %v1331_v33 = vrot.slane %v1326_v32, 1  ;;  %v1332_v34 = vperm.slane %v1326_v32, 0 }
0x13cb   :  { %v1333_v37 = vperm.slane %v1331_v33, 0  ;;  %v1336_v38 = vadd.f32 %v1332_v34, %v1293_v31  ;;  %v3941_v33 = vsub.f32 1.0, %v3935_v24 }
0x13cd   :  { %v1337_v40 = vadd.f32 %v1333_v37, %v1295_v39  ;;  %v3920_v42 = vadd.f32 %v3159_v35, %v1336_v38 }
0x13ce   :  { %v1371_v21 = vpop.f32.mrf.mxu3 }
0x13cf   :  { %v3922_v27 = vadd.f32 %v3159_v35, %v1337_v40  ;;  %v1377_v46 = vadd.f32 %v1369_v9, %v3920_v42 }
0x13d0   :  { %v1328_v48 = vpop.f32.mrf.mxu2 }
0x13d1   :  { %3291 = vtanh.f32 %v1377_v46  ;;  %v1378_v49 = vadd.f32 %v1374_v43, %v3922_v27  ;;  %v2978_v53 = vmul.f32 -1.442695, %v1377_v46 }
0x13d3   :  { %3293 = vtanh.f32 %v1378_v49  ;;  %v2979_v55 = vmul.f32 -1.442695, %v1378_v49 }
0x13d4   :  { %3295 = vpow2.f32 %v2978_v53 }
0x13d5   :  { %3297 = vpow2.f32 %v2979_v55 }
0x13d7   :  { %v3292_v51 = vpop.eup %3291 }
0x13d8   :  { %1431 = vrot.lane.b32.xlu1 %v3292_v51, %s3490_s26 }
0x13d9   :  { %v3294_v52 = vpop.eup %3293 }
0x13da   :  { %1433 = vrot.lane.b32.xlu0 %v3294_v52, %s3490_s26  ;;  %v3296_v56 = vpop.eup %3295 }
0x13db   :  { %v3298_v57 = vpop.eup %3297  ;;  %v1385_v58 = vadd.f32 1.0, %v3296_v56 }
0x13dc   :  { %v1386_v60 = vadd.f32 1.0, %v3298_v57 }
0x13dd   :  { %3299 = vrcp.f32 %v1385_v58  ;;  %v1398_v7 = vand.u32 2147483648, %v1385_v58  ;;  %vm1392_vm1 = vweird.f32 %v1385_v58  ;;  %v1396_v8 = vand.u32 2147483647, %v1385_v58 }
0x13de   :  { %3301 = vrcp.f32 %v1386_v60  ;;  %v1413_v11 = vand.u32 2147483648, %v1386_v60  ;;  %vm1407_vm4 = vweird.f32 %v1386_v60  ;;  %v1411_v14 = vand.u32 2147483647, %v1386_v60 }
0x13df   :  { %v1399_v16 = vor.u32 1.1754944e-38, %v1398_v7  ;;  %vm1397_vm6 = vcmp.eq.f32.partialorder %v1396_v8, 8.507059e+37 }
0x13e0   :  { %v1414_v18 = vor.u32 1.1754944e-38, %v1413_v11  ;;  %vm1412_vm7 = vcmp.eq.f32.partialorder %v1411_v14, 8.507059e+37 }
0x13e2   :  { %1421 = vrot.lane.b32.xlu0 %v3874_v41, %s3491_s7 }
0x13e3   :  { %v3300_v1 = vpop.eup %3299 }
0x13e4   :  { %v3302_v61 = vpop.eup %3301  ;;  %v1388_v62 = vmul.f32 %v3300_v1, %v1385_v58  ;;  %vm1393_vm15 = vweird.f32 %v3300_v1 }
0x13e5   :  { %v1403_v63 = vmul.f32 %v3302_v61, %v1386_v60  ;;  %vm1408_vm2 = vweird.f32 %v3302_v61  ;;  %vm1394_vm3 = vmor %vm1392_vm1, %vm1393_vm15 }
0x13e6   :  { %v1389_v2 = vsub.f32 1.0, %v1388_v62  ;;  %vm1409_vm5 = vmor %vm1407_vm4, %vm1408_vm2 }
0x13e7   :  { %v1404_v3 = vsub.f32 1.0, %v1403_v63 }
0x13e8   :  { %v1390_v59 = vmul.f32 %v3300_v1, %v1389_v2 }
0x13e9   :  { %v1405_v5 = vmul.f32 %v3302_v61, %v1404_v3 }
0x13ea   :  { %v1391_v6 = vadd.f32 %v3300_v1, %v1390_v59 }
0x13eb   :  { %v1406_v10 = vadd.f32 %v3302_v61, %v1405_v5 }
0x13ec   :  { %v1395_v13 = vsel %vm1394_vm3, %v3300_v1, %v1391_v6 }
0x13ed   :  { %v1410_v47 = vsel %vm1409_vm5, %v3302_v61, %v1406_v10  ;;  %v1400_v17 = vsel %vm1397_vm6, %v1399_v16, %v1395_v13 }
0x13ee   :  { %v1415_v22 = vsel %vm1412_vm7, %v1414_v18, %v1410_v47 }
0x13ef   :  { %v1428_v34 = vmul.f32 %v1424_v28, %v1415_v22 }
0x144a   :  { %v1432_v12 = vpop.permute.xlu1 %1431 }
0x144b   :  { %v1437_v19 = vmul.f32 %v1432_v12, %v1400_v17 }
0x144c   :  { %v1434_v20 = vpop.permute.xlu0 %1433 }
0x144d   :  { %v1438_v23 = vmul.f32 %v1434_v20, %v1415_v22  ;;  %1441 = vrot.lane.b32.xlu2 %v1437_v19, %s3491_s7 }
0x144f   :  { %1443 = vrot.lane.b32.xlu1 %v1438_v23, %s3491_s7 }
0x1454   :  { %v1422_v30 = vpop.permute.xlu0 %1421 }
0x1455   :  { %1463 = vperm.xlu2 %3121, %v3935_v24   ;;  %v1427_v26 = vmul.f32 %v1422_v30, %v1400_v17 }
0x145d   :  { %3123 = vset.pattern.permute.xlu2 %v3493_v54 }
0x14a7   :  { %v1442_v31 = vpop.permute.xlu2 %1441 }
0x14a8   :  { %v1447_v9 = vadd.f32 %v1442_v31, %v1427_v26 }
0x14aa   :  { %3303 = vtanh.f32 %v1447_v9 }
0x14af   :  { %v1464_v21 = vpop.permute.xlu2 %1463 }
0x14b0   :  { %v3304_v32 = vpop.eup %3303 }
0x14b1   :  { %1453 = vrot.lane.b32.xlu1 %v3304_v32, %s3490_s26 }
0x14b9   :  { %1477 = vperm.xlu1 %3122, %v3941_v33  }
0x14c1   :  { %v1444_v35 = vpop.permute.xlu1 %1443  ;;  %3124 = vset.pattern.permute.xlu1 %v3493_v54 }
0x14c2   :  { %v1448_v37 = vadd.f32 %v1444_v35, %v1428_v34 }
0x14c4   :  { %3305 = vtanh.f32 %v1448_v37  ;;  %v1484_v38 = vrot.slane %v1448_v37, 7 }
0x14c6   :  { %v1485_v39 = vsel %vm237_vm9, %v1484_v38, %v1447_v9 }
0x14c7   :  { %1486 = vrot.lane.b32.xlu2 %v1485_v39, %s3492_s0 }
0x14ca   :  { %v3306_v40 = vpop.eup %3305 }
0x14cb   :  { %1455 = vrot.lane.b32.xlu0 %v3306_v40, %s3490_s26 }
0x1521   :  { %v1487_v46 = vpop.permute.xlu2 %1486 }
0x1522   :  { %v1489_v49 = vmul.f32 %v1487_v46, %v1464_v21 }
0x1523   :  { %v1454_v43 = vpop.permute.xlu1 %1453 }
0x1524   :  { %v1459_v57 = vmul.f32 %v1454_v43, %v1400_v17 }
0x152b   :  { %v1478_v48 = vpop.permute.xlu1 %1477 }
0x152c   :  { %v1490_v51 = vmul.f32 %v1478_v48, %v3874_v41  ;;  %v1480_v61 = vmul.f32 %v1478_v48, %v3903_v36 }
0x152e   :  { %v3949_v52 = vadd.f32 %v1490_v51, %v1489_v49 }
0x1530   :  { %v1561_v53 = vrot.slane %v3949_v52, 7 }
0x1532   :  { %1562 = vrot.lane.b32.xlu2 %v1561_v53, %s3491_s7 }
0x153d   :  { %v1456_v55 = vpop.permute.xlu0 %1455 }
0x153e   :  { %v1460_v56 = vmul.f32 %v1456_v55, %v1415_v22 }
0x1540   :  { %v1468_v58 = vrot.slane %v1460_v56, 7 }
0x1542   :  { %v1469_v60 = vsel %vm237_vm9, %v1468_v58, %v1459_v57 }
0x1543   :  { %1470 = vrot.lane.b32.xlu0 %v1469_v60, %s3491_s7 }
0x158c   :  { %v1563_v51 = vpop.permute.xlu2 %1562 }
0x15b5   :  { %v1471_v1 = vpop.permute.xlu0 %1470 }
0x15b6   :  { %v1473_v62 = vmul.f32 %v1471_v1, %v1464_v21 }
0x15b8   :  { %v3956_v63 = vadd.f32 %v1480_v61, %v1473_v62  ;;  %v1493_v41 = vrot.slane %v1473_v62, 1  ;;  %1495 = vst.msk [vmem:[#allocation3] sm:$0x1] %vm263_vm10, %v1473_v62 }
0x15ba   :  { %1496 = vst.msk [vmem:[#allocation3 + $0x8] sm:$0x1] %vm263_vm10, %v1493_v41  ;;  %v1497_v2 = vpack.c.bf16 %v3956_v63, %v3956_v63 }
0x15bc   :  { %2980 = vmatmul.msk.bf16.vlgmr.msrb.gmra.mxu0 %vm97_vm0, %v1497_v2 }
0x1639   :  { %v1510_v3 = vpop.f32.mrf.mxu0 }
0x163a   :  { %v1515_v59 = vrot.slane %v1510_v3, 7  ;;  %v1519_v5 = vadd.f32 %v1510_v3, %v3922_v27 }
0x163c   :  { %v1518_v6 = vadd.f32 %v1515_v59, %v3920_v42  ;;  %3307 = vtanh.f32 %v1519_v5  ;;  %v2982_v10 = vmul.f32 -1.442695, %v1519_v5 }
0x163e   :  { %3309 = vtanh.f32 %v1518_v6  ;;  %v2981_v11 = vmul.f32 -1.442695, %v1518_v6 }
0x163f   :  { %3311 = vpow2.f32 %v2982_v10 }
0x1640   :  { %3313 = vpow2.f32 %v2981_v11 }
0x1641   :  { %v1512_v36 = vpop.f32.mrf.mxu0 }
0x1642   :  { %v3308_v7 = vpop.eup %3307 }
0x1643   :  { %1574 = vrot.lane.b32.xlu1 %v3308_v7, %s3490_s26 }
0x1644   :  { %v3310_v8 = vpop.eup %3309 }
0x1645   :  { %1572 = vrot.lane.b32.xlu0 %v3310_v8, %s3490_s26  ;;  %v3312_v13 = vpop.eup %3311 }
0x1646   :  { %v3314_v14 = vpop.eup %3313  ;;  %v1527_v16 = vadd.f32 1.0, %v3312_v13 }
0x1647   :  { %v1526_v47 = vadd.f32 1.0, %v3314_v14 }
0x1648   :  { %3315 = vrcp.f32 %v1527_v16  ;;  %v1554_v26 = vand.u32 2147483648, %v1527_v16  ;;  %vm1548_vm11 = vweird.f32 %v1527_v16  ;;  %v1552_v31 = vand.u32 2147483647, %v1527_v16 }
0x1649   :  { %3317 = vrcp.f32 %v1526_v47  ;;  %v1539_v34 = vand.u32 2147483648, %v1526_v47  ;;  %vm1533_vm14 = vweird.f32 %v1526_v47  ;;  %v1537_v37 = vand.u32 2147483647, %v1526_v47 }
0x164a   :  { %v1555_v35 = vor.u32 1.1754944e-38, %v1554_v26  ;;  %vm1553_vm15 = vcmp.eq.f32.partialorder %v1552_v31, 8.507059e+37 }
0x164b   :  { %v1540_v43 = vor.u32 1.1754944e-38, %v1539_v34  ;;  %vm1538_vm2 = vcmp.eq.f32.partialorder %v1537_v37, 8.507059e+37 }
0x164d   :  { %1564 = vrot.lane.b32.xlu0 %v3949_v52, %s3491_s7 }
0x164e   :  { %v3316_v12 = vpop.eup %3315 }
0x164f   :  { %v3318_v17 = vpop.eup %3317  ;;  %v1544_v18 = vmul.f32 %v3316_v12, %v1527_v16  ;;  %vm1549_vm8 = vweird.f32 %v3316_v12 }
0x1650   :  { %v1529_v19 = vmul.f32 %v3318_v17, %v1526_v47  ;;  %vm1550_vm12 = vmor %vm1548_vm11, %vm1549_vm8  ;;  %vm1534_vm13 = vweird.f32 %v3318_v17 }
0x1651   :  { %v1545_v20 = vsub.f32 1.0, %v1544_v18  ;;  %vm1535_vm1 = vmor %vm1533_vm14, %vm1534_vm13 }
0x1652   :  { %v1530_v22 = vsub.f32 1.0, %v1529_v19 }
0x1653   :  { %v1546_v23 = vmul.f32 %v3316_v12, %v1545_v20 }
0x1654   :  { %v1531_v28 = vmul.f32 %v3318_v17, %v1530_v22 }
0x1655   :  { %v1547_v30 = vadd.f32 %v3316_v12, %v1546_v23 }
0x1656   :  { %v1532_v9 = vadd.f32 %v3318_v17, %v1531_v28 }
0x1657   :  { %v1551_v32 = vsel %vm1550_vm12, %v3316_v12, %v1547_v30 }
0x1658   :  { %v1556_v39 = vsel %vm1553_vm15, %v1555_v35, %v1551_v32  ;;  %v1536_v40 = vsel %vm1535_vm1, %v3318_v17, %v1532_v9 }
0x1659   :  { %v1541_v48 = vsel %vm1538_vm2, %v1540_v43, %v1536_v40 }
0x165a   :  { %v1568_v60 = vmul.f32 %v1563_v51, %v1541_v48 }
0x16b5   :  { %v1575_v38 = vpop.permute.xlu1 %1574 }
0x16b6   :  { %v1579_v21 = vmul.f32 %v1575_v38, %v1556_v39 }
0x16b7   :  { %v1573_v46 = vpop.permute.xlu0 %1572 }
0x16b8   :  { %1584 = vrot.lane.b32.xlu2 %v1579_v21, %s3491_s7  ;;  %v1578_v49 = vmul.f32 %v1573_v46, %v1541_v48 }
0x16ba   :  { %1582 = vrot.lane.b32.xlu1 %v1578_v49, %s3491_s7 }
0x16bf   :  { %v1565_v53 = vpop.permute.xlu0 %1564 }
0x16c0   :  { %1603 = vperm.xlu2 %3123, %v3935_v24   ;;  %v1569_v55 = vmul.f32 %v1565_v53, %v1556_v39 }
0x16c8   :  { %3125 = vset.pattern.permute.xlu2 %v3494_v50 }
0x1712   :  { %v1585_v56 = vpop.permute.xlu2 %1584 }
0x1713   :  { %v1589_v57 = vadd.f32 %v1585_v56, %v1569_v55 }
0x1715   :  { %3319 = vtanh.f32 %v1589_v57 }
0x171a   :  { %v1604_v3 = vpop.permute.xlu2 %1603 }
0x171b   :  { %v3320_v58 = vpop.eup %3319 }
0x171c   :  { %1596 = vrot.lane.b32.xlu1 %v3320_v58, %s3490_s26 }
0x1724   :  { %1615 = vperm.xlu1 %3124, %v3941_v33  }
0x172c   :  { %3126 = vset.pattern.permute.xlu1 %v3494_v50  ;;  %v1583_v1 = vpop.permute.xlu1 %1582 }
0x172d   :  { %v1588_v61 = vadd.f32 %v1583_v1, %v1568_v60 }
0x172f   :  { %3321 = vtanh.f32 %v1588_v61  ;;  %v1622_v62 = vrot.slane %v1588_v61, 1 }
0x1731   :  { %v1623_v41 = vsel %vm237_vm9, %v1589_v57, %v1622_v62 }
0x1732   :  { %1624 = vrot.lane.b32.xlu2 %v1623_v41, %s3492_s0 }
0x1735   :  { %v3322_v2 = vpop.eup %3321 }
0x1736   :  { %1594 = vrot.lane.b32.xlu0 %v3322_v2, %s3490_s26 }
0x178c   :  { %v1625_v5 = vpop.permute.xlu2 %1624 }
0x178d   :  { %v1627_v36 = vmul.f32 %v1625_v5, %v1604_v3 }
0x178e   :  { %v1597_v59 = vpop.permute.xlu1 %1596 }
0x178f   :  { %v1601_v14 = vmul.f32 %v1597_v59, %v1556_v39 }
0x1796   :  { %v1616_v6 = vpop.permute.xlu1 %1615 }
0x1797   :  { %v1628_v7 = vmul.f32 %v1616_v6, %v3949_v52  ;;  %v1618_v17 = vmul.f32 %v1616_v6, %v3956_v63 }
0x1799   :  { %v3980_v8 = vadd.f32 %v1628_v7, %v1627_v36 }
0x179b   :  { %v1700_v10 = vrot.slane %v3980_v8, 6  ;;  %v1701_v32 = vrot.slane %v3980_v8, 7 }
0x179d   :  { %1702 = vrot.lane.b32.xlu2 %v1700_v10, %s3491_s7 }
0x17a8   :  { %v1595_v11 = vpop.permute.xlu0 %1594 }
0x17a9   :  { %v1600_v13 = vmul.f32 %v1595_v11, %v1541_v48 }
0x17ab   :  { %v1608_v16 = vrot.slane %v1600_v13, 1 }
0x17ad   :  { %v1609_v47 = vsel %vm237_vm9, %v1601_v14, %v1608_v16 }
0x17ae   :  { %1610 = vrot.lane.b32.xlu0 %v1609_v47, %s3491_s7 }
0x17f7   :  { %v1703_v11 = vpop.permute.xlu2 %1702 }
0x1820   :  { %v1611_v12 = vpop.permute.xlu0 %1610 }
0x1821   :  { %v1613_v18 = vmul.f32 %v1611_v12, %v1604_v3 }
0x1823   :  { %v3987_v19 = vadd.f32 %v1618_v17, %v1613_v18  ;;  %v1631_v52 = vrot.slane %v1613_v18, 1  ;;  %1633 = vst.msk [vmem:[#allocation3 + $0x1] sm:$0x1] %vm263_vm10, %v1613_v18 }
0x1825   :  { %1634 = vst.msk [vmem:[#allocation3 + $0x9] sm:$0x1] %vm263_vm10, %v1631_v52  ;;  %v1635_v20 = vpack.c.bf16 %v3987_v19, %v3987_v19 }
0x1827   :  { %2983 = vmatmul.msk.bf16.vlgmr.msrb.gmra.mxu1 %vm97_vm0, %v1635_v20 }
0x18a4   :  { %v1648_v22 = vpop.f32.mrf.mxu1 }
0x18a5   :  { %v1653_v23 = vrot.slane %v1648_v22, 6  ;;  %v1654_v28 = vrot.slane %v1648_v22, 7 }
0x18a7   :  { %v1657_v30 = vadd.f32 %v1653_v23, %v3920_v42  ;;  %v1658_v63 = vadd.f32 %v1654_v28, %v3922_v27 }
0x18a9   :  { %3323 = vtanh.f32 %v1657_v30  ;;  %v2984_v34 = vmul.f32 -1.442695, %v1657_v30  ;;  %v2985_v35 = vmul.f32 -1.442695, %v1658_v63 }
0x18aa   :  { %3325 = vtanh.f32 %v1658_v63 }
0x18ab   :  { %3327 = vpow2.f32 %v2984_v34 }
0x18ac   :  { %v1650_v26 = vpop.f32.mrf.mxu1  ;;  %3329 = vpow2.f32 %v2985_v35 }
0x18af   :  { %v3324_v31 = vpop.eup %3323 }
0x18b0   :  { %v3326_v9 = vpop.eup %3325  ;;  %1712 = vrot.lane.b32.xlu0 %v3324_v31, %s3490_s26 }
0x18b1   :  { %1714 = vrot.lane.b32.xlu1 %v3326_v9, %s3490_s26  ;;  %v3328_v37 = vpop.eup %3327 }
0x18b2   :  { %v3330_v38 = vpop.eup %3329  ;;  %v1665_v39 = vadd.f32 1.0, %v3328_v37 }
0x18b3   :  { %v1666_v40 = vadd.f32 1.0, %v3330_v38 }
0x18b4   :  { %3331 = vrcp.f32 %v1665_v39  ;;  %v1678_v58 = vand.u32 2147483648, %v1665_v39  ;;  %vm1672_vm5 = vweird.f32 %v1665_v39  ;;  %v1676_v1 = vand.u32 2147483647, %v1665_v39 }
0x18b5   :  { %3333 = vrcp.f32 %v1666_v40  ;;  %v1693_v60 = vand.u32 2147483648, %v1666_v40  ;;  %vm1687_vm6 = vweird.f32 %v1666_v40  ;;  %v1691_v61 = vand.u32 2147483647, %v1666_v40 }
0x18b6   :  { %v1679_v2 = vor.u32 1.1754944e-38, %v1678_v58  ;;  %vm1677_vm11 = vcmp.eq.f32.partialorder %v1676_v1, 8.507059e+37 }
0x18b7   :  { %v1694_v3 = vor.u32 1.1754944e-38, %v1693_v60  ;;  %vm1692_vm12 = vcmp.eq.f32.partialorder %v1691_v61, 8.507059e+37 }
0x18b8   :  { %1704 = vrot.lane.b32.xlu0 %v1701_v32, %s3491_s7 }
0x18ba   :  { %v3332_v21 = vpop.eup %3331 }
0x18bb   :  { %v3334_v43 = vpop.eup %3333  ;;  %v1668_v46 = vmul.f32 %v3332_v21, %v1665_v39  ;;  %vm1673_vm3 = vweird.f32 %v3332_v21 }
0x18bc   :  { %v1683_v48 = vmul.f32 %v3334_v43, %v1666_v40  ;;  %vm1688_vm4 = vweird.f32 %v3334_v43  ;;  %vm1674_vm7 = vmor %vm1672_vm5, %vm1673_vm3 }
0x18bd   :  { %v1669_v49 = vsub.f32 1.0, %v1668_v46  ;;  %vm1689_vm8 = vmor %vm1687_vm6, %vm1688_vm4 }
0x18be   :  { %v1684_v51 = vsub.f32 1.0, %v1683_v48 }
0x18bf   :  { %v1670_v53 = vmul.f32 %v3332_v21, %v1669_v49 }
0x18c0   :  { %v1685_v55 = vmul.f32 %v3334_v43, %v1684_v51 }
0x18c1   :  { %v1671_v56 = vadd.f32 %v3332_v21, %v1670_v53 }
0x18c2   :  { %v1686_v57 = vadd.f32 %v3334_v43, %v1685_v55 }
0x18c3   :  { %v1675_v62 = vsel %vm1674_vm7, %v3332_v21, %v1671_v56 }
0x18c4   :  { %v1690_v41 = vsel %vm1689_vm8, %v3334_v43, %v1686_v57  ;;  %v1680_v5 = vsel %vm1677_vm11, %v1679_v2, %v1675_v62 }
0x18c5   :  { %v1695_v36 = vsel %vm1692_vm12, %v1694_v3, %v1690_v41  ;;  %v1708_v17 = vmul.f32 %v1703_v11, %v1680_v5 }
0x1922   :  { %v1713_v59 = vpop.permute.xlu0 %1712 }
0x1923   :  { %v1715_v6 = vpop.permute.xlu1 %1714  ;;  %v1718_v7 = vmul.f32 %v1713_v59, %v1680_v5 }
0x1924   :  { %v1719_v10 = vmul.f32 %v1715_v6, %v1695_v36 }
0x1925   :  { %1722 = vrot.lane.b32.xlu1 %v1718_v7, %s3491_s7 }
0x1926   :  { %1724 = vrot.lane.b32.xlu2 %v1719_v10, %s3491_s7 }
0x192a   :  { %v1705_v13 = vpop.permute.xlu0 %1704 }
0x192b   :  { %v1709_v14 = vmul.f32 %v1705_v13, %v1695_v36 }
0x192e   :  { %1743 = vperm.xlu2 %3125, %v3935_v24  }
0x1936   :  { %3127 = vset.pattern.permute.xlu2 %v3495_v15 }
0x1980   :  { %v1725_v16 = vpop.permute.xlu2 %1724 }
0x1981   :  { %v1729_v47 = vadd.f32 %v1725_v16, %v1709_v14 }
0x1983   :  { %3335 = vtanh.f32 %v1729_v47  ;;  %v1764_v20 = vrot.slane %v1729_v47, 1 }
0x1988   :  { %v1744_v30 = vpop.permute.xlu2 %1743 }
0x1989   :  { %v3336_v12 = vpop.eup %3335 }
0x198a   :  { %1736 = vrot.lane.b32.xlu1 %v3336_v12, %s3490_s26 }
0x1992   :  { %1756 = vperm.xlu1 %3126, %v3941_v33  }
0x1997   :  { %v1723_v18 = vpop.permute.xlu1 %1722 }
0x1998   :  { %v1728_v52 = vadd.f32 %v1723_v18, %v1708_v17 }
0x199a   :  { %3337 = vtanh.f32 %v1728_v52  ;;  %v1763_v22 = vrot.slane %v1728_v52, 2  ;;  %3128 = vset.pattern.permute.xlu1 %v3495_v15 }
0x199c   :  { %v1765_v23 = vsel %vm237_vm9, %v1764_v20, %v1763_v22 }
0x199d   :  { %1766 = vrot.lane.b32.xlu2 %v1765_v23, %s3492_s0 }
0x19a0   :  { %v3338_v28 = vpop.eup %3337 }
0x19a1   :  { %1734 = vrot.lane.b32.xlu0 %v3338_v28, %s3490_s26 }
0x19f7   :  { %v1767_v26 = vpop.permute.xlu2 %1766 }
0x19f8   :  { %v1769_v9 = vmul.f32 %v1767_v26, %v1744_v30 }
0x19fc   :  { %v1737_v63 = vpop.permute.xlu1 %1736 }
0x19fd   :  { %v1741_v37 = vmul.f32 %v1737_v63, %v1695_v36 }
0x19ff   :  { %v1749_v40 = vrot.slane %v1741_v37, 1 }
0x1a04   :  { %v1757_v31 = vpop.permute.xlu1 %1756 }
0x1a05   :  { %v1770_v32 = vmul.f32 %v1757_v31, %v3980_v8  ;;  %v1759_v48 = vmul.f32 %v1757_v31, %v3987_v19 }
0x1a07   :  { %v4011_v34 = vadd.f32 %v1770_v32, %v1769_v9 }
0x1a09   :  { %v1842_v35 = vrot.slane %v4011_v34, 5  ;;  %v1843_v62 = vrot.slane %v4011_v34, 6 }
0x1a0b   :  { %1844 = vrot.lane.b32.xlu2 %v1842_v35, %s3491_s7 }
0x1a13   :  { %v1735_v38 = vpop.permute.xlu0 %1734 }
0x1a14   :  { %v1740_v39 = vmul.f32 %v1735_v38, %v1680_v5 }
0x1a16   :  { %v1748_v21 = vrot.slane %v1740_v39, 2 }
0x1a18   :  { %v1750_v43 = vsel %vm237_vm9, %v1749_v40, %v1748_v21 }
0x1a19   :  { %1751 = vrot.lane.b32.xlu0 %v1750_v43, %s3491_s7 }
0x1a65   :  { %v1845_v38 = vpop.permute.xlu2 %1844 }
0x1a8b   :  { %v1752_v46 = vpop.permute.xlu0 %1751 }
0x1a8c   :  { %v1754_v49 = vmul.f32 %v1752_v46, %v1744_v30 }
0x1a8e   :  { %v4018_v8 = vadd.f32 %v1759_v48, %v1754_v49  ;;  %v1773_v51 = vrot.slane %v1754_v49, 1  ;;  %1775 = vst.msk [vmem:[#allocation3 + $0x2] sm:$0x1] %vm263_vm10, %v1754_v49 }
0x1a90   :  { %1776 = vst.msk [vmem:[#allocation3 + $0xa] sm:$0x1] %vm263_vm10, %v1773_v51  ;;  %v1777_v53 = vpack.c.bf16 %v4018_v8, %v4018_v8 }
0x1a92   :  { %2986 = vmatmul.msk.bf16.vlgmr.msrb.gmra.mxu2 %vm97_vm0, %v1777_v53 }
0x1b15   :  { %v1790_v55 = vpop.f32.mrf.mxu2 }
0x1b16   :  { %v1795_v56 = vrot.slane %v1790_v55, 5  ;;  %v1796_v57 = vrot.slane %v1790_v55, 6 }
0x1b18   :  { %v1799_v58 = vadd.f32 %v1795_v56, %v3920_v42  ;;  %v1800_v19 = vadd.f32 %v1796_v57, %v3922_v27 }
0x1b1a   :  { %3339 = vtanh.f32 %v1799_v58  ;;  %v2987_v41 = vmul.f32 -1.442695, %v1799_v58  ;;  %v2988_v2 = vmul.f32 -1.442695, %v1800_v19 }
0x1b1b   :  { %3341 = vtanh.f32 %v1800_v19 }
0x1b1c   :  { %3343 = vpow2.f32 %v2987_v41 }
0x1b1d   :  { %v1792_v60 = vpop.f32.mrf.mxu2  ;;  %3345 = vpow2.f32 %v2988_v2 }
0x1b20   :  { %v3340_v1 = vpop.eup %3339 }
0x1b21   :  { %v3342_v61 = vpop.eup %3341  ;;  %1854 = vrot.lane.b32.xlu0 %v3340_v1, %s3490_s26 }
0x1b22   :  { %1856 = vrot.lane.b32.xlu1 %v3342_v61, %s3490_s26  ;;  %v3344_v3 = vpop.eup %3343 }
0x1b23   :  { %v3346_v59 = vpop.eup %3345  ;;  %v1807_v5 = vadd.f32 1.0, %v3344_v3 }
0x1b24   :  { %v1808_v6 = vadd.f32 1.0, %v3346_v59 }
0x1b25   :  { %3347 = vrcp.f32 %v1807_v5  ;;  %v1820_v18 = vand.u32 2147483648, %v1807_v5  ;;  %vm1814_vm15 = vweird.f32 %v1807_v5  ;;  %v1818_v20 = vand.u32 2147483647, %v1807_v5 }
0x1b26   :  { %3349 = vrcp.f32 %v1808_v6  ;;  %v1835_v52 = vand.u32 2147483648, %v1808_v6  ;;  %vm1829_vm1 = vweird.f32 %v1808_v6  ;;  %v1833_v22 = vand.u32 2147483647, %v1808_v6 }
0x1b27   :  { %v1821_v30 = vor.u32 1.1754944e-38, %v1820_v18  ;;  %vm1819_vm4 = vcmp.eq.f32.partialorder %v1818_v20, 8.507059e+37 }
0x1b28   :  { %v1836_v63 = vor.u32 1.1754944e-38, %v1835_v52  ;;  %vm1834_vm5 = vcmp.eq.f32.partialorder %v1833_v22, 8.507059e+37 }
0x1b29   :  { %1846 = vrot.lane.b32.xlu0 %v1843_v62, %s3491_s7 }
0x1b2b   :  { %v3348_v36 = vpop.eup %3347 }
0x1b2c   :  { %v3350_v7 = vpop.eup %3349  ;;  %v1810_v10 = vmul.f32 %v3348_v36, %v1807_v5  ;;  %vm1815_vm13 = vweird.f32 %v3348_v36 }
0x1b2d   :  { %v1825_v11 = vmul.f32 %v3350_v7, %v1808_v6  ;;  %vm1830_vm14 = vweird.f32 %v3350_v7  ;;  %vm1816_vm2 = vmor %vm1814_vm15, %vm1815_vm13 }
0x1b2e   :  { %v1811_v13 = vsub.f32 1.0, %v1810_v10  ;;  %vm1831_vm3 = vmor %vm1829_vm1, %vm1830_vm14 }
0x1b2f   :  { %v1826_v14 = vsub.f32 1.0, %v1825_v11 }
0x1b30   :  { %v1812_v16 = vmul.f32 %v3348_v36, %v1811_v13 }
0x1b31   :  { %v1827_v47 = vmul.f32 %v3350_v7, %v1826_v14 }
0x1b32   :  { %v1813_v12 = vadd.f32 %v3348_v36, %v1812_v16 }
0x1b33   :  { %v1828_v17 = vadd.f32 %v3350_v7, %v1827_v47 }
0x1b34   :  { %v1817_v23 = vsel %vm1816_vm2, %v3348_v36, %v1813_v12 }
0x1b35   :  { %v1832_v28 = vsel %vm1831_vm3, %v3350_v7, %v1828_v17  ;;  %v1822_v31 = vsel %vm1819_vm4, %v1821_v30, %v1817_v23 }
0x1b36   :  { %v1837_v32 = vsel %vm1834_vm5, %v1836_v63, %v1832_v28  ;;  %v1850_v48 = vmul.f32 %v1845_v38, %v1822_v31 }
0x1b93   :  { %v1855_v26 = vpop.permute.xlu0 %1854 }
0x1b94   :  { %v1857_v9 = vpop.permute.xlu1 %1856  ;;  %v1860_v35 = vmul.f32 %v1855_v26, %v1822_v31 }
0x1b95   :  { %v1861_v37 = vmul.f32 %v1857_v9, %v1837_v32 }
0x1b96   :  { %1864 = vrot.lane.b32.xlu1 %v1860_v35, %s3491_s7 }
0x1b97   :  { %1866 = vrot.lane.b32.xlu2 %v1861_v37, %s3491_s7 }
0x1b9b   :  { %v1847_v39 = vpop.permute.xlu0 %1846 }
0x1b9c   :  { %v1851_v40 = vmul.f32 %v1847_v39, %v1837_v32 }
0x1b9f   :  { %1885 = vperm.xlu2 %3127, %v3935_v24  }
0x1ba7   :  { %3129 = vset.pattern.permute.xlu2 %v3496_v44 }
0x1bf1   :  { %v1867_v21 = vpop.permute.xlu2 %1866 }
0x1bf2   :  { %v1871_v43 = vadd.f32 %v1867_v21, %v1851_v40 }
0x1bf4   :  { %3351 = vtanh.f32 %v1871_v43  ;;  %v1906_v53 = vrot.slane %v1871_v43, 2 }
0x1bf9   :  { %v1886_v58 = vpop.permute.xlu2 %1885 }
0x1bfa   :  { %v3352_v46 = vpop.eup %3351 }
0x1bfb   :  { %1878 = vrot.lane.b32.xlu1 %v3352_v46, %s3490_s26 }
0x1c03   :  { %1898 = vperm.xlu1 %3128, %v3941_v33  }
0x1c08   :  { %v1865_v49 = vpop.permute.xlu1 %1864 }
0x1c09   :  { %v1870_v51 = vadd.f32 %v1865_v49, %v1850_v48 }
0x1c0b   :  { %3353 = vtanh.f32 %v1870_v51  ;;  %v1905_v55 = vrot.slane %v1870_v51, 3  ;;  %3130 = vset.pattern.permute.xlu1 %v3496_v44 }
0x1c0d   :  { %v1907_v56 = vsel %vm237_vm9, %v1906_v53, %v1905_v55 }
0x1c0e   :  { %1908 = vrot.lane.b32.xlu2 %v1907_v56, %s3492_s0 }
0x1c11   :  { %v3354_v57 = vpop.eup %3353 }
0x1c12   :  { %1876 = vrot.lane.b32.xlu0 %v3354_v57, %s3490_s26 }
0x1c68   :  { %v1909_v60 = vpop.permute.xlu2 %1908 }
0x1c69   :  { %v1911_v61 = vmul.f32 %v1909_v60, %v1886_v58 }
0x1c6d   :  { %v1879_v19 = vpop.permute.xlu1 %1878 }
0x1c6e   :  { %v1883_v3 = vmul.f32 %v1879_v19, %v1837_v32 }
0x1c70   :  { %v1891_v6 = vrot.slane %v1883_v3, 2 }
0x1c75   :  { %v1899_v1 = vpop.permute.xlu1 %1898 }
0x1c76   :  { %v1912_v62 = vmul.f32 %v1899_v1, %v4011_v34  ;;  %v1901_v11 = vmul.f32 %v1899_v1, %v4018_v8 }
0x1c78   :  { %v4042_v41 = vadd.f32 %v1912_v62, %v1911_v61 }
0x1c7a   :  { %v1984_v2 = vrot.slane %v4042_v41, 4  ;;  %v1985_v23 = vrot.slane %v4042_v41, 5 }
0x1c7c   :  { %1986 = vrot.lane.b32.xlu2 %v1984_v2, %s3491_s7 }
0x1c84   :  { %v1877_v59 = vpop.permute.xlu0 %1876 }
0x1c85   :  { %v1882_v5 = vmul.f32 %v1877_v59, %v1822_v31 }
0x1c87   :  { %v1890_v36 = vrot.slane %v1882_v5, 3 }
0x1c89   :  { %v1892_v7 = vsel %vm237_vm9, %v1891_v6, %v1890_v36 }
0x1c8a   :  { %1893 = vrot.lane.b32.xlu0 %v1892_v7, %s3491_s7 }
0x1cd6   :  { %v1987_v59 = vpop.permute.xlu2 %1986 }
0x1cfc   :  { %v1894_v10 = vpop.permute.xlu0 %1893 }
0x1cfd   :  { %v1896_v13 = vmul.f32 %v1894_v10, %v1886_v58 }
0x1cff   :  { %v4049_v34 = vadd.f32 %v1901_v11, %v1896_v13  ;;  %v1915_v14 = vrot.slane %v1896_v13, 1  ;;  %1917 = vst.msk [vmem:[#allocation3 + $0x3] sm:$0x1] %vm263_vm10, %v1896_v13 }
0x1d01   :  { %1918 = vst.msk [vmem:[#allocation3 + $0xb] sm:$0x1] %vm263_vm10, %v1915_v14  ;;  %v1919_v16 = vpack.c.bf16 %v4049_v34, %v4049_v34 }
0x1d03   :  { %2989 = vmatmul.msk.bf16.vlgmr.msrb.gmra.mxu3 %vm97_vm0, %v1919_v16 }
0x1d86   :  { %v1932_v47 = vpop.f32.mrf.mxu3 }
0x1d87   :  { %v1937_v12 = vrot.slane %v1932_v47, 4  ;;  %v1938_v17 = vrot.slane %v1932_v47, 5 }
0x1d89   :  { %v1941_v18 = vadd.f32 %v1937_v12, %v3920_v42  ;;  %v1942_v8 = vadd.f32 %v1938_v17, %v3922_v27 }
0x1d8b   :  { %3355 = vtanh.f32 %v1941_v18  ;;  %v2990_v28 = vmul.f32 -1.442695, %v1941_v18  ;;  %v2991_v30 = vmul.f32 -1.442695, %v1942_v8 }
0x1d8c   :  { %3357 = vtanh.f32 %v1942_v8 }
0x1d8d   :  { %3359 = vpow2.f32 %v2990_v28 }
0x1d8e   :  { %v1934_v52 = vpop.f32.mrf.mxu3  ;;  %3361 = vpow2.f32 %v2991_v30 }
0x1d91   :  { %v3356_v20 = vpop.eup %3355 }
0x1d92   :  { %v3358_v22 = vpop.eup %3357  ;;  %1996 = vrot.lane.b32.xlu0 %v3356_v20, %s3490_s26 }
0x1d93   :  { %1998 = vrot.lane.b32.xlu1 %v3358_v22, %s3490_s26  ;;  %v3360_v63 = vpop.eup %3359 }
0x1d94   :  { %v3362_v26 = vpop.eup %3361  ;;  %v1949_v31 = vadd.f32 1.0, %v3360_v63 }
0x1d95   :  { %v1950_v9 = vadd.f32 1.0, %v3362_v26 }
0x1d96   :  { %3363 = vrcp.f32 %v1949_v31  ;;  %v1962_v49 = vand.u32 2147483648, %v1949_v31  ;;  %vm1956_vm8 = vweird.f32 %v1949_v31  ;;  %v1960_v53 = vand.u32 2147483647, %v1949_v31 }
0x1d97   :  { %3365 = vrcp.f32 %v1950_v9  ;;  %v1977_v51 = vand.u32 2147483648, %v1950_v9  ;;  %vm1971_vm11 = vweird.f32 %v1950_v9  ;;  %v1975_v55 = vand.u32 2147483647, %v1950_v9 }
0x1d98   :  { %v1963_v58 = vor.u32 1.1754944e-38, %v1962_v49  ;;  %vm1961_vm14 = vcmp.eq.f32.partialorder %v1960_v53, 8.507059e+37 }
0x1d99   :  { %v1978_v19 = vor.u32 1.1754944e-38, %v1977_v51  ;;  %vm1976_vm15 = vcmp.eq.f32.partialorder %v1975_v55, 8.507059e+37 }
0x1d9a   :  { %1988 = vrot.lane.b32.xlu0 %v1985_v23, %s3491_s7 }
0x1d9c   :  { %v3364_v32 = vpop.eup %3363 }
0x1d9d   :  { %v3366_v35 = vpop.eup %3365  ;;  %v1952_v37 = vmul.f32 %v3364_v32, %v1949_v31  ;;  %vm1957_vm6 = vweird.f32 %v3364_v32 }
0x1d9e   :  { %v1967_v38 = vmul.f32 %v3366_v35, %v1950_v9  ;;  %vm1972_vm7 = vweird.f32 %v3366_v35  ;;  %vm1958_vm12 = vmor %vm1956_vm8, %vm1957_vm6 }
0x1d9f   :  { %v1953_v39 = vsub.f32 1.0, %v1952_v37  ;;  %vm1973_vm13 = vmor %vm1971_vm11, %vm1972_vm7 }
0x1da0   :  { %v1968_v40 = vsub.f32 1.0, %v1967_v38 }
0x1da1   :  { %v1954_v21 = vmul.f32 %v3364_v32, %v1953_v39 }
0x1da2   :  { %v1969_v43 = vmul.f32 %v3366_v35, %v1968_v40 }
0x1da3   :  { %v1955_v46 = vadd.f32 %v3364_v32, %v1954_v21 }
0x1da4   :  { %v1970_v48 = vadd.f32 %v3366_v35, %v1969_v43 }
0x1da5   :  { %v1959_v56 = vsel %vm1958_vm12, %v3364_v32, %v1955_v46 }
0x1da6   :  { %v1974_v57 = vsel %vm1973_vm13, %v3366_v35, %v1970_v48  ;;  %v1964_v1 = vsel %vm1961_vm14, %v1963_v58, %v1959_v56 }
0x1da7   :  { %v1979_v62 = vsel %vm1976_vm15, %v1978_v19, %v1974_v57  ;;  %v1992_v11 = vmul.f32 %v1987_v59, %v1964_v1 }
0x1e04   :  { %v1997_v60 = vpop.permute.xlu0 %1996 }
0x1e05   :  { %v1999_v61 = vpop.permute.xlu1 %1998  ;;  %v2002_v2 = vmul.f32 %v1997_v60, %v1964_v1 }
0x1e06   :  { %v2003_v3 = vmul.f32 %v1999_v61, %v1979_v62 }
0x1e07   :  { %2006 = vrot.lane.b32.xlu1 %v2002_v2, %s3491_s7 }
0x1e08   :  { %2008 = vrot.lane.b32.xlu2 %v2003_v3, %s3491_s7 }
0x1e0c   :  { %v1989_v5 = vpop.permute.xlu0 %1988 }
0x1e0d   :  { %v1993_v6 = vmul.f32 %v1989_v5, %v1979_v62 }
0x1e10   :  { %2027 = vperm.xlu2 %3129, %v3935_v24  }
0x1e18   :  { %3131 = vset.pattern.permute.xlu2 %v3497_v0 }
0x1e62   :  { %v2009_v36 = vpop.permute.xlu2 %2008 }
0x1e63   :  { %v2013_v7 = vadd.f32 %v2009_v36, %v1993_v6 }
0x1e65   :  { %3367 = vtanh.f32 %v2013_v7  ;;  %v2048_v16 = vrot.slane %v2013_v7, 3 }
0x1e6a   :  { %v2028_v17 = vpop.permute.xlu2 %2027 }
0x1e6b   :  { %v3368_v10 = vpop.eup %3367 }
0x1e6c   :  { %2020 = vrot.lane.b32.xlu1 %v3368_v10, %s3490_s26 }
0x1e74   :  { %2040 = vperm.xlu1 %3130, %v3941_v33  }
0x1e79   :  { %v2007_v13 = vpop.permute.xlu1 %2006 }
0x1e7a   :  { %v2012_v14 = vadd.f32 %v2007_v13, %v1992_v11 }
0x1e7c   :  { %3369 = vtanh.f32 %v2012_v14  ;;  %v2047_v47 = vrot.slane %v2012_v14, 4  ;;  %3132 = vset.pattern.permute.xlu1 %v3497_v0 }
0x1e7e   :  { %v2049_v24 = vsel %vm237_vm9, %v2048_v16, %v2047_v47 }
0x1e7f   :  { %2050 = vrot.lane.b32.xlu2 %v2049_v24, %s3492_s0 }
0x1e82   :  { %v3370_v12 = vpop.eup %3369 }
0x1e83   :  { %2018 = vrot.lane.b32.xlu0 %v3370_v12, %s3490_s26 }
0x1ed9   :  { %v2051_v8 = vpop.permute.xlu2 %2050 }
0x1eda   :  { %v2053_v20 = vmul.f32 %v2051_v8, %v2028_v17 }
0x1ede   :  { %v2021_v18 = vpop.permute.xlu1 %2020 }
0x1edf   :  { %v2025_v30 = vmul.f32 %v2021_v18, %v1979_v62 }
0x1ee1   :  { %v2033_v31 = vrot.slane %v2025_v30, 3  ;;  %v4098_v30 = vld [vmem:[%s4268_s4] sm:$0x3] }
0x1ee6   :  { %v2041_v52 = vpop.permute.xlu1 %2040 }
0x1ee7   :  { %v2054_v22 = vmul.f32 %v2041_v52, %v4042_v41  ;;  %v2043_v37 = vmul.f32 %v2041_v52, %v4049_v34 }
0x1ee9   :  { %v4073_v23 = vadd.f32 %v2054_v22, %v2053_v20 }
0x1eeb   :  { %v2126_v28 = vrot.slane %v4073_v23, 3  ;;  %v2127_v55 = vrot.slane %v4073_v23, 4 }
0x1eed   :  { %2128 = vrot.lane.b32.xlu2 %v2126_v28, %s3491_s7 }
0x1ef5   :  { %v2019_v63 = vpop.permute.xlu0 %2018 }
0x1ef6   :  { %v2024_v26 = vmul.f32 %v2019_v63, %v1964_v1 }
0x1ef8   :  { %v2032_v9 = vrot.slane %v2024_v26, 4 }
0x1efa   :  { %v2034_v32 = vsel %vm237_vm9, %v2033_v31, %v2032_v9 }
0x1efb   :  { %2035 = vrot.lane.b32.xlu0 %v2034_v32, %s3491_s7 }
0x1f47   :  { %v2129_v63 = vpop.permute.xlu2 %2128 }
0x1f6d   :  { %v2036_v35 = vpop.permute.xlu0 %2035 }
0x1f6e   :  { %v2038_v38 = vmul.f32 %v2036_v35, %v2028_v17 }
0x1f70   :  { %v4080_v41 = vadd.f32 %v2043_v37, %v2038_v38  ;;  %v2057_v39 = vrot.slane %v2038_v38, 1  ;;  %2059 = vst.msk [vmem:[#allocation3 + $0x4] sm:$0x1] %vm263_vm10, %v2038_v38 }
0x1f72   :  { %2060 = vst.msk [vmem:[#allocation3 + $0xc] sm:$0x1] %vm263_vm10, %v2057_v39  ;;  %v2061_v40 = vpack.c.bf16 %v4080_v41, %v4080_v41 }
0x1f74   :  { %2992 = vmatmul.msk.bf16.vlgmr.msra.gmra.mxu0 %vm97_vm0, %v2061_v40 }
0x1ff1   :  { %v2074_v21 = vpop.f32.mrf.mxu0 }
0x1ff2   :  { %v2079_v43 = vrot.slane %v2074_v21, 3  ;;  %v2080_v46 = vrot.slane %v2074_v21, 4 }
0x1ff4   :  { %v2083_v48 = vadd.f32 %v2079_v43, %v3920_v42  ;;  %v2084_v34 = vadd.f32 %v2080_v46, %v3922_v27 }
0x1ff6   :  { %3371 = vtanh.f32 %v2083_v48  ;;  %v2993_v56 = vmul.f32 -1.442695, %v2083_v48  ;;  %v2994_v57 = vmul.f32 -1.442695, %v2084_v34 }
0x1ff7   :  { %3373 = vtanh.f32 %v2084_v34 }
0x1ff8   :  { %3375 = vpow2.f32 %v2993_v56 }
0x1ff9   :  { %v2076_v49 = vpop.f32.mrf.mxu0  ;;  %3377 = vpow2.f32 %v2994_v57 }
0x1ffc   :  { %v3372_v51 = vpop.eup %3371 }
0x1ffd   :  { %v3374_v53 = vpop.eup %3373  ;;  %2138 = vrot.lane.b32.xlu0 %v3372_v51, %s3490_s26 }
0x1ffe   :  { %2140 = vrot.lane.b32.xlu1 %v3374_v53, %s3490_s26  ;;  %v3376_v58 = vpop.eup %3375 }
0x1fff   :  { %v3378_v19 = vpop.eup %3377  ;;  %v2091_v60 = vadd.f32 1.0, %v3376_v58 }
0x2000   :  { %v2092_v1 = vadd.f32 1.0, %v3378_v19 }
0x2001   :  { %3379 = vrcp.f32 %v2091_v60  ;;  %v2104_v11 = vand.u32 2147483648, %v2091_v60  ;;  %vm2098_vm3 = vweird.f32 %v2091_v60  ;;  %v2102_v14 = vand.u32 2147483647, %v2091_v60 }
0x2002   :  { %3381 = vrcp.f32 %v2092_v1  ;;  %v2119_v13 = vand.u32 2147483648, %v2092_v1  ;;  %vm2113_vm4 = vweird.f32 %v2092_v1  ;;  %v2117_v16 = vand.u32 2147483647, %v2092_v1 }
0x2003   :  { %v2105_v12 = vor.u32 1.1754944e-38, %v2104_v11  ;;  %vm2103_vm7 = vcmp.eq.f32.partialorder %v2102_v14, 8.507059e+37 }
0x2004   :  { %v2120_v17 = vor.u32 1.1754944e-38, %v2119_v13  ;;  %vm2118_vm8 = vcmp.eq.f32.partialorder %v2117_v16, 8.507059e+37 }
0x2005   :  { %2130 = vrot.lane.b32.xlu0 %v2127_v55, %s3491_s7 }
0x2007   :  { %v3380_v61 = vpop.eup %3379 }
0x2008   :  { %v3382_v62 = vpop.eup %3381  ;;  %v2094_v2 = vmul.f32 %v3380_v61, %v2091_v60  ;;  %vm2099_vm1 = vweird.f32 %v3380_v61 }
0x2009   :  { %v2109_v3 = vmul.f32 %v3382_v62, %v2092_v1  ;;  %vm2114_vm2 = vweird.f32 %v3382_v62  ;;  %vm2100_vm5 = vmor %vm2098_vm3, %vm2099_vm1 }
0x200a   :  { %v2095_v59 = vsub.f32 1.0, %v2094_v2  ;;  %vm2115_vm6 = vmor %vm2113_vm4, %vm2114_vm2 }
0x200b   :  { %v2110_v5 = vsub.f32 1.0, %v2109_v3 }
0x200c   :  { %v2096_v6 = vmul.f32 %v3380_v61, %v2095_v59 }
0x200d   :  { %v2111_v36 = vmul.f32 %v3382_v62, %v2110_v5 }
0x200e   :  { %v2097_v7 = vadd.f32 %v3380_v61, %v2096_v6 }
0x200f   :  { %v2112_v10 = vadd.f32 %v3382_v62, %v2111_v36 }
0x2010   :  { %v2101_v47 = vsel %vm2100_vm5, %v3380_v61, %v2097_v7 }
0x2011   :  { %v2116_v24 = vsel %vm2115_vm6, %v3382_v62, %v2112_v10  ;;  %v2106_v8 = vsel %vm2103_vm7, %v2105_v12, %v2101_v47 }
0x2012   :  { %v2121_v20 = vsel %vm2118_vm8, %v2120_v17, %v2116_v24  ;;  %v2134_v37 = vmul.f32 %v2129_v63, %v2106_v8 }
0x206f   :  { %v2139_v18 = vpop.permute.xlu0 %2138 }
0x2070   :  { %v2141_v52 = vpop.permute.xlu1 %2140  ;;  %v2144_v22 = vmul.f32 %v2139_v18, %v2106_v8 }
0x2071   :  { %v2145_v28 = vmul.f32 %v2141_v52, %v2121_v20 }
0x2072   :  { %2148 = vrot.lane.b32.xlu1 %v2144_v22, %s3491_s7 }
0x2073   :  { %2150 = vrot.lane.b32.xlu2 %v2145_v28, %s3491_s7 }
0x2077   :  { %v2131_v26 = vpop.permute.xlu0 %2130 }
0x2078   :  { %v2135_v31 = vmul.f32 %v2131_v26, %v2121_v20 }
0x207b   :  { %2169 = vperm.xlu2 %3131, %v4098_v30  }
0x2083   :  { %3133 = vset.pattern.permute.xlu2 %v3498_v25 }
0x20cd   :  { %v2151_v9 = vpop.permute.xlu2 %2150 }
0x20ce   :  { %v2155_v32 = vadd.f32 %v2151_v9, %v2135_v31 }
0x20d0   :  { %3383 = vtanh.f32 %v2155_v32  ;;  %v2190_v40 = vrot.slane %v2155_v32, 4 }
0x20d5   :  { %v2170_v48 = vpop.permute.xlu2 %2169 }
0x20d6   :  { %v3384_v35 = vpop.eup %3383 }
0x20d7   :  { %2162 = vrot.lane.b32.xlu1 %v3384_v35, %s3490_s26 }
0x20df   :  { %2182 = vperm.xlu1 %3132, %v3941_v33  }
0x20e4   :  { %v2149_v38 = vpop.permute.xlu1 %2148 }
0x20e5   :  { %v2154_v39 = vadd.f32 %v2149_v38, %v2134_v37 }
0x20e7   :  { %3385 = vtanh.f32 %v2154_v39  ;;  %v2189_v21 = vrot.slane %v2154_v39, 5  ;;  %3134 = vset.pattern.permute.xlu1 %v3498_v25 }
0x20e9   :  { %v2191_v43 = vsel %vm237_vm9, %v2190_v40, %v2189_v21 }
0x20ea   :  { %2192 = vrot.lane.b32.xlu2 %v2191_v43, %s3492_s0 }
0x20ed   :  { %v3386_v46 = vpop.eup %3385 }
0x20ee   :  { %2160 = vrot.lane.b32.xlu0 %v3386_v46, %s3490_s26 }
0x2144   :  { %v2193_v49 = vpop.permute.xlu2 %2192 }
0x2145   :  { %v2195_v53 = vmul.f32 %v2193_v49, %v2170_v48 }
0x2149   :  { %v2163_v34 = vpop.permute.xlu1 %2162 }
0x214a   :  { %v2167_v58 = vmul.f32 %v2163_v34, %v2121_v20 }
0x214c   :  { %v2175_v1 = vrot.slane %v2167_v58, 4 }
0x2151   :  { %v2183_v51 = vpop.permute.xlu1 %2182 }
0x2152   :  { %v2196_v55 = vmul.f32 %v2183_v51, %v4073_v23  ;;  %v2185_v3 = vmul.f32 %v2183_v51, %v4080_v41 }
0x2154   :  { %v4109_v56 = vadd.f32 %v2196_v55, %v2195_v53 }
0x2156   :  { %v2268_v57 = vrot.slane %v4109_v56, 2  ;;  %v2269_v47 = vrot.slane %v4109_v56, 3 }
0x2158   :  { %2270 = vrot.lane.b32.xlu2 %v2268_v57, %s3491_s7 }
0x2160   :  { %v2161_v19 = vpop.permute.xlu0 %2160 }
0x2161   :  { %v2166_v60 = vmul.f32 %v2161_v19, %v2106_v8 }
0x2163   :  { %v2174_v61 = vrot.slane %v2166_v60, 5 }
0x2165   :  { %v2176_v62 = vsel %vm237_vm9, %v2175_v1, %v2174_v61 }
0x2166   :  { %2177 = vrot.lane.b32.xlu0 %v2176_v62, %s3491_s7 }
0x21b2   :  { %v2271_v19 = vpop.permute.xlu2 %2270 }
0x21d8   :  { %v2178_v2 = vpop.permute.xlu0 %2177 }
0x21d9   :  { %v2180_v59 = vmul.f32 %v2178_v2, %v2170_v48 }
0x21db   :  { %v4116_v23 = vadd.f32 %v2185_v3, %v2180_v59  ;;  %v2199_v5 = vrot.slane %v2180_v59, 1  ;;  %2201 = vst.msk [vmem:[#allocation3 + $0x5] sm:$0x1] %vm263_vm10, %v2180_v59 }
0x21dd   :  { %2202 = vst.msk [vmem:[#allocation3 + $0xd] sm:$0x1] %vm263_vm10, %v2199_v5  ;;  %v2203_v6 = vpack.c.bf16 %v4116_v23, %v4116_v23 }
0x21df   :  { %2995 = vmatmul.msk.bf16.vlgmr.msra.gmra.mxu1 %vm97_vm0, %v2203_v6 }
0x225c   :  { %v2216_v36 = vpop.f32.mrf.mxu1 }
0x225d   :  { %v2221_v7 = vrot.slane %v2216_v36, 2  ;;  %v2222_v10 = vrot.slane %v2216_v36, 3 }
0x225f   :  { %v2225_v11 = vadd.f32 %v2221_v7, %v3920_v42  ;;  %v2226_v41 = vadd.f32 %v2222_v10, %v3922_v27 }
0x2261   :  { %3387 = vtanh.f32 %v2225_v11  ;;  %v2996_v24 = vmul.f32 -1.442695, %v2225_v11  ;;  %v2997_v12 = vmul.f32 -1.442695, %v2226_v41 }
0x2262   :  { %3389 = vtanh.f32 %v2226_v41 }
0x2263   :  { %3391 = vpow2.f32 %v2996_v24 }
0x2264   :  { %v2218_v13 = vpop.f32.mrf.mxu1  ;;  %3393 = vpow2.f32 %v2997_v12 }
0x2267   :  { %v3388_v14 = vpop.eup %3387 }
0x2268   :  { %v3390_v16 = vpop.eup %3389  ;;  %2280 = vrot.lane.b32.xlu0 %v3388_v14, %s3490_s26 }
0x2269   :  { %2282 = vrot.lane.b32.xlu1 %v3390_v16, %s3490_s26  ;;  %v3392_v17 = vpop.eup %3391 }
0x226a   :  { %v3394_v18 = vpop.eup %3393  ;;  %v2233_v8 = vadd.f32 1.0, %v3392_v17 }
0x226b   :  { %v2234_v52 = vadd.f32 1.0, %v3394_v18 }
0x226c   :  { %3395 = vrcp.f32 %v2233_v8  ;;  %v2246_v38 = vand.u32 2147483648, %v2233_v8  ;;  %vm2240_vm13 = vweird.f32 %v2233_v8  ;;  %v2244_v40 = vand.u32 2147483647, %v2233_v8 }
0x226d   :  { %3397 = vrcp.f32 %v2234_v52  ;;  %v2261_v39 = vand.u32 2147483648, %v2234_v52  ;;  %vm2255_vm14 = vweird.f32 %v2234_v52  ;;  %v2259_v21 = vand.u32 2147483647, %v2234_v52 }
0x226e   :  { %v2247_v48 = vor.u32 1.1754944e-38, %v2246_v38  ;;  %vm2245_vm2 = vcmp.eq.f32.partialorder %v2244_v40, 8.507059e+37 }
0x226f   :  { %v2262_v34 = vor.u32 1.1754944e-38, %v2261_v39  ;;  %vm2260_vm3 = vcmp.eq.f32.partialorder %v2259_v21, 8.507059e+37 }
0x2270   :  { %2272 = vrot.lane.b32.xlu0 %v2269_v47, %s3491_s7 }
0x2272   :  { %v3396_v20 = vpop.eup %3395 }
0x2273   :  { %v3398_v22 = vpop.eup %3397  ;;  %v2236_v28 = vmul.f32 %v3396_v20, %v2233_v8  ;;  %vm2241_vm11 = vweird.f32 %v3396_v20 }
0x2274   :  { %v2251_v63 = vmul.f32 %v3398_v22, %v2234_v52  ;;  %vm2256_vm12 = vweird.f32 %v3398_v22  ;;  %vm2242_vm15 = vmor %vm2240_vm13, %vm2241_vm11 }
0x2275   :  { %v2237_v26 = vsub.f32 1.0, %v2236_v28  ;;  %vm2257_vm1 = vmor %vm2255_vm14, %vm2256_vm12  ;;  %vm2499_vm14 = vcmask 785408  }
0x2276   :  { %v2252_v31 = vsub.f32 1.0, %v2251_v63 }
0x2277   :  { %v2238_v9 = vmul.f32 %v3396_v20, %v2237_v26 }
0x2278   :  { %v2253_v32 = vmul.f32 %v3398_v22, %v2252_v31 }
0x2279   :  { %v2239_v35 = vadd.f32 %v3396_v20, %v2238_v9 }
0x227a   :  { %v2254_v37 = vadd.f32 %v3398_v22, %v2253_v32 }
0x227b   :  { %v2243_v43 = vsel %vm2242_vm15, %v3396_v20, %v2239_v35 }
0x227c   :  { %v2258_v46 = vsel %vm2257_vm1, %v3398_v22, %v2254_v37  ;;  %v2248_v51 = vsel %vm2245_vm2, %v2247_v48, %v2243_v43 }
0x227d   :  { %v2263_v55 = vsel %vm2260_vm3, %v2262_v34, %v2258_v46  ;;  %v2276_v3 = vmul.f32 %v2271_v19, %v2248_v51 }
0x22da   :  { %v2281_v49 = vpop.permute.xlu0 %2280 }
0x22db   :  { %v2283_v53 = vpop.permute.xlu1 %2282  ;;  %v2286_v57 = vmul.f32 %v2281_v49, %v2248_v51 }
0x22dc   :  { %v2287_v58 = vmul.f32 %v2283_v53, %v2263_v55 }
0x22dd   :  { %2290 = vrot.lane.b32.xlu1 %v2286_v57, %s3491_s7 }
0x22de   :  { %2292 = vrot.lane.b32.xlu2 %v2287_v58, %s3491_s7 }
0x22e2   :  { %v2273_v60 = vpop.permute.xlu0 %2272 }
0x22e3   :  { %v2277_v1 = vmul.f32 %v2273_v60, %v2263_v55 }
0x22e6   :  { %2311 = vperm.xlu2 %3133, %v4098_v30  }
0x22ee   :  { %3135 = vset.pattern.permute.xlu2 %v3499_v45 }
0x2338   :  { %v2293_v61 = vpop.permute.xlu2 %2292 }
0x2339   :  { %v2297_v62 = vadd.f32 %v2293_v61, %v2277_v1 }
0x233b   :  { %3399 = vtanh.f32 %v2297_v62  ;;  %v2332_v6 = vrot.slane %v2297_v62, 5 }
0x2340   :  { %v2312_v11 = vpop.permute.xlu2 %2311 }
0x2341   :  { %v3400_v2 = vpop.eup %3399 }
0x2342   :  { %2304 = vrot.lane.b32.xlu1 %v3400_v2, %s3490_s26 }
0x234a   :  { %2324 = vperm.xlu1 %3134, %v3941_v33  }
0x234f   :  { %v2291_v59 = vpop.permute.xlu1 %2290 }
0x2350   :  { %v2296_v5 = vadd.f32 %v2291_v59, %v2276_v3 }
0x2352   :  { %3401 = vtanh.f32 %v2296_v5  ;;  %v2331_v36 = vrot.slane %v2296_v5, 6  ;;  %3137 = vset.pattern.permute.xlu1 %v3493_v54 }
0x2354   :  { %v2333_v7 = vsel %vm237_vm9, %v2332_v6, %v2331_v36 }
0x2355   :  { %2334 = vrot.lane.b32.xlu2 %v2333_v7, %s3492_s0 }
0x2358   :  { %v3402_v10 = vpop.eup %3401 }
0x2359   :  { %2302 = vrot.lane.b32.xlu0 %v3402_v10, %s3490_s26 }
0x23af   :  { %v2335_v13 = vpop.permute.xlu2 %2334 }
0x23b0   :  { %v2337_v33 = vmul.f32 %v2335_v13, %v2312_v11 }
0x23b4   :  { %v2305_v41 = vpop.permute.xlu1 %2304 }
0x23b5   :  { %v2309_v12 = vmul.f32 %v2305_v41, %v2263_v55 }
0x23b7   :  { %v2317_v8 = vrot.slane %v2309_v12, 5 }
0x23bc   :  { %v2325_v14 = vpop.permute.xlu1 %2324 }
0x23bd   :  { %v2338_v16 = vmul.f32 %v2325_v14, %v4109_v56  ;;  %v2327_v28 = vmul.f32 %v2325_v14, %v4116_v23 }
0x23bf   :  { %v2339_v47 = vadd.f32 %v2338_v16, %v2337_v33  ;;  %v2475_v16 = vrot.slane %v3909_v29, 1 }
0x23c1   :  { %v2410_v24 = vrot.slane %v2339_v47, 1  ;;  %v2411_v21 = vrot.slane %v2339_v47, 2  ;;  %v2477_v47 = vperm.slane %v2475_v16, 0 }
0x23c3   :  { %2412 = vrot.lane.b32.xlu2 %v2410_v24, %s3491_s7 }
0x23cb   :  { %v2303_v17 = vpop.permute.xlu0 %2302 }
0x23cc   :  { %v2308_v18 = vmul.f32 %v2303_v17, %v2248_v51 }
0x23ce   :  { %v2316_v52 = vrot.slane %v2308_v18, 6 }
0x23d0   :  { %v2318_v20 = vsel %vm237_vm9, %v2317_v8, %v2316_v52 }
0x23d1   :  { %2319 = vrot.lane.b32.xlu0 %v2318_v20, %s3491_s7  ;;  %v2476_v20 = vperm.slane %v3909_v29, 0  ;;  %v3082_v29 = vld [vmem:[%s4276_s12 + $0x30] sm:$0xff] }
0x241d   :  { %v2413_v24 = vpop.permute.xlu2 %2412 }
0x2443   :  { %v2320_v22 = vpop.permute.xlu0 %2319 }
0x2444   :  { %v2322_v63 = vmul.f32 %v2320_v22, %v2312_v11 }
0x2446   :  { %v2328_v26 = vadd.f32 %v2327_v28, %v2322_v63  ;;  %v2341_v31 = vrot.slane %v2322_v63, 1  ;;  %2343 = vst.msk [vmem:[#allocation3 + $0x6] sm:$0x1] %vm263_vm10, %v2322_v63 }
0x2448   :  { %2344 = vst.msk [vmem:[#allocation3 + $0xe] sm:$0x1] %vm263_vm10, %v2341_v31  ;;  %v2345_v56 = vpack.c.bf16 %v2328_v26, %v2328_v26  ;;  %v2479_v26 = vld [vmem:[%s4293_s22 + $0x8] sm:$0xff]  ;;  %v3083_v31 = vld [vmem:[%s4276_s12 + $0x38] sm:$0xff] }
0x2449   :  { %2569 = vmatpush.bf16.msra.mxu3 %v3083_v31  ;;  %v2472_v31 = vld [vmem:[#allocation2] sm:$0xff] }
0x244a   :  { %2998 = vmatmul.msk.bf16.vlgmr.msra.gmra.mxu2 %vm97_vm0, %v2345_v56  ;;  %v3081_v56 = vld [vmem:[%s4276_s12 + $0x28] sm:$0xff] }
0x244d   :  { %2570 = vmatpush.bf16.msra.mxu3 %v3082_v29 }
0x2451   :  { %2571 = vmatpush.bf16.msra.mxu3 %v3081_v56  ;;  %v2631_v56 = vperm.slane %v2472_v31, 1 }
0x24cd   :  { %v2358_v9 = vpop.f32.mrf.mxu2 }
0x24ce   :  { %v2363_v32 = vrot.slane %v2358_v9, 1  ;;  %v2364_v35 = vrot.slane %v2358_v9, 2  ;;  %v3080_v9 = vld [vmem:[%s4276_s12 + $0x20] sm:$0xff] }
0x24cf   :  { %2572 = vmatpush.bf16.msra.mxu3 %v3080_v9 }
0x24d0   :  { %v2367_v37 = vadd.f32 %v2363_v32, %v3920_v42  ;;  %v2368_v38 = vadd.f32 %v2364_v35, %v3922_v27 }
0x24d2   :  { %3403 = vtanh.f32 %v2367_v37  ;;  %v2999_v43 = vmul.f32 -1.442695, %v2367_v37  ;;  %v3000_v46 = vmul.f32 -1.442695, %v2368_v38 }
0x24d3   :  { %3405 = vtanh.f32 %v2368_v38 }
0x24d4   :  { %3407 = vpow2.f32 %v2999_v43  ;;  %v3079_v43 = vld [vmem:[%s4276_s12 + $0x18] sm:$0xff] }
0x24d5   :  { %v2360_v23 = vpop.f32.mrf.mxu2  ;;  %3409 = vpow2.f32 %v3000_v46  ;;  %2573 = vmatpush.bf16.msra.mxu3 %v3079_v43  ;;  %v3078_v46 = vld [vmem:[%s4276_s12 + $0x10] sm:$0xff] }
0x24d8   :  { %v3404_v39 = vpop.eup %3403 }
0x24d9   :  { %v3406_v40 = vpop.eup %3405  ;;  %2422 = vrot.lane.b32.xlu0 %v3404_v39, %s3490_s26  ;;  %2574 = vmatpush.bf16.msra.mxu3 %v3078_v46 }
0x24da   :  { %2424 = vrot.lane.b32.xlu1 %v3406_v40, %s3490_s26  ;;  %v3408_v48 = vpop.eup %3407 }
0x24db   :  { %v3410_v42 = vpop.eup %3409  ;;  %v2375_v34 = vadd.f32 1.0, %v3408_v48  ;;  %v3077_v48 = vld [vmem:[%s4276_s12 + $0x8] sm:$0xff] }
0x24dc   :  { %v2376_v27 = vadd.f32 1.0, %v3410_v42  ;;  %v3076_v42 = vld [vmem:[%s4276_s12] sm:$0xff] }
0x24dd   :  { %3411 = vrcp.f32 %v2375_v34  ;;  %v2388_v62 = vand.u32 2147483648, %v2375_v34  ;;  %vm2382_vm6 = vweird.f32 %v2375_v34  ;;  %v2386_v3 = vand.u32 2147483647, %v2375_v34  ;;  %2575 = vmatpush.bf16.msra.mxu3 %v3077_v48 }
0x24de   :  { %3413 = vrcp.f32 %v2376_v27  ;;  %v2403_v2 = vand.u32 2147483648, %v2376_v27  ;;  %vm2397_vm7 = vweird.f32 %v2376_v27  ;;  %v2401_v59 = vand.u32 2147483647, %v2376_v27 }
0x24df   :  { %v2389_v36 = vor.u32 1.1754944e-38, %v2388_v62  ;;  %vm2387_vm12 = vcmp.eq.f32.partialorder %v2386_v3, 8.507059e+37 }
0x24e0   :  { %v2404_v7 = vor.u32 1.1754944e-38, %v2403_v2  ;;  %vm2402_vm13 = vcmp.eq.f32.partialorder %v2401_v59, 8.507059e+37 }
0x24e1   :  { %2414 = vrot.lane.b32.xlu0 %v2411_v21, %s3491_s7  ;;  %v2478_v21 = vld [vmem:[%s4293_s22] sm:$0xff]  ;;  %2576 = vmatpush.bf16.msra.mxu3 %v3076_v42 }
0x24e3   :  { %v3412_v49 = vpop.eup %3411 }
0x24e4   :  { %v3414_v51 = vpop.eup %3413  ;;  %v2378_v53 = vmul.f32 %v3412_v49, %v2375_v34  ;;  %vm2383_vm4 = vweird.f32 %v3412_v49 }
0x24e5   :  { %v2393_v55 = vmul.f32 %v3414_v51, %v2376_v27  ;;  %vm2398_vm5 = vweird.f32 %v3414_v51  ;;  %vm2384_vm8 = vmor %vm2382_vm6, %vm2383_vm4 }
0x24e6   :  { %v2379_v57 = vsub.f32 1.0, %v2378_v53  ;;  %vm2399_vm11 = vmor %vm2397_vm7, %vm2398_vm5 }
0x24e7   :  { %v2394_v58 = vsub.f32 1.0, %v2393_v55 }
0x24e8   :  { %v2380_v19 = vmul.f32 %v3412_v49, %v2379_v57 }
0x24e9   :  { %v2395_v60 = vmul.f32 %v3414_v51, %v2394_v58 }
0x24ea   :  { %v2381_v1 = vadd.f32 %v3412_v49, %v2380_v19 }
0x24eb   :  { %v2396_v61 = vadd.f32 %v3414_v51, %v2395_v60 }
0x24ec   :  { %v2385_v5 = vsel %vm2384_vm8, %v3412_v49, %v2381_v1 }
0x24ed   :  { %v2400_v6 = vsel %vm2399_vm11, %v3414_v51, %v2396_v61  ;;  %v2390_v11 = vsel %vm2387_vm12, %v2389_v36, %v2385_v5 }
0x24ee   :  { %v2405_v13 = vsel %vm2402_vm13, %v2404_v7, %v2400_v6  ;;  %v3160_v6 = vld [vmem:[%s4277_s13] ss:$0 sm:$0xff] }
0x254b   :  { %v2423_v10 = vpop.permute.xlu0 %2422 }
0x254c   :  { %v2425_v41 = vpop.permute.xlu1 %2424  ;;  %v2428_v14 = vmul.f32 %v2423_v10, %v2390_v11 }
0x254d   :  { %v2429_v33 = vmul.f32 %v2425_v41, %v2405_v13 }
0x254e   :  { %2432 = vrot.lane.b32.xlu1 %v2428_v14, %s3491_s7 }
0x254f   :  { %2434 = vrot.lane.b32.xlu2 %v2429_v33, %s3491_s7 }
0x2553   :  { %v2415_v12 = vpop.permute.xlu0 %2414 }
0x2554   :  { %v2419_v17 = vmul.f32 %v2415_v12, %v2405_v13 }
0x2557   :  { %2453 = vperm.xlu2 %3135, %v4098_v30   ;;  %v2418_v30 = vmul.f32 %v2413_v24, %v2390_v11 }
0x255f   :  { %2482 = vrot.lane.b32.xlu2 %v2477_v47, %s3491_s7 }
0x2560   :  { %3136 = vset.pattern.permute.xlu2 %v3489_v4 }
0x25a9   :  { %v2435_v18 = vpop.permute.xlu2 %2434 }
0x25aa   :  { %v2439_v8 = vadd.f32 %v2435_v18, %v2419_v17 }
0x25ac   :  { %3415 = vtanh.f32 %v2439_v8 }
0x25b1   :  { %v2454_v34 = vpop.permute.xlu2 %2453 }
0x25b2   :  { %v3416_v52 = vpop.eup %3415 }
0x25b3   :  { %2446 = vrot.lane.b32.xlu1 %v3416_v52, %s3490_s26 }
0x25b9   :  { %v2483_v60 = vpop.permute.xlu2 %2482 }
0x25bb   :  { %2480 = vrot.lane.b32.xlu1 %v2476_v20, %s3491_s7 }
0x25c0   :  { %v2433_v22 = vpop.permute.xlu1 %2432 }
0x25c1   :  { %v2438_v28 = vadd.f32 %v2433_v22, %v2418_v30 }
0x25c3   :  { %3417 = vtanh.f32 %v2438_v28  ;;  %2490 = vrot.lane.b32.xlu1 %v2479_v26, %s3490_s26  ;;  %v3087_v26 = vld [vmem:[%s4278_s14 + $0x18] sm:$0xff] }
0x25c4   :  { %2775 = vmatpush.bf16.msrb.mxu0 %v3087_v26 }
0x25c9   :  { %v3418_v63 = vpop.eup %3417 }
0x25ca   :  { %2444 = vrot.lane.b32.xlu0 %v3418_v63, %s3490_s26 }
0x2625   :  { %v2447_v32 = vpop.permute.xlu1 %2446 }
0x2626   :  { %v2451_v35 = vmul.f32 %v2447_v32, %v2405_v13  ;;  %v2617_v32 = vperm.slane %v2472_v31, 0 }
0x2628   :  { %v2459_v23 = vrot.slane %v2451_v35, 6 }
0x262d   :  { %v2481_v51 = vpop.permute.xlu1 %2480 }
0x2635   :  { %v2491_v19 = vpop.permute.xlu1 %2490 }
0x263c   :  { %v2445_v37 = vpop.permute.xlu0 %2444 }
0x263d   :  { %v2450_v38 = vmul.f32 %v2445_v37, %v2390_v11 }
0x263f   :  { %v2458_v39 = vrot.slane %v2450_v38, 7  ;;  %v2645_v38 = vperm.slane %v2472_v31, 2 }
0x2641   :  { %v2460_v40 = vsel %vm237_vm9, %v2459_v23, %v2458_v39  ;;  %vm2496_vm9 = vcmask 523264   ;;  %v3085_v39 = vld [vmem:[%s4278_s14 + $0x8] sm:$0xff] }
0x2642   :  { %2461 = vrot.lane.b32.xlu0 %v2460_v40, %s3491_s7  ;;  %v2659_v40 = vperm.slane %v2472_v31, 3 }
0x264a   :  { %2488 = vrot.lane.b32.xlu0 %v2478_v21, %s3490_s26  ;;  %s2873_s26 = sshll.u32 %s4282_s18, 4  ;;  %s2874_s26 = int_to_ptr.hbm [resolvable:$true] %s2873_s26 }
0x26b4   :  { %v2462_v27 = vpop.permute.xlu0 %2461 }
0x26b5   :  { %v2464_v49 = vmul.f32 %v2462_v27, %v2454_v34 }
0x26b7   :  { %v2466_v53 = vrot.slane %v2464_v49, 1  ;;  %2468 = vst.msk [vmem:[#allocation3 + $0x7] sm:$0x1] %vm263_vm10, %v2464_v49 }
0x26b9   :  { %2469 = vst.msk [vmem:[#allocation3 + $0xf] sm:$0x1] %vm263_vm10, %v2466_v53  ;;  %vm3033_vm10 = vmpackc.low %vm2499_vm14, %vm2499_vm14 }
0x26bc   :  { %v2489_v55 = vpop.permute.xlu0 %2488 }
0x26be   :  { %v4198_v57 = vld [vmem:[#allocation3] sm:$0xff] }
0x26bf   :  { %v2494_v58 = vsel %vm97_vm0, %v4198_v57, %v2481_v51 }
0x26c0   :  { %v2497_v1 = vsel %vm2496_vm9, %v2494_v58, %v2489_v55  ;;  %v4203_v61 = vld [vmem:[#allocation3 + $0x8] sm:$0xff] }
0x26c1   :  { %v2500_v62 = vsel %vm2499_vm14, %v2497_v1, 0.0  ;;  %v2495_v2 = vsel %vm97_vm0, %v4203_v61, %v2483_v60 }
0x26c2   :  { %2502 = vst [vmem:[#allocation6] sm:$0xff] %v2500_v62  ;;  %v2498_v3 = vsel %vm2496_vm9, %v2495_v2, %v2491_v19 }
0x26c3   :  { %v2501_v59 = vsel %vm2499_vm14, %v2498_v3, 0.0  ;;  %v3034_v5 = vpack.c.bf16 %v2498_v3, %v2497_v1  ;;  %v2673_v1 = vperm.slane %v2472_v31, 4 }
0x26c4   :  { %2503 = vst [vmem:[#allocation6 + $0x8] sm:$0xff] %v2501_v59 }
0x26c5   :  { %3035 = vmatmul.msk.bf16.vlgmr.msra.gmra.mxu3 %vm3033_vm10, %v3034_v5 }
0x2748   :  { %v2578_v36 = vpop.f32.mrf.mxu3 }
0x2749   :  { %v2587_v7 = vadd.f32 %v3160_v6, %v2578_v36 }
0x274b   :  { %2589 = vmax.xlane.f32.xlu2 %v2587_v7 }
0x2750   :  { %v2580_v10 = vpop.f32.mrf.mxu3 }
0x2751   :  { %v2588_v11 = vadd.f32 %v3160_v6, %v2580_v10  ;;  %v2687_v10 = vperm.slane %v2472_v31, 5 }
0x2753   :  { %2591 = vmax.xlane.f32.xlu0 %v2588_v11 }
0x27be   :  { %v2590_v41 = vpop.xlane.xlu2 %2589 }
0x27bf   :  { %v2593_v13 = vsub.f32 %v2587_v7, %v2590_v41 }
0x27c1   :  { %v2595_v14 = vmul.f32 1.442695, %v2593_v13 }
0x27c3   :  { %3419 = vpow2.f32 %v2595_v14 }
0x27c6   :  { %v2592_v33 = vpop.xlane.xlu0 %2591 }
0x27c7   :  { %v2594_v16 = vsub.f32 %v2588_v11, %v2592_v33 }
0x27c9   :  { %v3420_v47 = vpop.eup %3419  ;;  %v2597_v24 = vmul.f32 1.442695, %v2594_v16 }
0x27ca   :  { %2599 = vadd.xlane.f32.xlu1 %v3420_v47 }
0x27cb   :  { %3421 = vpow2.f32 %v2597_v24 }
0x27d1   :  { %v3422_v12 = vpop.eup %3421 }
0x27d2   :  { %2601 = vadd.xlane.f32.xlu2 %v3422_v12 }
0x283d   :  { %v2600_v17 = vpop.xlane.xlu1 %2599 }
0x283e   :  { %3423 = vrcp.f32 %v2600_v17 }
0x2844   :  { %v3424_v18 = vpop.eup %3423 }
0x2845   :  { %v2605_v8 = vmul.f32 %v3424_v18, %v3420_v47  ;;  %v2602_v52 = vpop.xlane.xlu2 %2601  ;;  %v2701_v47 = vperm.slane %v2472_v31, 6 }
0x2846   :  { %3425 = vrcp.f32 %v2602_v52 }
0x2847   :  { %2624 = vperm.xlu1 %3137, %v2605_v8   ;;  %2666 = vperm.xlu0 %3140, %v2605_v8  }
0x2848   :  { %2609 = vperm.xlu2 %3136, %v2605_v8  }
0x284c   :  { %v3426_v20 = vpop.eup %3425 }
0x284d   :  { %v2606_v30 = vmul.f32 %v3426_v20, %v3422_v12  ;;  %v2715_v20 = vperm.slane %v2472_v31, 7 }
0x284f   :  { %3138 = vset.pattern.permute.xlu1 %v3494_v50  ;;  %3143 = vset.pattern.permute.xlu0 %v3489_v4 }
0x2850   :  { %3141 = vset.pattern.permute.xlu2 %v3497_v0  ;;  %2638 = vperm.xlu1 %3138, %v2605_v8  }
0x2851   :  { %2680 = vperm.xlu2 %3141, %v2605_v8   ;;  %2614 = vperm.xlu0 %3143, %v2606_v30  }
0x2858   :  { %3139 = vset.pattern.permute.xlu1 %v3495_v15 }
0x2859   :  { %3142 = vset.pattern.permute.xlu2 %v3498_v25  ;;  %3149 = vset.pattern.permute.xlu0 %v3498_v25 }
0x285a   :  { %2652 = vperm.xlu1 %3139, %v2605_v8   ;;  %2694 = vperm.xlu2 %3142, %v2605_v8  }
0x285b   :  { %2698 = vperm.xlu0 %3149, %v2606_v30  }
0x2862   :  { %3147 = vset.pattern.permute.xlu1 %v3496_v44  ;;  %3144 = vset.pattern.permute.xlu2 %v3493_v54 }
0x2863   :  { %2670 = vperm.xlu1 %3147, %v2606_v30   ;;  %2628 = vperm.xlu2 %3144, %v2606_v30  }
0x2864   :  { %3157 = vset.pattern.permute.xlu0 %v3499_v45 }
0x286b   :  { %3148 = vset.pattern.permute.xlu1 %v3497_v0  ;;  %3145 = vset.pattern.permute.xlu2 %v3494_v50 }
0x286c   :  { %2684 = vperm.xlu1 %3148, %v2606_v30   ;;  %2642 = vperm.xlu2 %3145, %v2606_v30  }
0x2874   :  { %3150 = vset.pattern.permute.xlu1 %v3499_v45  ;;  %3146 = vset.pattern.permute.xlu2 %v3495_v15  ;;  %v2473_v15 = vld [vmem:[#allocation2 + $0x8] sm:$0xff] }
0x2875   :  { %2708 = vperm.xlu1 %3150, %v2605_v8   ;;  %2656 = vperm.xlu2 %3146, %v2606_v30   ;;  %v2618_v9 = vperm.slane %v2473_v15, 0  ;;  %v2632_v37 = vperm.slane %v2473_v15, 1  ;;  %v2646_v42 = vperm.slane %v2473_v15, 2  ;;  %v2660_v34 = vperm.slane %v2473_v15, 3 }
0x2876   :  { %v2674_v60 = vperm.slane %v2473_v15, 4  ;;  %v2688_v59 = vperm.slane %v2473_v15, 5  ;;  %v2702_v33 = vperm.slane %v2473_v15, 6  ;;  %v2716_v8 = vperm.slane %v2473_v15, 7 }
0x287d   :  { %3151 = vset.pattern.permute.xlu2 %v3499_v45  ;;  %v3086_v45 = vld [vmem:[%s4278_s14 + $0x10] sm:$0xff] }
0x287e   :  { %2712 = vperm.xlu2 %3151, %v2606_v30   ;;  %2776 = vmatpush.bf16.msrb.mxu0 %v3086_v45 }
0x2882   :  { %2777 = vmatpush.bf16.msrb.mxu0 %v3085_v39 }
0x28a2   :  { %v2610_v4 = vpop.permute.xlu2 %2609 }
0x28a3   :  { %v2619_v43 = vmul.f32 %v2617_v32, %v2610_v4 }
0x28ab   :  { %v2681_v54 = vpop.permute.xlu2 %2680 }
0x28ac   :  { %v2689_v14 = vmul.f32 %v2687_v10, %v2681_v54  ;;  %v3084_v54 = vld [vmem:[%s4278_s14] sm:$0xff] }
0x28ad   :  { %2778 = vmatpush.bf16.msrb.mxu0 %v3084_v54 }
0x28b4   :  { %v2695_v44 = vpop.permute.xlu2 %2694 }
0x28b5   :  { %v2703_v18 = vmul.f32 %v2701_v47, %v2695_v44 }
0x28b9   :  { %v2625_v25 = vpop.permute.xlu1 %2624  ;;  %v2667_v0 = vpop.permute.xlu0 %2666 }
0x28ba   :  { %v2633_v35 = vmul.f32 %v2631_v56, %v2625_v25  ;;  %v2675_v5 = vmul.f32 %v2673_v1, %v2667_v0 }
0x28bc   :  { %v2635_v49 = vadd.f32 %v2633_v35, %v2619_v43  ;;  %v3089_v35 = vld [vmem:[%s4280_s16 + $0x8] sm:$0xff] }
0x28bd   :  { %v2629_v28 = vpop.permute.xlu2 %2628  ;;  %2857 = vmatpush.bf16.msrb.mxu1 %v3089_v35 }
0x28be   :  { %v2634_v46 = vmul.f32 %v2632_v37, %v2629_v28  ;;  %v3088_v37 = vld [vmem:[%s4280_s16] sm:$0xff] }
0x28c1   :  { %2858 = vmatpush.bf16.msrb.mxu1 %v3088_v37 }
0x28c2   :  { %v2639_v22 = vpop.permute.xlu1 %2638 }
0x28c3   :  { %v2615_v29 = vpop.permute.xlu0 %2614  ;;  %v2647_v48 = vmul.f32 %v2645_v38, %v2639_v22 }
0x28c4   :  { %v2620_v23 = vmul.f32 %v2618_v9, %v2615_v29  ;;  %v3161_v29 = vld [vmem:[%s4279_s15] ss:$0 sm:$0xff]  ;;  %s3500_s15 = smov [#allocation6]  }
0x28c5   :  { %v2649_v58 = vadd.f32 %v2647_v48, %v2635_v49  ;;  %s2884_s16 = sshll.u32 %s3500_s15, 4  ;;  %s2885_s16 = int_to_ptr.vmem [resolvable:$true] %s2884_s16 }
0x28c6   :  { %v2643_v50 = vpop.permute.xlu2 %2642  ;;  %v2636_v51 = vadd.f32 %v2634_v46, %v2620_v23  ;;  %2892 = dma.vmem_to_hbm [thread:$0]  %s2885_s16, 256, %s2887_s30, [#allocation7], %s3501_s20, %s3501_s20, %s3502_s8  }
0x28c7   :  { %v2648_v53 = vmul.f32 %v2646_v42, %v2643_v50 }
0x28c9   :  { %v2650_v62 = vadd.f32 %v2648_v53, %v2636_v51 }
0x28cc   :  { %v2653_v63 = vpop.permute.xlu1 %2652 }
0x28cd   :  { %v2661_v55 = vmul.f32 %v2659_v40, %v2653_v63  ;;  %v2699_v13 = vpop.permute.xlu0 %2698 }
0x28ce   :  { %v2704_v24 = vmul.f32 %v2702_v33, %v2699_v13 }
0x28cf   :  { %v2657_v27 = vpop.permute.xlu2 %2656  ;;  %v2663_v2 = vadd.f32 %v2661_v55, %v2649_v58 }
0x28d0   :  { %v2662_v19 = vmul.f32 %v2660_v34, %v2657_v27 }
0x28d1   :  { %v2677_v11 = vadd.f32 %v2675_v5, %v2663_v2 }
0x28d2   :  { %v2664_v6 = vadd.f32 %v2662_v19, %v2650_v62 }
0x28d3   :  { %v2691_v12 = vadd.f32 %v2689_v14, %v2677_v11 }
0x28d5   :  { %v2671_v21 = vpop.permute.xlu1 %2670  ;;  %v2705_v25 = vadd.f32 %v2703_v18, %v2691_v12 }
0x28d6   :  { %v2676_v3 = vmul.f32 %v2674_v60, %v2671_v21 }
0x28d8   :  { %v2678_v41 = vadd.f32 %v2676_v3, %v2664_v6  ;;  %v2713_v17 = vpop.permute.xlu2 %2712 }
0x28d9   :  { %v2718_v4 = vmul.f32 %v2716_v8, %v2713_v17 }
0x28de   :  { %v2685_v36 = vpop.permute.xlu1 %2684 }
0x28df   :  { %v2690_v7 = vmul.f32 %v2688_v59, %v2685_v36 }
0x28e1   :  { %v2692_v16 = vadd.f32 %v2690_v7, %v2678_v41 }
0x28e3   :  { %v2706_v52 = vadd.f32 %v2704_v24, %v2692_v16 }
0x28e5   :  { %v2720_v0 = vadd.f32 %v2718_v4, %v2706_v52 }
0x28e7   :  { %v2709_v30 = vpop.permute.xlu1 %2708 }
0x28e8   :  { %v2717_v22 = vmul.f32 %v2715_v20, %v2709_v30 }
0x28ea   :  { %v2719_v28 = vadd.f32 %v2717_v22, %v2705_v25 }
0x28ec   :  { %v3152_v63 = vpack.i.bf16 %v2720_v0, %v2719_v28 }
0x28ee   :  { %3153 = vrot.lane.b32.xlu1 %v3152_v63, %s3491_s7 }
0x2960   :  { %v3154_v50 = vpop.permute.xlu1 %3153 }
0x2961   :  { %v3156_v26 = vunpack.i.h.bf16 %v3154_v50  ;;  %v3155_v44 = vunpack.i.l.bf16 %v3154_v50 }
0x2963   :  { %v2730_v31 = vsel %vm97_vm0, %v4203_v61, %v3156_v26  ;;  %v2729_v15 = vsel %vm97_vm0, %v4198_v57, %v3155_v44 }
0x2964   :  { %v2731_v45 = vpack.c.bf16 %v2730_v31, %v2729_v15 }
0x2966   :  { %3052 = vmatmul.msk.bf16.vlgmr.msrb.gmra.mxu0 %vm2496_vm9, %v2731_v45 }
0x29e3   :  { %v2780_v56 = vpop.f32.mrf.mxu0 }
0x29e4   :  { %v2781_v9 = vadd.f32 %v3161_v29, %v2780_v56 }
0x29e6   :  { %v3053_v32 = vmul.f32 -1.442695, %v2781_v9 }
0x29e8   :  { %3427 = vpow2.f32 %v3053_v32 }
0x29eb   :  { %v2782_v38 = vpop.f32.mrf.mxu0 }
0x29ec   :  { %v2783_v23 = vadd.f32 %v3161_v29, %v2782_v38 }
0x29ee   :  { %v3428_v39 = vpop.eup %3427  ;;  %v3054_v40 = vmul.f32 -1.442695, %v2783_v23 }
0x29ef   :  { %v2791_v21 = vadd.f32 1.0, %v3428_v39 }
0x29f0   :  { %3429 = vpow2.f32 %v3054_v40 }
0x29f1   :  { %3431 = vrcp.f32 %v2791_v21  ;;  %v2804_v53 = vand.u32 2147483648, %v2791_v21  ;;  %vm2798_vm1 = vweird.f32 %v2791_v21  ;;  %v2802_v55 = vand.u32 2147483647, %v2791_v21 }
0x29f3   :  { %v2805_v1 = vor.u32 1.1754944e-38, %v2804_v53  ;;  %vm2803_vm3 = vcmp.eq.f32.partialorder %v2802_v55, 8.507059e+37 }
0x29f6   :  { %v3430_v43 = vpop.eup %3429 }
0x29f7   :  { %v3432_v46 = vpop.eup %3431  ;;  %v2792_v48 = vadd.f32 1.0, %v3430_v43 }
0x29f8   :  { %v2794_v42 = vmul.f32 %v3432_v46, %v2791_v21  ;;  %vm2799_vm15 = vweird.f32 %v3432_v46 }
0x29f9   :  { %3433 = vrcp.f32 %v2792_v48  ;;  %vm2800_vm2 = vmor %vm2798_vm1, %vm2799_vm15  ;;  %v2819_v62 = vand.u32 2147483648, %v2792_v48  ;;  %v2817_v3 = vand.u32 2147483647, %v2792_v48  ;;  %vm2813_vm5 = vweird.f32 %v2792_v48 }
0x29fa   :  { %v2795_v34 = vsub.f32 1.0, %v2794_v42 }
0x29fb   :  { %v2820_v6 = vor.u32 1.1754944e-38, %v2819_v62  ;;  %vm2818_vm7 = vcmp.eq.f32.partialorder %v2817_v3, 8.507059e+37 }
0x29fc   :  { %v2796_v27 = vmul.f32 %v3432_v46, %v2795_v34 }
0x29fe   :  { %v2797_v49 = vadd.f32 %v3432_v46, %v2796_v27 }
0x29ff   :  { %v3434_v51 = vpop.eup %3433 }
0x2a00   :  { %v2809_v58 = vmul.f32 %v3434_v51, %v2792_v48  ;;  %v2801_v19 = vsel %vm2800_vm2, %v3432_v46, %v2797_v49  ;;  %vm2814_vm4 = vweird.f32 %v3434_v51 }
0x2a01   :  { %v2806_v59 = vsel %vm2803_vm3, %v2805_v1, %v2801_v19  ;;  %vm2815_vm6 = vmor %vm2813_vm5, %vm2814_vm4 }
0x2a02   :  { %v2810_v60 = vsub.f32 1.0, %v2809_v58  ;;  %v2823_v7 = vmul.f32 %v2806_v59, %v2719_v28 }
0x2a04   :  { %v2811_v2 = vmul.f32 %v3434_v51, %v2810_v60  ;;  %v2825_v41 = vadd.f32 %v2823_v7, %v4198_v57  ;;  %v3162_v57 = vld [vmem:[%s4281_s17] ss:$0 sm:$0xff] }
0x2a06   :  { %v2812_v5 = vadd.f32 %v3434_v51, %v2811_v2 }
0x2a08   :  { %v2816_v36 = vsel %vm2815_vm6, %v3434_v51, %v2812_v5 }
0x2a09   :  { %v2821_v10 = vsel %vm2818_vm7, %v2820_v6, %v2816_v36 }
0x2a0a   :  { %v2824_v11 = vmul.f32 %v2821_v10, %v2720_v0 }
0x2a0c   :  { %v2826_v13 = vadd.f32 %v2824_v11, %v4203_v61 }
0x2a0e   :  { %v2827_v14 = vpack.c.bf16 %v2826_v13, %v2825_v41 }
0x2a10   :  { %3063 = vmatmul.msk.bf16.vlgmr.msrb.gmra.mxu1 %vm97_vm0, %v2827_v14 }
0x2a8d   :  { %v2860_v33 = vpop.f32.mrf.mxu1 }
0x2a8e   :  { %v2861_v61 = vadd.f32 %v3162_v57, %v2860_v33 }
0x2a90   :  { %2865 = vst [vmem:[#allocation4] sm:$0xff] %v2861_v61 }
0x2a95   :  { %v2862_v16 = vpop.f32.mrf.mxu1 }
0x2a96   :  { %v2863_v47 = vadd.f32 %v3162_v57, %v2862_v16 }
0x2a98   :  { %2866 = vst [vmem:[#allocation4 + $0x8] sm:$0xff] %v2863_v47 }
0x2a99   :  { %2879 = dma.vmem_to_hbm [thread:$0]  %s2872_s21, 256, %s2874_s26, [#allocation5], %s3501_s20, %s3501_s20, %s3502_s8  }
0x2a9a   :  { %3485 = dma.done.wait [#allocation5], 256  }
0x2a9b   :  { %3486 = vsyncadd [#allocation5], 4294967040 }
0x2a9c   :  { %3487 = dma.done.wait [#allocation7], 256  }
0x2a9d   :  { %3488 = vsyncadd [#allocation7], 4294967040 }
0x2a9e   :  { %2901 = vsyncpa [#allocation5], 1 }
0x2a9f   :  { %2902 = vsyncpa [#allocation7], 1 }

</bundles_post_ra>
